<compile_context>
chip_gen: v5e
topology: v5e:2x2
jax: 0.10.0
libtpu: 0.0.40
codegen_flags: <defaults>
</compile_context>

<pallas_src>
import jax
import jax.numpy as jnp
from jax.experimental import pallas as pl
from jax.experimental.pallas import tpu as pltpu

_INV_SQRT2 = 0.7071067811865476
_BN_EPS = 1e-5


def _gelu(x):
    # exact erf-based GELU, matching torch.nn.GELU() default (approximate='none')
    return 0.5 * x * (1.0 + jax.lax.erf(x * _INV_SQRT2))


# ----------------------------------------------------------------------------
# Fused kernel: per-point  GELU( f * bn_scale + (proj_row[shape[b]] + folded_shift) ) @ W3p + b3p
# ----------------------------------------------------------------------------
def _segpart_head_kernel(shape_ref,   # SMEM (B,) int32  — scalar prefetch (shape labels)
                         f_ref,       # VMEM (TN, H)     — backbone features tile
                         sh_ref,      # VMEM (1, H)      — folded head-BN scale
                         wp2_ref,     # VMEM (SC, H)     — folded proj matrix (incl. head-BN scale)
                         bp2_ref,     # VMEM (1, H)      — folded proj bias + head-BN shift
                         w3_ref,      # VMEM (H, NCP)    — classifier weight, lane-padded
                         b3_ref,      # VMEM (1, NCP)    — classifier bias, lane-padded
                         o_ref):      # VMEM (TN, NCP)
    b = pl.program_id(0)
    lbl = shape_ref[b]
    # one_hot(lbl) @ Wp2  ==  row gather (exact); recomputed per tile — (1,H) add, negligible.
    shift = wp2_ref[pl.ds(lbl, 1), :] + bp2_ref[...]                       # (1, H)
    y = _gelu(f_ref[...] * sh_ref[...] + shift)                            # BN(eval)+shape-add+GELU
    o_ref[...] = jnp.dot(y, w3_ref[...],
                         preferred_element_type=jnp.float32) + b3_ref[...]


# ----------------------------------------------------------------------------
# Parameter folding (done once on weights; zero numeric-semantics change)
# ----------------------------------------------------------------------------
def _fold_params(params, num_classes):
    s_p = params["bn_p_gamma"] * jax.lax.rsqrt(params["bn_p_var"] + _BN_EPS)
    t_p = params["bn_p_beta"] - params["bn_p_mean"] * s_p
    s_h = params["bn_h_gamma"] * jax.lax.rsqrt(params["bn_h_var"] + _BN_EPS)
    t_h = params["bn_h_beta"] - params["bn_h_mean"] * s_h

    w1t = params["w1"].T                         # (SC, 64)
    w2t = params["w2"].T                         # (64, H)
    wp = (w1t * s_p[None, :]) @ w2t              # (SC, H)  proj with its BN folded in
    bp = t_p @ w2t                               # (H,)

    wp2 = wp * s_h[None, :]                      # fold head-BN scale into the proj matrix
    bp2 = (bp * s_h + t_h)[None, :]              # (1, H)
    sh = s_h[None, :]                            # (1, H)

    H = w2t.shape[1]
    ncp = 128 * pl.cdiv(num_classes, 128)        # lane-pad classifier output
    w3p = jnp.zeros((H, ncp), jnp.float32).at[:, :num_classes].set(params["w3"].T)
    b3p = jnp.zeros((1, ncp), jnp.float32).at[0, :num_classes].set(params["b3"])
    return sh, wp2, bp2, w3p, b3p


def segpart_head(f, shape_labels, params, *, num_classes, tile_n=256):
    """f: (B, N, H) backbone output, shape_labels: (B,) int -> logits (B*N, num_classes)."""
    B, N, H = f.shape
    SC = params["w1"].shape[1]
    tile_n = min(tile_n, N)
    # TODO(synk): ragged N would need a masked tail tile; point counts here are padded multiples.
    assert N % tile_n == 0, (N, tile_n)

    sh, wp2, bp2, w3p, b3p = _fold_params(params, num_classes)
    ncp = w3p.shape[1]

    out = pl.pallas_call(
        _segpart_head_kernel,
        out_shape=jax.ShapeDtypeStruct((B, N, ncp), jnp.float32),
        grid_spec=pltpu.PrefetchScalarGridSpec(
            num_scalar_prefetch=1,
            grid=(B, N // tile_n),
            in_specs=[
                pl.BlockSpec((pl.Squeezed(), tile_n, H), lambda b, n, s: (b, n, 0)),
                pl.BlockSpec((1, H), lambda b, n, s: (0, 0)),
                pl.BlockSpec((SC, H), lambda b, n, s: (0, 0)),
                pl.BlockSpec((1, H), lambda b, n, s: (0, 0)),
                pl.BlockSpec((H, ncp), lambda b, n, s: (0, 0)),
                pl.BlockSpec((1, ncp), lambda b, n, s: (0, 0)),
            ],
            out_specs=pl.BlockSpec((pl.Squeezed(), tile_n, ncp),
                                   lambda b, n, s: (b, n, 0)),
        ),
        compiler_params=pltpu.CompilerParams(
            dimension_semantics=("parallel", "parallel")),
    )(shape_labels.astype(jnp.int32), f, sh, wp2, bp2, w3p, b3p)

    return out[:, :, :num_classes].reshape(B * N, num_classes)


# ----------------------------------------------------------------------------
# Deterministic parameter init (mirrors SegPartHead.__init__ / __init_weights, eval-mode BN stats)
# ----------------------------------------------------------------------------
def init_params(key, shape_classes, head_channels, num_classes):
    ks = jax.random.split(key, 12)

    def tn(k, shp):  # trunc_normal_(std=0.02)
        return 0.02 * jax.random.truncated_normal(k, -2.0, 2.0, shp, jnp.float32)

    p = {}
    # self.proj: Linear(SC, 64, no-bias) -> BatchNorm1d(64) -> Linear(64, H, no-bias)
    p["w1"] = tn(ks[0], (64, shape_classes))
    p["bn_p_gamma"] = 1.0 + 0.1 * jax.random.normal(ks[1], (64,), jnp.float32)
    p["bn_p_beta"] = 0.1 * jax.random.normal(ks[2], (64,), jnp.float32)
    p["bn_p_mean"] = 0.1 * jax.random.normal(ks[3], (64,), jnp.float32)
    p["bn_p_var"] = jax.random.uniform(ks[4], (64,), jnp.float32, 0.5, 1.5)
    p["w2"] = tn(ks[5], (head_channels, 64))
    # self.head: BatchNorm1d(H) -> GELU -> Linear(H, NC, bias)
    p["bn_h_gamma"] = 1.0 + 0.1 * jax.random.normal(ks[6], (head_channels,), jnp.float32)
    p["bn_h_beta"] = 0.1 * jax.random.normal(ks[7], (head_channels,), jnp.float32)
    p["bn_h_mean"] = 0.1 * jax.random.normal(ks[8], (head_channels,), jnp.float32)
    p["bn_h_var"] = jax.random.uniform(ks[9], (head_channels,), jnp.float32, 0.5, 1.5)
    p["w3"] = tn(ks[10], (num_classes, head_channels))
    p["b3"] = jnp.zeros((num_classes,), jnp.float32)   # nn.init.constant_(bias, 0)
    return p


def segpart_head_reference(f, shape_labels, params):
    """Pure-JAX reference of the PyTorch SegPartHead forward (eval), unfolded BN math."""
    B, N, H = f.shape
    sc = params["w1"].shape[1]
    oh = jax.nn.one_hot(shape_labels, sc, dtype=jnp.float32)              # (B, SC)
    e = oh @ params["w1"].T
    e = (e - params["bn_p_mean"]) / jnp.sqrt(params["bn_p_var"] + _BN_EPS) \
        * params["bn_p_gamma"] + params["bn_p_beta"]
    e = e @ params["w2"].T                                                # (B, H)
    x = f.reshape(B * N, H) + jnp.repeat(e, N, axis=0)                    # repeat 'b c -> (b n) c'
    x = (x - params["bn_h_mean"]) / jnp.sqrt(params["bn_h_var"] + _BN_EPS) \
        * params["bn_h_gamma"] + params["bn_h_beta"]
    x = _gelu(x)
    return x @ params["w3"].T + params["b3"]


if __name__ == "__main__":
    B, N = 2, 512          # batch, points per batch (backbone per-point output)
    H = 256                # backbone.head_channels
    SC = 16                # shape_classes
    NC = 50                # num_classes

    key = jax.random.PRNGKey(0)
    kf, ks, kp = jax.random.split(key, 3)
    # synthetic backbone output features (backbone itself not translated — see TODO above)
    f_backbone = jax.random.normal(kf, (B, N, H), jnp.float32)
    shape_labels = jax.random.randint(ks, (B,), 0, SC, dtype=jnp.int32)
    params = init_params(kp, SC, H, NC)

    logits = segpart_head(f_backbone, shape_labels, params, num_classes=NC, tile_n=256)
    logits = jax.block_until_ready(logits)

    ref = segpart_head_reference(f_backbone, shape_labels, params)
    assert logits.shape == (B * N, NC), logits.shape
    assert jnp.allclose(logits, ref, atol=1e-4, rtol=1e-4), "Pallas result mismatch vs reference"
    print("KERNEL_OK")
</pallas_src>

<mosaic_0001>
module attributes {stable_mosaic.version = 11 : i64} {
  func.func @_segpart_head_kernel(%arg0: i32, %arg1: i32, %arg2: memref<2xi32, #tpu.memory_space<smem>>, %arg3: memref<1x256x256xf32, #tpu.memory_space<vmem>>, %arg4: memref<1x256xf32, #tpu.memory_space<vmem>>, %arg5: memref<16x256xf32, #tpu.memory_space<vmem>>, %arg6: memref<1x256xf32, #tpu.memory_space<vmem>>, %arg7: memref<256x128xf32, #tpu.memory_space<vmem>>, %arg8: memref<1x128xf32, #tpu.memory_space<vmem>>, %arg9: memref<1x256x128xf32, #tpu.memory_space<vmem>>) attributes {dimension_semantics = [#tpu.dimension_semantics<parallel>, #tpu.dimension_semantics<parallel>], iteration_bounds = array<i64: 2, 2>, scalar_prefetch = 1 : i64, scratch_operands = 0 : i64, tpu.core_type = #tpu.core_type<tc>, window_params = [{transform_indices = @transform_0, window_bounds = array<i64: 1, 256, 256>}, {pipeline_mode = #tpu.pipeline_mode<synchronous>, transform_indices = @transform_1, window_bounds = array<i64: 1, 256>}, {pipeline_mode = #tpu.pipeline_mode<synchronous>, transform_indices = @transform_2, window_bounds = array<i64: 16, 256>}, {pipeline_mode = #tpu.pipeline_mode<synchronous>, transform_indices = @transform_3, window_bounds = array<i64: 1, 256>}, {pipeline_mode = #tpu.pipeline_mode<synchronous>, transform_indices = @transform_4, window_bounds = array<i64: 256, 128>}, {pipeline_mode = #tpu.pipeline_mode<synchronous>, transform_indices = @transform_5, window_bounds = array<i64: 1, 128>}, {transform_indices = @transform_6, window_bounds = array<i64: 1, 256, 128>}]} {
    %0 = arith.index_cast %arg0 : i32 to index
    %1 = memref.load %arg2[%0] : memref<2xi32, #tpu.memory_space<smem>>
    %2 = arith.index_cast %1 : i32 to index
    %c0 = arith.constant 0 : index
    %3 = vector.load %arg5[%2, %c0] : memref<16x256xf32, #tpu.memory_space<vmem>>, vector<1x256xf32>
    %c0_0 = arith.constant 0 : index
    %c0_1 = arith.constant 0 : index
    %4 = vector.load %arg6[%c0_0, %c0_1] : memref<1x256xf32, #tpu.memory_space<vmem>>, vector<1x256xf32>
    %5 = arith.addf %3, %4 : vector<1x256xf32>
    %c0_2 = arith.constant 0 : index
    %c0_3 = arith.constant 0 : index
    %c0_4 = arith.constant 0 : index
    %6 = vector.load %arg3[%c0_2, %c0_3, %c0_4] : memref<1x256x256xf32, #tpu.memory_space<vmem>>, vector<1x256x256xf32>
    %7 = vector.shape_cast %6 : vector<1x256x256xf32> to vector<256x256xf32>
    %c0_5 = arith.constant 0 : index
    %c0_6 = arith.constant 0 : index
    %8 = vector.load %arg4[%c0_5, %c0_6] : memref<1x256xf32, #tpu.memory_space<vmem>>, vector<1x256xf32>
    %9 = vector.broadcast %8 : vector<1x256xf32> to vector<256x256xf32>
    %10 = arith.mulf %7, %9 : vector<256x256xf32>
    %11 = vector.broadcast %5 : vector<1x256xf32> to vector<256x256xf32>
    %12 = arith.addf %10, %11 : vector<256x256xf32>
    %cst = arith.constant 5.000000e-01 : f32
    %13 = vector.broadcast %cst : f32 to vector<256x256xf32>
    %14 = arith.mulf %13, %12 : vector<256x256xf32>
    %cst_7 = arith.constant 0.707106769 : f32
    %15 = vector.broadcast %cst_7 : f32 to vector<256x256xf32>
    %16 = arith.mulf %12, %15 : vector<256x256xf32>
    %17 = math.erf %16 : vector<256x256xf32>
    %cst_8 = arith.constant 1.000000e+00 : f32
    %18 = vector.broadcast %cst_8 : f32 to vector<256x256xf32>
    %19 = arith.addf %18, %17 : vector<256x256xf32>
    %20 = arith.mulf %14, %19 : vector<256x256xf32>
    %c0_9 = arith.constant 0 : index
    %c0_10 = arith.constant 0 : index
    %21 = vector.load %arg7[%c0_9, %c0_10] : memref<256x128xf32, #tpu.memory_space<vmem>>, vector<256x128xf32>
    %cst_11 = arith.constant dense<0.000000e+00> : vector<256x128xf32>
    %22 = tpu.matmul %20, %21, %cst_11 {dimension_numbers = #tpu.dot_dimension_numbers<[1], [0], [0], [1], [0, 0, 1, 1], [], []>} : vector<256x256xf32>, vector<256x128xf32>, vector<256x128xf32> -> vector<256x128xf32>
    %c0_12 = arith.constant 0 : index
    %c0_13 = arith.constant 0 : index
    %23 = vector.load %arg8[%c0_12, %c0_13] : memref<1x128xf32, #tpu.memory_space<vmem>>, vector<1x128xf32>
    %24 = vector.broadcast %23 : vector<1x128xf32> to vector<256x128xf32>
    %25 = arith.addf %22, %24 : vector<256x128xf32>
    %c0_14 = arith.constant 0 : index
    %c0_15 = arith.constant 0 : index
    %c0_16 = arith.constant 0 : index
    %26 = vector.load %arg9[%c0_14, %c0_15, %c0_16] : memref<1x256x128xf32, #tpu.memory_space<vmem>>, vector<1x256x128xf32>
    %27 = vector.shape_cast %26 : vector<1x256x128xf32> to vector<256x128xf32>
    %28 = vector.shape_cast %25 : vector<256x128xf32> to vector<1x256x128xf32>
    tpu.vector_store %arg9[%c0_14, %c0_15, %c0_16], %28 {strides = array<i32>} : memref<1x256x128xf32, #tpu.memory_space<vmem>>, vector<1x256x128xf32>,
    return
  }
  func.func @transform_0(%arg0: i32, %arg1: i32, %arg2: memref<2xi32, #tpu.memory_space<smem>>) -> (i32, i32, i32) {
    %c0_i32 = arith.constant 0 : i32
    %c0_i32_0 = arith.constant 0 : i32
    return %arg0, %arg1, %c0_i32 : i32, i32, i32
  }
  func.func @transform_1(%arg0: i32, %arg1: i32, %arg2: memref<2xi32, #tpu.memory_space<smem>>) -> (i32, i32) {
    %c0_i32 = arith.constant 0 : i32
    %c0_i32_0 = arith.constant 0 : i32
    %c0_i32_1 = arith.constant 0 : i32
    return %c0_i32, %c0_i32_0 : i32, i32
  }
  func.func @transform_2(%arg0: i32, %arg1: i32, %arg2: memref<2xi32, #tpu.memory_space<smem>>) -> (i32, i32) {
    %c0_i32 = arith.constant 0 : i32
    %c0_i32_0 = arith.constant 0 : i32
    %c0_i32_1 = arith.constant 0 : i32
    return %c0_i32, %c0_i32_0 : i32, i32
  }
  func.func @transform_3(%arg0: i32, %arg1: i32, %arg2: memref<2xi32, #tpu.memory_space<smem>>) -> (i32, i32) {
    %c0_i32 = arith.constant 0 : i32
    %c0_i32_0 = arith.constant 0 : i32
    %c0_i32_1 = arith.constant 0 : i32
    return %c0_i32, %c0_i32_0 : i32, i32
  }
  func.func @transform_4(%arg0: i32, %arg1: i32, %arg2: memref<2xi32, #tpu.memory_space<smem>>) -> (i32, i32) {
    %c0_i32 = arith.constant 0 : i32
    %c0_i32_0 = arith.constant 0 : i32
    %c0_i32_1 = arith.constant 0 : i32
    return %c0_i32, %c0_i32_0 : i32, i32
  }
  func.func @transform_5(%arg0: i32, %arg1: i32, %arg2: memref<2xi32, #tpu.memory_space<smem>>) -> (i32, i32) {
    %c0_i32 = arith.constant 0 : i32
    %c0_i32_0 = arith.constant 0 : i32
    %c0_i32_1 = arith.constant 0 : i32
    return %c0_i32, %c0_i32_0 : i32, i32
  }
  func.func @transform_6(%arg0: i32, %arg1: i32, %arg2: memref<2xi32, #tpu.memory_space<smem>>) -> (i32, i32, i32) {
    %c0_i32 = arith.constant 0 : i32
    %c0_i32_0 = arith.constant 0 : i32
    return %arg0, %arg1, %c0_i32 : i32, i32, i32
  }
}

</mosaic_0001>

<bundles_post_ra>
// kernel: tpu_custom_call.1
= control target key start
LH: loop header
LB: loop body
LE: loop exit
PB: predicated region body
PF: predicated region fallthrough
CT: control target
= control target key end

     0   :  { %s4426_s27 = smov [#allocation3]   ;;  %s7513_s0 = inlined_call_operand.hbm [shape: s32[2], index: 0, kind: input, shape index: {}]   ;;  %s7514_s1 = inlined_call_operand.hbm [shape: f32[2,512,256], index: 1, kind: input, shape index: {}]   ;;  %s7515_s2 = inlined_call_operand.hbm [shape: f32[1,256], index: 2, kind: input, shape index: {}]   ;;  %s7516_s3 = inlined_call_operand.hbm [shape: f32[16,256], index: 3, kind: input, shape index: {}]   ;;  %s7517_s4 = inlined_call_operand.vmem [shape: f32[1,256], index: 4, kind: input, shape index: {}]   ;;  %s7518_s5 = inlined_call_operand.hbm [shape: f32[256,128], index: 5, kind: input, shape index: {}]   ;;  %s7519_s6 = inlined_call_operand.vmem [shape: f32[1,128], index: 6, kind: input, shape index: {}]   ;;  %s7520_s7 = inlined_call_operand.hbm [shape: f32[2,512,128], index: 7, kind: output, shape index: {}]  }
   0x1   :  { %7531 = sst [smem:[#allocation23_spill]] %s7515_s2  ;;  %s13_s26 = sshll.u32 %s7513_s0, 4  ;;  %s14_s26 = int_to_ptr.hbm [resolvable:$true] %s13_s26 }
   0x2   :  { %7532 = sst [smem:[#allocation24_spill]] %s7516_s3 }
   0x3   :  { %7533 = sst [smem:[#allocation25_spill]] %s7518_s5 }
   0x4   :  { %7534 = sst [smem:[#allocation26_spill]] %s7520_s7 }
   0x5   :  { %16 = dma.hbm_to_smem %s14_s26, 16, %s4426_s27, [#allocation2] }
   0x6   :  { %4376 = dma.done.wait [#allocation2], 16 }
   0x7   :  { %4377 = vsyncadd [#allocation2], 4294967280 }
   0x8   :  { %19 = sfence }
   0x9   :  { %20 = vsyncpa [#allocation5], 0 }
   0xa   :  { %22 = vsyncpa [#allocation5 + $0x1], 0 }
   0xb   :  { %23 = vsyncpa [#allocation8], 0 }
   0xc   :  { %24 = vsyncpa [#allocation11], 0 }
   0xd   :  { %25 = vsyncpa [#allocation6], 0 }
   0xe   :  { %27 = vsyncpa [#allocation6 + $0x1], 0  ;;  %s4479_s28 = smov 0   ;;  %s4481_s29 = smov 0  }
   0xf   :  { %s4483_s30 = smov 0   ;;  %s4485_s8 = smov 0  }
  0x10   :  { %s4487_s0 = smov 0   ;;  %s4489_s9 = smov 0  }
  0x11   :  { %s4491_s10 = smov 0   ;;  %s4493_s11 = smov 0  }
  0x12 LB: > { %7535 = sst [smem:[#allocation18_spill]] %s4396_s28  ;;  %s7521_s12 = sadd.s32 4294967295, %s4424_s11   ;;  %s4424_s11 = sphi %s4493_s11, %s33_s11   ;;  %s4420_s10 = sphi %s4491_s10, %s7803_s10   ;;  %s4416_s9 = sphi %s4489_s9, %s7802_s9   ;;  %s4412_s0 = sphi %s4487_s0, %s7801_s0   ;;  %s4408_s8 = sphi %s4485_s8, %s7800_s8   ;;  %s4404_s30 = sphi %s4483_s30, %s7799_s30   ;;  %s4400_s29 = sphi %s4481_s29, %s7798_s29   ;;  %s4396_s28 = sphi %s4479_s28, %s7797_s28  }
  0x13   : > { %s3816_s13 = sadd.s32 4294967294, %s4424_s11   ;;  %p67_p0 = scmp.ne.s32.totalorder %s4400_s29, %s4396_s28 }
  0x14   : > { %p4525_p1 = scmp.eq.s32.totalorder %s7521_s12, 0  ;;  %p204_p2 = scmp.eq.s32.totalorder %s3816_s13, 3 }
  0x15   : > { %p3817_p4 = scmp.ge.s32.totalorder %s4424_s11, 1  ;;  %p211_p6 = scmp.lt.s32.totalorder %s4424_s11, 5 }
  0x16   : > { %p4531_p3 = por %p4525_p1, %p67_p0  ;;  %p4536_p5 = por %p204_p2, %p67_p0 }
  0x17   : > { %s7540_s2 = sld [smem:[#allocation23_spill]]  ;;  %p4544_p7 = pnand %p3817_p4, %p211_p6 }
  0x18   : > { %s7538_s16 = scalar_select %p4536_p5, 1, 0 }
  0x19   : > { %p3955_p8 = pneg %p4544_p7  ;;  %s4427_s21 = smov [#allocation7]  }
  0x1a   : > { %7539 = sst [smem:[#allocation19_spill]] %s7538_s16  ;;  %s225_s22 = sshll.u32 %s4427_s21, 4  ;;  %s226_s22 = int_to_ptr.vmem [resolvable:$true] %s225_s22 }
  0x1b   : > { %s7542_s3 = sld [smem:[#allocation24_spill]]  ;;  %p4555_p9 = pnand %p3955_p8, %p4525_p1 }
  0x1c   : > { %s4428_s27 = smov [#allocation9]   ;;  %s7522_s17 = smov 256  }
  0x1d   : > { %s223_s19 = sshll.u32 %s7540_s2, 4  ;;  %s236_s13 = sshll.u32 %s4428_s27, 4  ;;  %s224_s19 = int_to_ptr.hbm [resolvable:$true] %s223_s19  ;;  %s237_s13 = int_to_ptr.vmem [resolvable:$true] %s236_s13 }
  0x1e   : > { %3958 = dma.hbm_to_vmem [thread:$0]  (!%p4555_p9), %s224_s19, 32, %s226_s22, [#allocation8]  }
  0x1f   : > { %s7523_s18 = smov 16   ;;  %s7544_s5 = sld [smem:[#allocation25_spill]] }
  0x20   : > { %s4431_s19 = smov [#allocation10]   ;;  %s4432_s27 = smov 128  }
  0x21   : > { %s234_s25 = sshll.u32 %s7542_s3, 4  ;;  %s253_s22 = sshll.u32 %s4431_s19, 4  ;;  %s235_s25 = int_to_ptr.hbm [resolvable:$true] %s234_s25  ;;  %s254_s22 = int_to_ptr.vmem [resolvable:$true] %s253_s22 }
  0x22   : > { %3961 = dma.hbm_to_vmem [thread:$0]  (!%p4555_p9), %s235_s25, 512, %s237_s13, [#allocation8], %s7522_s17, %s7522_s17, %s7523_s18  }
  0x23   : > { %s4433_s12 = smov 8   ;;  %s42_s2 = sadd.s32 1, %s4416_s9 }
  0x24   : > { %p43_p10 = scmp.ge.s32.totalorder %s42_s2, 2  ;;  %s45_s25 = sadd.s32 1, %s4420_s10 }
  0x25   : > { %s251_s24 = sshll.u32 %s7544_s5, 4  ;;  %s7545_s13 = sadd.s32 4294967295, %s4424_s11   ;;  %s252_s24 = int_to_ptr.hbm [resolvable:$true] %s251_s24 }
  0x26   : > { %3964 = dma.hbm_to_vmem [thread:$0]  (!%p4555_p9), %s252_s24, 4096, %s254_s22, [#allocation11], %s4432_s27, %s4432_s27, %s4433_s12  }
  0x27   : > { %p198_p11 = scmp.eq.s32.totalorder %s7545_s13, 3  ;;  %p61_p12 = scmp.ne.s32.totalorder %s4404_s30, %s4400_s29 }
  0x28   : > { %s7805_s2 = smov (%p43_p10, %s42_s2), 0  ;;  %s7807_s25 = smov (!%p43_p10, %s45_s25), %s4420_s10 }
  0x29   : > { %7546 = sst [smem:[#allocation20_spill]] %s7805_s2  ;;  %s54_s21 = sadd.s32 1, %s4404_s30 }
  0x2a   : > { %p62_p13 = scmp.eq.s32.totalorder %s4424_s11, 0  ;;  %p47_p0 = scmp.ge.s32.totalorder %s7807_s25, 2 }
  0x2b   : > { %p4582_p2 = por %p198_p11, %p61_p12  ;;  %s50_s26 = ssub.s32 %s4416_s9, %s7805_s2 }
  0x2c   : > { %p4588_p4 = por %p62_p13, %p61_p12  ;;  %s7809_s25 = smov (%p47_p0, %s7807_s25), 0 }
  0x2d   : > { %s7547_s12 = scalar_select %p4582_p2, 1, 0 }
  0x2e   : > { %7550 = sst [smem:[#allocation22_spill]] %s7809_s25  ;;  %p3976_p6 = scmp.lt.s32.totalorder %s4424_s11, 4 }
  0x2f   : > { %7548 = sst [smem:[#allocation21_spill]] %s7547_s12  ;;  %s270_s24 = sand.u32 1, %s4404_s30  }
  0x30   : > { %s49_s19 = ssub.s32 %s4420_s10, %s7809_s25  ;;  %s3905_s22 = sshll.u32 %s4416_s9, 6 }
  0x31   : > { %s51_s27 = sor.u32 %s50_s26, %s49_s19  ;;  %s3822_s13 = sshll.u32 %s270_s24, 9 }
  0x32   : > { %p52_p8 = scmp.eq.s32.totalorder %s51_s27, 0  ;;  %s3825_s17 = sshll.u32 %s4420_s10, 7 }
  0x33   : > { %s274_s18 = scalar_lea.vmem [#allocation4], %s3822_s13  ;;  %s280_s2 = sadd.s32 %s3905_s22, %s3825_s17 }
  0x34   : > { %s285_s3 = sshll.u32 %s274_s18, 4  ;;  %s3826_s16 = sshll.u32 %s280_s2, 3  ;;  %s286_s3 = int_to_ptr.vmem [resolvable:$true] %s285_s3 }
  0x35   : > { %s4601_s5 = scalar_select %p52_p8, %s4404_s30, %s54_s21  }
  0x36   : > { %p3966_p9 = pnand %p3976_p6, %p4588_p4  ;;  %s282_s12 = scalar_lea.hbm %s7514_s1, %s3826_s16 }
  0x37   : > { %s283_s25 = sshll.u32 %s282_s12, 4  ;;  %s271_s26 = scalar_lea.sflag [#allocation5], %s270_s24  ;;  %s284_s25 = int_to_ptr.hbm [resolvable:$true] %s283_s25 }
  0x38   : > { %s7551_s19 = smov 16   ;;  %s7552_s27 = smov 256  }
  0x39   : > { %3968 = dma.hbm_to_vmem [thread:$0]  (!%p3966_p9), %s284_s25, 8192, %s286_s3, %s271_s26, %s7552_s27, %s7552_s27, %s7551_s19  }
  0x3a   : > { %297 = sbr.rel (%p4544_p7) target bundleno = 944 (0x3b0), region = 44  ;;  %s4616_s2 = sand.u32 (!%p4544_p7), 1, %s4400_s29  }
  0x3b   : > { %s3828_s17 = sshll.u32 (!%p4544_p7), %s4616_s2, 9  ;;  %s300_s7 = scalar_lea.sflag (!%p4544_p7), [#allocation5], %s4616_s2 }
  0x3c   : > { %s4620_s28 = scalar_lea.vmem (!%p4544_p7), [#allocation4], %s3828_s17 }
  0x3f   : > { %4379 = dma.done.wait (%p4531_p3), %s300_s7, 8192  }
  0x40   : > { %4381 = vsyncadd (%p4531_p3), %s300_s7, 4294959104 }
  0x41   : > { %4383 = dma.done.wait (%p4525_p1), [#allocation8], 544  }
  0x42   : > { %4385 = vsyncadd (%p4525_p1), [#allocation8], 4294966752 }
  0x43   : > { %4387 = dma.done.wait (%p4525_p1), [#allocation11], 4096  }
  0x44   : > { %4389 = vsyncadd (%p4525_p1), [#allocation11], 4294963200  ;;  %s350_s3 = sld [smem:[#allocation3 + %s4412_s0]]  ;;  %v3396_v0 = vld [vmem:[#allocation10 + $0x78] sm:$0xff]  ;;  %v3395_v1 = vld [vmem:[#allocation10 + $0x70] sm:$0xff]  ;;  %s3832_s24 = sshll.u32 %s4616_s2, 8 }
  0x45   : > { %v3412_v2 = vld [vmem:[#allocation10 + $0xf8] sm:$0xff]  ;;  %3907 = vmatpush.msra.mxu2 %v3396_v0  ;;  %v3411_v3 = vld [vmem:[#allocation10 + $0xf0] sm:$0xff]  ;;  %v3394_v4 = vld [vmem:[#allocation10 + $0x68] sm:$0xff]  ;;  %3417 = vmatpush.msra.mxu0 %v3396_v0  ;;  %s7400_s22 = scalar_lea.vmem [#allocation12], %s3832_s24  ;;  %s3900_s13 = sshll.u32 %s4408_s8, 5 }
  0x46   : > { %3923 = vmatpush.msra.mxu3 %v3412_v2  ;;  %v3410_v5 = vld [vmem:[#allocation10 + $0xe8] sm:$0xff]  ;;  %3530 = vmatpush.msra.mxu1 %v3412_v2  ;;  %v3393_v6 = vld [vmem:[#allocation10 + $0x60] sm:$0xff]  ;;  %v3392_v8 = vld [vmem:[#allocation10 + $0x58] sm:$0xff]  ;;  %s3901_s26 = sshll.u32 %s4412_s0, 6 }
  0x47   : > { %3908 = vmatpush.msra.mxu2 %v3395_v1  ;;  %3418 = vmatpush.msra.mxu0 %v3395_v1  ;;  %v3409_v7 = vld [vmem:[#allocation10 + $0xe0] sm:$0xff]  ;;  %v3408_v9 = vld [vmem:[#allocation10 + $0xd8] sm:$0xff]  ;;  %v3391_v10 = vld [vmem:[#allocation10 + $0x50] sm:$0xff]  ;;  %s3687_s19 = sadd.s32 %s3901_s26, %s3900_s13 }
  0x48   : > { %3924 = vmatpush.msra.mxu3 %v3411_v3  ;;  %3531 = vmatpush.msra.mxu1 %v3411_v3  ;;  %v3407_v11 = vld [vmem:[#allocation10 + $0xd0] sm:$0xff]  ;;  %v3390_v12 = vld [vmem:[#allocation10 + $0x48] sm:$0xff]  ;;  %v3389_v14 = vld [vmem:[#allocation10 + $0x40] sm:$0xff]  ;;  %s3902_s27 = sshll.u32 %s3687_s19, 3 }
  0x49   : > { %3909 = vmatpush.msra.mxu2 %v3394_v4  ;;  %3419 = vmatpush.msra.mxu0 %v3394_v4  ;;  %v3406_v13 = vld [vmem:[#allocation10 + $0xc8] sm:$0xff]  ;;  %v3405_v15 = vld [vmem:[#allocation10 + $0xc0] sm:$0xff]  ;;  %v360_v17 = vld [vmem:[%s7517_s4] sm:$0x3] }
  0x4a   : > { %s351_s16 = sshra.s32 %s350_s3, 3  ;;  %s354_s15 = sand.u32 7, %s350_s3  ;;  %3925 = vmatpush.msra.mxu3 %v3410_v5  ;;  %3532 = vmatpush.msra.mxu1 %v3410_v5  ;;  %v394_v19 = vld [vmem:[%s4620_s28 + $0x100] sm:$0xff]  ;;  %v395_v21 = vld [vmem:[%s4620_s28 + $0x108] sm:$0xff]  ;;  %v396_v25 = vld [vmem:[%s4620_s28 + $0x110] sm:$0xff] }
  0x4b   : > { %s3906_s20 = sshll.u32 %s351_s16, 4  ;;  %3910 = vmatpush.msra.mxu2 %v3393_v6  ;;  %3420 = vmatpush.msra.mxu0 %v3393_v6  ;;  %v426_v20 = vld [vmem:[#allocation7] sm:$0x3]  ;;  %v363_v26 = vld [vmem:[%s4620_s28 + $0x8] sm:$0xff]  ;;  %v3387_v36 = vld [vmem:[#allocation10 + $0x30] sm:$0xff]  ;;  %s7792_s3 = sld [smem:[#allocation26_spill]] }
  0x4c   : > { %s357_s14 = sadd.s32 %s3906_s20, %s354_s15  ;;  %3926 = vmatpush.msra.mxu3 %v3409_v7  ;;  %3533 = vmatpush.msra.mxu1 %v3409_v7  ;;  %v4640_v22 = vperm.slane %v426_v20, 0  ;;  %v4642_v23 = vperm.slane %v426_v20, 1  ;;  %v362_v24 = vld [vmem:[%s4620_s28] sm:$0xff]  ;;  %v3403_v37 = vld [vmem:[#allocation10 + $0xb0] sm:$0xff]  ;;  %v3386_v42 = vld [vmem:[#allocation10 + $0x28] sm:$0xff]  ;;  %s3690_s15 = sshll.u32 %s7400_s22, 4  ;;  %s3691_s15 = int_to_ptr.vmem [resolvable:$true] %s3690_s15 }
  0x4d   : > { %3911 = vmatpush.msra.mxu2 %v3392_v8  ;;  %3421 = vmatpush.msra.mxu0 %v3392_v8  ;;  %s358_s18 = scalar_lea.vmem [#allocation9], %s357_s14  ;;  %v3388_v29 = vld [vmem:[#allocation10 + $0x38] sm:$0xff]  ;;  %v3402_v43 = vld [vmem:[#allocation10 + $0xa8] sm:$0xff]  ;;  %v3385_v49 = vld [vmem:[#allocation10 + $0x20] sm:$0xff]  ;;  %s3676_s14 = scalar_lea.sflag [#allocation6], %s4616_s2 }
  0x4e   : > { %3927 = vmatpush.msra.mxu3 %v3408_v9  ;;  %3534 = vmatpush.msra.mxu1 %v3408_v9  ;;  %v359_v16 = vld [vmem:[%s358_s18] ss:$8 sm:$0x3]  ;;  %v464_v31 = vmul.f32 %v4640_v22, %v394_v19  ;;  %v465_v32 = vmul.f32 %v4642_v23, %v395_v21  ;;  %v432_v33 = vmul.f32 %v4640_v22, %v362_v24  ;;  %v3383_v56 = vld [vmem:[#allocation10 + $0x10] sm:$0xff]  ;;  %v3382_v1 = vld [vmem:[#allocation10 + $0x8] sm:$0xff] }
  0x4f   : > { %3912 = vmatpush.msra.mxu2 %v3391_v10  ;;  %v361_v18 = vadd.f32 %v360_v17, %v359_v16  ;;  %3422 = vmatpush.msra.mxu0 %v3391_v10  ;;  %v3404_v30 = vld [vmem:[#allocation10 + $0xb8] sm:$0xff]  ;;  %v466_v34 = vmul.f32 %v4640_v22, %v396_v25  ;;  %v433_v35 = vmul.f32 %v4642_v23, %v363_v26  ;;  %v3401_v50 = vld [vmem:[#allocation10 + $0xa0] sm:$0xff]  ;;  %v3399_v60 = vld [vmem:[#allocation10 + $0x90] sm:$0xff] }
  0x50   : > { %3928 = vmatpush.msra.mxu3 %v3407_v11  ;;  %3535 = vmatpush.msra.mxu1 %v3407_v11  ;;  %v3384_v55 = vld [vmem:[#allocation10 + $0x18] sm:$0xff]  ;;  %v3398_v2 = vld [vmem:[#allocation10 + $0x88] sm:$0xff]  ;;  %v3381_v16 = vld [vmem:[#allocation10] sm:$0xff] }
  0x51   : > { %3913 = vmatpush.msra.mxu2 %v3390_v12  ;;  %v4647_v27 = vperm.slane %v361_v18, 0  ;;  %v4649_v28 = vperm.slane %v361_v18, 1  ;;  %3423 = vmatpush.msra.mxu0 %v3390_v12  ;;  %v3400_v57 = vld [vmem:[#allocation10 + $0x98] sm:$0xff]  ;;  %s3689_s16 = scalar_lea.hbm %s7792_s3, %s3902_s27  ;;  %s4336_s21 = scalar_lea.hbm %s7792_s3, 1024 }
  0x52   : > { %3929 = vmatpush.msra.mxu3 %v3406_v13  ;;  %3536 = vmatpush.msra.mxu1 %v3406_v13  ;;  %v397_v0 = vld [vmem:[%s4620_s28 + $0x118] sm:$0xff]  ;;  %s3692_s20 = sshll.u32 %s3689_s16, 4  ;;  %s3693_s20 = int_to_ptr.hbm [resolvable:$true] %s3692_s20 }
  0x53   : > { %3914 = vmatpush.msra.mxu2 %v3389_v14  ;;  %3424 = vmatpush.msra.mxu0 %v3389_v14  ;;  %v4657_v38 = vadd.f32 %v4647_v27, %v464_v31  ;;  %v4660_v39 = vadd.f32 %v4649_v28, %v465_v32  ;;  %v4663_v40 = vadd.f32 %v4647_v27, %v432_v33  ;;  %s4330_s8 = sshra.s32 %s3693_s20, 4  ;;  %s4331_s8 = int_to_ptr.hbm [resolvable:$true] %s4330_s8 }
  0x54   : > { %3930 = vmatpush.msra.mxu3 %v3405_v15  ;;  %3537 = vmatpush.msra.mxu1 %v3405_v15  ;;  %v4666_v41 = vadd.f32 %v4647_v27, %v466_v34  ;;  %v4681_v48 = vadd.f32 %v4649_v28, %v433_v35  ;;  %v467_v15 = vmul.f32 %v4642_v23, %v397_v0  ;;  %s4332_s0 = scalar_lea.hbm %s4331_s8, 256  ;;  %p4337_p10 = scmp.lt.s32.totalorder %s4331_s8, %s7792_s3 }
  0x55   : > { %3915 = vmatpush.msra.mxu2 %v3388_v29  ;;  %3425 = vmatpush.msra.mxu0 %v3388_v29  ;;  %v4669_v44 = vmul.f32 0.70710677, %v4657_v38  ;;  %v4672_v45 = vmul.f32 0.70710677, %v4660_v39  ;;  %v4675_v46 = vmul.f32 0.70710677, %v4663_v40  ;;  %p4333_p1 = scmp.ne.s32.totalorder %s4331_s8, %s4332_s0  ;;  %p4338_p11 = scmp.lt.s32.totalorder %s4336_s21, %s4332_s0 }
  0x56   : > { %3931 = vmatpush.msra.mxu3 %v3404_v30  ;;  %3538 = vmatpush.msra.mxu1 %v3404_v30  ;;  %v4678_v47 = vmul.f32 0.70710677, %v4666_v41  ;;  %v4700_v63 = vmul.f32 0.70710677, %v4681_v48  ;;  %v4719_v35 = vadd.f32 %v4649_v28, %v467_v15 }
  0x57   : > { %3916 = vmatpush.msra.mxu2 %v3387_v36  ;;  %3426 = vmatpush.msra.mxu0 %v3387_v36  ;;  %v1973_v51 = vmul.f32 %v4669_v44, %v4669_v44  ;;  %v2013_v52 = vmul.f32 %v4672_v45, %v4672_v45  ;;  %v693_v53 = vmul.f32 %v4675_v46, %v4675_v46  ;;  %p4334_p3 = pnand %p4333_p1, %p4582_p2  ;;  %p4339_p12 = por %p4338_p11, %p4337_p10 }
  0x58   : > { %3932 = vmatpush.msra.mxu3 %v3403_v37  ;;  %3539 = vmatpush.msra.mxu1 %v3403_v37  ;;  %v2053_v54 = vmul.f32 %v4678_v47, %v4678_v47 }
  0x59   : > { %3917 = vmatpush.msra.mxu2 %v3386_v42  ;;  %3427 = vmatpush.msra.mxu0 %v3386_v42  ;;  %v4691_v58 = vmin.f32 %v1973_v51, 16.0  ;;  %v4693_v59 = vmin.f32 %v2013_v52, 16.0  ;;  %v4695_v61 = vmin.f32 %v693_v53, 16.0  ;;  %p4335_p7 = pneg %p4334_p3 }
  0x5a   : > { %3933 = vmatpush.msra.mxu3 %v3402_v43  ;;  %3540 = vmatpush.msra.mxu1 %v3402_v43  ;;  %v4697_v62 = vmin.f32 %v2053_v54, 16.0 }
  0x5b   : > { %3918 = vmatpush.msra.mxu2 %v3385_v49  ;;  %3428 = vmatpush.msra.mxu0 %v3385_v49  ;;  %v1975_v3 = vmul.f32 2.1237322e-06, %v4691_v58  ;;  %v1986_v4 = vmul.f32 3.8918573e-05, %v4691_v58  ;;  %v2015_v5 = vmul.f32 2.1237322e-06, %v4693_v59  ;;  %p4340_p13 = pnand %p4339_p12, %p4335_p7 }
  0x5c   : > { %3934 = vmatpush.msra.mxu3 %v3401_v50  ;;  %3541 = vmatpush.msra.mxu1 %v3401_v50  ;;  %v2026_v6 = vmul.f32 3.8918573e-05, %v4693_v59  ;;  %v695_v7 = vmul.f32 2.1237322e-06, %v4695_v61  ;;  %v706_v8 = vmul.f32 3.8918573e-05, %v4695_v61 }
  0x5d   : > { %3919 = vmatpush.msra.mxu2 %v3384_v55  ;;  %3429 = vmatpush.msra.mxu0 %v3384_v55  ;;  %v1976_v9 = vadd.f32 0.00028619796, %v1975_v3  ;;  %v1987_v10 = vadd.f32 0.001143296, %v1986_v4  ;;  %v2016_v11 = vadd.f32 0.00028619796, %v2015_v5 }
  0x5e   : > { %3935 = vmatpush.msra.mxu3 %v3400_v57  ;;  %3542 = vmatpush.msra.mxu1 %v3400_v57  ;;  %v2027_v12 = vadd.f32 0.001143296, %v2026_v6  ;;  %v696_v13 = vadd.f32 0.00028619796, %v695_v7  ;;  %v707_v14 = vadd.f32 0.001143296, %v706_v8 }
  0x5f   : > { %3920 = vmatpush.msra.mxu2 %v3383_v56  ;;  %v1977_v17 = vmul.f32 %v1976_v9, %v4691_v58  ;;  %v1988_v18 = vmul.f32 %v1987_v10, %v4691_v58  ;;  %3430 = vmatpush.msra.mxu0 %v3383_v56  ;;  %v2017_v19 = vmul.f32 %v2016_v11, %v4693_v59  ;;  %v2055_v20 = vmul.f32 2.1237322e-06, %v4697_v62  ;;  %v3397_v6 = vld [vmem:[#allocation10 + $0x80] sm:$0xff] }
  0x60   : > { %3936 = vmatpush.msra.mxu3 %v3399_v60  ;;  %3543 = vmatpush.msra.mxu1 %v3399_v60  ;;  %v2028_v21 = vmul.f32 %v2027_v12, %v4693_v59  ;;  %v697_v24 = vmul.f32 %v696_v13, %v4695_v61  ;;  %v708_v25 = vmul.f32 %v707_v14, %v4695_v61  ;;  %v2066_v26 = vmul.f32 3.8918573e-05, %v4697_v62 }
  0x61   : > { %3921 = vmatpush.msra.mxu2 %v3382_v1  ;;  %v1978_v29 = vadd.f32 0.0036580483, %v1977_v17  ;;  %v1989_v30 = vadd.f32 0.014752088, %v1988_v18  ;;  %v2018_v31 = vadd.f32 0.0036580483, %v2017_v19  ;;  %3431 = vmatpush.msra.mxu0 %v3382_v1  ;;  %v733_v10 = vmul.f32 %v4700_v63, %v4700_v63 }
  0x62   : > { %3937 = vmatpush.msra.mxu3 %v3398_v2  ;;  %3544 = vmatpush.msra.mxu1 %v3398_v2  ;;  %v2029_v32 = vadd.f32 0.014752088, %v2028_v21  ;;  %v698_v33 = vadd.f32 0.0036580483, %v697_v24  ;;  %v709_v34 = vadd.f32 0.014752088, %v708_v25 }
  0x63   : > { %3922 = vmatpush.msra.mxu2 %v3381_v16  ;;  %v1979_v36 = vmul.f32 %v1978_v29, %v4691_v58  ;;  %v1990_v37 = vmul.f32 %v1989_v30, %v4691_v58  ;;  %v2019_v42 = vmul.f32 %v2018_v31, %v4693_v59  ;;  %3432 = vmatpush.msra.mxu0 %v3381_v16  ;;  %v2056_v43 = vadd.f32 0.00028619796, %v2055_v20  ;;  %v364_v31 = vld [vmem:[%s4620_s28 + $0x10] sm:$0xff] }
  0x64   : > { %v2030_v49 = vmul.f32 %v2029_v32, %v4693_v59  ;;  %v699_v50 = vmul.f32 %v698_v33, %v4695_v61  ;;  %v710_v51 = vmul.f32 %v709_v34, %v4695_v61  ;;  %v2067_v52 = vadd.f32 0.001143296, %v2066_v26  ;;  %3938 = vmatpush.msra.mxu3 %v3397_v6  ;;  %3545 = vmatpush.msra.mxu1 %v3397_v6 }
  0x65   : > { %v1980_v53 = vadd.f32 0.05243302, %v1979_v36  ;;  %v1991_v54 = vadd.f32 0.112945676, %v1990_v37  ;;  %v2020_v55 = vadd.f32 0.05243302, %v2019_v42  ;;  %v2057_v56 = vmul.f32 %v2056_v43, %v4697_v62 }
  0x66   : > { %v2031_v57 = vadd.f32 0.112945676, %v2030_v49  ;;  %v700_v60 = vadd.f32 0.05243302, %v699_v50  ;;  %v2068_v0 = vmul.f32 %v2067_v52, %v4697_v62  ;;  %v4730_v1 = vmul.f32 0.70710677, %v4719_v35 }
  0x67   : > { %v1981_v2 = vmul.f32 %v1980_v53, %v4691_v58  ;;  %v1992_v3 = vmul.f32 %v1991_v54, %v4691_v58  ;;  %v2021_v4 = vmul.f32 %v2020_v55, %v4693_v59  ;;  %v711_v5 = vadd.f32 0.112945676, %v710_v51 }
  0x68   : > { %v2032_v7 = vmul.f32 %v2031_v57, %v4693_v59  ;;  %v701_v8 = vmul.f32 %v700_v60, %v4695_v61  ;;  %v2058_v9 = vadd.f32 0.0036580483, %v2057_v56  ;;  %v2069_v18 = vadd.f32 0.014752088, %v2068_v0 }
  0x69   : > { %v1982_v11 = vadd.f32 0.18741608, %v1981_v2  ;;  %v1993_v12 = vadd.f32 0.4994258, %v1992_v3  ;;  %v2022_v13 = vadd.f32 0.18741608, %v2021_v4  ;;  %v712_v14 = vmul.f32 %v711_v5, %v4695_v61 }
  0x6a   : > { %v2033_v15 = vadd.f32 0.4994258, %v2032_v7  ;;  %v702_v16 = vadd.f32 0.18741608, %v701_v8  ;;  %v2059_v17 = vmul.f32 %v2058_v9, %v4697_v62  ;;  %v4745_v25 = vmul.f32 0.5, %v4657_v38 }
  0x6b   : > { %v1983_v19 = vmul.f32 %v1982_v11, %v4691_v58  ;;  %v1994_v20 = vmul.f32 %v1993_v12, %v4691_v58  ;;  %v2023_v21 = vmul.f32 %v2022_v13, %v4693_v59  ;;  %v713_v24 = vadd.f32 0.4994258, %v712_v14 }
  0x6c   : > { %v2034_v26 = vmul.f32 %v2033_v15, %v4693_v59  ;;  %v703_v29 = vmul.f32 %v702_v16, %v4695_v61  ;;  %v2060_v30 = vadd.f32 0.05243302, %v2059_v17  ;;  %v4750_v34 = vmin.f32 %v733_v10, 16.0 }
  0x6d   : > { %v1984_v32 = vadd.f32 1.1283791, %v1983_v19  ;;  %v1995_v33 = vadd.f32 1.0, %v1994_v20  ;;  %v2093_v36 = vmul.f32 %v4730_v1, %v4730_v1  ;;  %v714_v37 = vmul.f32 %v713_v24, %v4695_v61 }
  0x6e   : > { %v4754_v58 = vadd.f32 1.0, %v2034_v26  ;;  %v2061_v38 = vmul.f32 %v2060_v30, %v4697_v62  ;;  %v2070_v42 = vmul.f32 %v2069_v18, %v4697_v62  ;;  %v2024_v59 = vadd.f32 1.1283791, %v2023_v21 }
  0x6f   : > { %4056 = vrcp.f32 %v1995_v33  ;;  %v704_v43 = vadd.f32 1.1283791, %v703_v29  ;;  %v434_v49 = vmul.f32 %v4640_v22, %v364_v31  ;;  %v2005_v50 = vand.u32 2147483647, %v1995_v33 }
  0x70   : > { %v2007_v51 = vand.u32 2147483648, %v1995_v33  ;;  %v4761_v52 = vmul.f32 0.5, %v4660_v39  ;;  %4058 = vrcp.f32 %v4754_v58  ;;  %v4765_v53 = vmul.f32 %v1984_v32, %v4669_v44 }
  0x71   : > { %vm2001_vm0 = vweird.f32 %v1995_v33  ;;  %v2045_v61 = vand.u32 2147483647, %v4754_v58  ;;  %v4769_v54 = vmul.f32 0.5, %v4663_v40  ;;  %v2047_v55 = vand.u32 2147483648, %v4754_v58 }
  0x72   : > { %v4772_v56 = vadd.f32 1.0, %v714_v37  ;;  %v2062_v57 = vadd.f32 0.18741608, %v2061_v38  ;;  %v2071_v60 = vadd.f32 0.112945676, %v2070_v42  ;;  %v4775_v39 = vmul.f32 %v2024_v59, %v4672_v45 }
  0x73   : > { %vm2041_vm1 = vweird.f32 %v4754_v58  ;;  %v4779_v44 = vmul.f32 %v704_v43, %v4675_v46  ;;  %v735_v0 = vmul.f32 2.1237322e-06, %v4750_v34  ;;  %vm4782_vm2 = vcmp.eq.f32.partialorder %v2005_v50, 8.507059e+37 }
  0x74   : > { %v2008_v40 = vor.u32 1.1754944e-38, %v2007_v51  ;;  %4060 = vrcp.f32 %v4772_v56  ;;  %v725_v3 = vand.u32 2147483647, %v4772_v56  ;;  %v727_v4 = vand.u32 2147483648, %v4772_v56 }
  0x75   : > { %v4057_v45 = vpop.eup %4056  ;;  %v2063_v5 = vmul.f32 %v2062_v57, %v4697_v62  ;;  %v2072_v6 = vmul.f32 %v2071_v60, %v4697_v62  ;;  %v736_v46 = vadd.f32 0.00028619796, %v735_v0  ;;  %v746_v7 = vmul.f32 3.8918573e-05, %v4750_v34 }
  0x76   : > { %v4059_v8 = vpop.eup %4058  ;;  %v1997_v9 = vmul.f32 %v4057_v45, %v1995_v33  ;;  %vm4792_vm3 = vcmp.eq.f32.partialorder %v2045_v61, 8.507059e+37  ;;  %v2048_v11 = vor.u32 1.1754944e-38, %v2047_v55  ;;  %vm721_vm4 = vweird.f32 %v4772_v56 }
  0x77   : > { %vm2002_vm5 = vweird.f32 %v4057_v45  ;;  %v2037_v12 = vmul.f32 %v4059_v8, %v4754_v58  ;;  %v2064_v13 = vadd.f32 1.1283791, %v2063_v5  ;;  %v2073_v14 = vadd.f32 0.4994258, %v2072_v6 }
  0x78   : > { %v1998_v15 = vsub.f32 1.0, %v1997_v9  ;;  %v737_v16 = vmul.f32 %v736_v46, %v4750_v34  ;;  %v747_v17 = vadd.f32 0.001143296, %v746_v7  ;;  %v4799_v18 = vmin.f32 %v2093_v36, 16.0  ;;  %vm4810_vm8 = vmor %vm2001_vm0, %vm2002_vm5 }
  0x79   : > { %v2038_v19 = vsub.f32 1.0, %v2037_v12  ;;  %vm2042_vm6 = vweird.f32 %v4059_v8  ;;  %vm4801_vm7 = vcmp.eq.f32.partialorder %v725_v3, 8.507059e+37  ;;  %v728_v21 = vor.u32 1.1754944e-38, %v727_v4 }
  0x7a   : > { %v2074_v24 = vmul.f32 %v2073_v14, %v4697_v62  ;;  %v4061_v26 = vpop.eup %4060  ;;  %v1999_v29 = vmul.f32 %v4057_v45, %v1998_v15  ;;  %v738_v30 = vadd.f32 0.0036580483, %v737_v16  ;;  %v748_v31 = vmul.f32 %v747_v17, %v4750_v34  ;;  %vm4821_vm9 = vmor %vm2041_vm1, %vm2042_vm6 }
  0x7b   : > { %v2095_v32 = vmul.f32 2.1237322e-06, %v4799_v18  ;;  %v2039_v37 = vmul.f32 %v4059_v8, %v2038_v19  ;;  %v717_v38 = vmul.f32 %v4061_v26, %v4772_v56  ;;  %v4816_v42 = vmul.f32 %v2064_v13, %v4678_v47 }
  0x7c   : > { %v2075_v62 = vadd.f32 1.0, %v2074_v24  ;;  %v2000_v59 = vadd.f32 %v4057_v45, %v1999_v29  ;;  %v739_v33 = vmul.f32 %v738_v30, %v4750_v34  ;;  %v749_v50 = vadd.f32 0.014752088, %v748_v31 }
  0x7d   : > { %v4827_v51 = vadd.f32 %v4647_v27, %v434_v49  ;;  %v2040_v61 = vadd.f32 %v4059_v8, %v2039_v37  ;;  %v718_v55 = vsub.f32 1.0, %v717_v38  ;;  %vm722_vm10 = vweird.f32 %v4061_v26  ;;  %v398_v37 = vld [vmem:[%s4620_s28 + $0x120] sm:$0xff] }
  0x7e   : > { %4062 = vrcp.f32 %v2075_v62  ;;  %v2004_v47 = vsel %vm4810_vm8, %v4057_v45, %v2000_v59  ;;  %v2085_v57 = vand.u32 2147483647, %v2075_v62  ;;  %v740_v60 = vadd.f32 0.05243302, %v739_v33  ;;  %vm4841_vm11 = vmor %vm721_vm4, %vm722_vm10  ;;  %v365_v45 = vld [vmem:[%s4620_s28 + $0x18] sm:$0xff] }
  0x7f   : > { %v2096_v58 = vadd.f32 0.00028619796, %v2095_v32  ;;  %v2009_v0 = vsel %vm4782_vm2, %v2008_v40, %v2004_v47  ;;  %v2044_v3 = vsel %vm4821_vm9, %v4059_v8, %v2040_v61  ;;  %v719_v4 = vmul.f32 %v4061_v26, %v718_v55 }
  0x80   : > { %v750_v49 = vmul.f32 %v749_v50, %v4750_v34  ;;  %v2010_v5 = vmul.f32 %v2009_v0, %v4765_v53  ;;  %v2049_v6 = vsel %vm4792_vm3, %v2048_v11, %v2044_v3  ;;  %vm2081_vm12 = vweird.f32 %v2075_v62 }
  0x81   : > { %v2087_v2 = vand.u32 2147483648, %v2075_v62  ;;  %v2050_v40 = vmul.f32 %v2049_v6, %v4775_v39  ;;  %v720_v46 = vadd.f32 %v4061_v26, %v719_v4  ;;  %v741_v7 = vmul.f32 %v740_v60, %v4750_v34 }
  0x82   : > { %v751_v8 = vadd.f32 0.112945676, %v750_v49  ;;  %v3867_v9 = vclamps-f32 %v2010_v5, 1.0  ;;  %vm4847_vm13 = vcmp.eq.f32.partialorder %v2085_v57, 8.507059e+37  ;;  %v2097_v10 = vmul.f32 %v2096_v58, %v4799_v18 }
  0x83   : > { %v2106_v56 = vmul.f32 3.8918573e-05, %v4799_v18  ;;  %v3868_v12 = vclamps-f32 %v2050_v40, 1.0  ;;  %v724_v13 = vsel %vm4841_vm11, %v4061_v26, %v720_v46  ;;  %v742_v39 = vadd.f32 0.18741608, %v741_v7 }
  0x84   : > { %v4063_v11 = vpop.eup %4062  ;;  %v752_v14 = vmul.f32 %v751_v8, %v4750_v34  ;;  %v3285_v15 = vadd.f32 1.0, %v3867_v9  ;;  %v729_v16 = vsel %vm4801_vm7, %v728_v21, %v724_v13  ;;  %v2098_v36 = vadd.f32 0.0036580483, %v2097_v10 }
  0x85   : > { %v2077_v17 = vmul.f32 %v4063_v11, %v2075_v62  ;;  %vm2082_vm14 = vweird.f32 %v4063_v11  ;;  %v3286_v19 = vadd.f32 1.0, %v3868_v12  ;;  %v730_v24 = vmul.f32 %v729_v16, %v4779_v44 }
  0x86   : > { %v743_v29 = vmul.f32 %v742_v39, %v4750_v34  ;;  %v753_v30 = vadd.f32 0.4994258, %v752_v14  ;;  %v3349_v31 = vmul.f32 %v3285_v15, %v4745_v25  ;;  %v2107_v26 = vadd.f32 0.001143296, %v2106_v56  ;;  %vm4871_vm15 = vmor %vm2081_vm12, %vm2082_vm14 }
  0x87   : > { %v2078_v32 = vsub.f32 1.0, %v2077_v17  ;;  %v3350_v38 = vmul.f32 %v3286_v19, %v4761_v52  ;;  %v3835_v59 = vclamps-f32 %v730_v24, 1.0  ;;  %v2088_v43 = vor.u32 1.1754944e-38, %v2087_v2 }
  0x88   : > { %v754_v20 = vmul.f32 %v753_v30, %v4750_v34  ;;  %3481 = vmatmul.f32.vlgmr.msra.gmra.mxu2 %v3349_v31  ;;  %v2099_v33 = vmul.f32 %v2098_v36, %v4799_v18  ;;  %v2108_v44 = vmul.f32 %v2107_v26, %v4799_v18  ;;  %v4867_v50 = vmul.f32 0.70710677, %v4827_v51 }
  0x89   : > { %v2079_v21 = vmul.f32 %v4063_v11, %v2078_v32  ;;  %3594 = vmatmul.f32.vlgmr.msra.gmra.mxu3 %v3350_v38  ;;  %v3253_v25 = vadd.f32 1.0, %v3835_v59  ;;  %v744_v52 = vadd.f32 1.1283791, %v743_v29  ;;  %v468_v55 = vmul.f32 %v4640_v22, %v398_v37 }
  0x8a   : > { %v4875_v34 = vadd.f32 1.0, %v754_v20  ;;  %v2100_v57 = vadd.f32 0.05243302, %v2099_v33  ;;  %v2109_v60 = vadd.f32 0.014752088, %v2108_v44  ;;  %v773_v58 = vmul.f32 %v4867_v50, %v4867_v50 }
  0x8b   : > { %v2080_v47 = vadd.f32 %v4063_v11, %v2079_v21  ;;  %v3317_v0 = vmul.f32 %v3253_v25, %v4769_v54  ;;  %v599_v62 = vmul.f32 0.5, %v4666_v41  ;;  %v4883_v3 = vmul.f32 0.5, %v4681_v48 }
  0x8c   : > { %4064 = vrcp.f32 %v4875_v34  ;;  %v4889_v49 = vmul.f32 0.5, %v4719_v35  ;;  %v2101_v5 = vmul.f32 %v2100_v57, %v4799_v18  ;;  %v2110_v6 = vmul.f32 %v2109_v60, %v4799_v18 }
  0x8d   : > { %v2084_v4 = vsel %vm4871_vm15, %v4063_v11, %v2080_v47  ;;  %3433 = vmatmul.f32.vlgmr.msra.gmra.mxu0 %v3317_v0  ;;  %v4897_v48 = vmul.f32 %v744_v52, %v4700_v63  ;;  %v4899_v54 = vmin.f32 %v773_v58, 16.0  ;;  %v4902_v2 = vadd.f32 %v4647_v27, %v468_v55  ;;  %v399_v11 = vld [vmem:[%s4620_s28 + $0x128] sm:$0xff] }
  0x8e   : > { %v2089_v41 = vsel %vm4847_vm13, %v2088_v43, %v2084_v4  ;;  %v767_v40 = vand.u32 2147483648, %v4875_v34  ;;  %v2102_v46 = vadd.f32 0.18741608, %v2101_v5  ;;  %v2111_v7 = vadd.f32 0.112945676, %v2110_v6 }
  0x8f   : > { %v2090_v35 = vmul.f32 %v2089_v41, %v4816_v42  ;;  %v775_v8 = vmul.f32 2.1237322e-06, %v4899_v54  ;;  %v786_v9 = vmul.f32 3.8918573e-05, %v4899_v54  ;;  %v4909_v53 = vmul.f32 0.70710677, %v4902_v2 }
  0x90   : > { %v435_v63 = vmul.f32 %v4642_v23, %v365_v45  ;;  %vm761_vm0 = vweird.f32 %v4875_v34  ;;  %v765_v56 = vand.u32 2147483647, %v4875_v34  ;;  %v2112_v42 = vmul.f32 %v2111_v7, %v4799_v18 }
  0x91   : > { %v3869_v10 = vclamps-f32 %v2090_v35, 1.0  ;;  %v776_v13 = vadd.f32 0.00028619796, %v775_v8  ;;  %v787_v39 = vadd.f32 0.001143296, %v786_v9  ;;  %v2133_v14 = vmul.f32 %v4909_v53, %v4909_v53 }
  0x92   : > { %v4065_v12 = vpop.eup %4064  ;;  %v4919_v15 = vadd.f32 %v4649_v28, %v435_v63  ;;  %v768_v19 = vor.u32 1.1754944e-38, %v767_v40  ;;  %v2103_v24 = vmul.f32 %v2102_v46, %v4799_v18  ;;  %v2113_v29 = vadd.f32 0.4994258, %v2112_v42 }
  0x93   : > { %v3287_v16 = vadd.f32 1.0, %v3869_v10  ;;  %v757_v17 = vmul.f32 %v4065_v12, %v4875_v34  ;;  %v777_v30 = vmul.f32 %v776_v13, %v4899_v54  ;;  %v788_v31 = vmul.f32 %v787_v39, %v4899_v54 }
  0x94   : > { %v469_v32 = vmul.f32 %v4642_v23, %v399_v11  ;;  %vm762_vm1 = vweird.f32 %v4065_v12  ;;  %v4926_v37 = vmin.f32 %v2133_v14, 16.0  ;;  %v2114_v38 = vmul.f32 %v2113_v29, %v4799_v18 }
  0x95   : > { %v3351_v36 = vmul.f32 %v3287_v16, %v599_v62  ;;  %v758_v26 = vsub.f32 1.0, %v757_v17  ;;  %v778_v59 = vadd.f32 0.0036580483, %v777_v30  ;;  %v789_v43 = vadd.f32 0.014752088, %v788_v31  ;;  %vm4936_vm2 = vmor %vm761_vm0, %vm762_vm1  ;;  %v366_v30 = vld [vmem:[%s4620_s28 + $0x20] sm:$0xff] }
  0x96   : > { %v4930_v20 = vmul.f32 0.70710677, %v4919_v15  ;;  %v2104_v33 = vadd.f32 1.1283791, %v2103_v24  ;;  %v2135_v44 = vmul.f32 2.1237322e-06, %v4926_v37  ;;  %v4943_v47 = vadd.f32 %v4649_v28, %v469_v32 }
  0x97   : > { %3484 = vmatmul.f32.gmra.mxu2 %v3351_v36  ;;  %v759_v21 = vmul.f32 %v4065_v12, %v758_v26  ;;  %v2146_v25 = vmul.f32 3.8918573e-05, %v4926_v37  ;;  %v2115_v52 = vadd.f32 1.0, %v2114_v38  ;;  %v779_v18 = vmul.f32 %v778_v59, %v4899_v54 }
  0x98   : > { %v790_v55 = vmul.f32 %v789_v43, %v4899_v54  ;;  %vm766_vm3 = vcmp.eq.f32.partialorder %v765_v56, 8.507059e+37  ;;  %v2136_v60 = vadd.f32 0.00028619796, %v2135_v44  ;;  %v4946_v34 = vmul.f32 0.5, %v4827_v51 }
  0x99   : > { %v760_v57 = vadd.f32 %v4065_v12, %v759_v21  ;;  %v2147_v58 = vadd.f32 0.001143296, %v2146_v25  ;;  %4066 = vrcp.f32 %v2115_v52  ;;  %v2125_v0 = vand.u32 2147483647, %v2115_v52 }
  0x9a   : > { %v813_v62 = vmul.f32 %v4930_v20, %v4930_v20  ;;  %v780_v5 = vadd.f32 0.05243302, %v779_v18  ;;  %v791_v6 = vadd.f32 0.112945676, %v790_v55  ;;  %v2137_v45 = vmul.f32 %v2136_v60, %v4926_v37 }
  0x9b   : > { %v764_v4 = vsel %vm4936_vm2, %v4065_v12, %v760_v57  ;;  %v4954_v35 = vmul.f32 %v2104_v33, %v4730_v1  ;;  %v2148_v40 = vmul.f32 %v2147_v58, %v4926_v37  ;;  %v4958_v46 = vmul.f32 0.70710677, %v4943_v47 }
  0x9c   : > { %v769_v41 = vsel %vm766_vm3, %v768_v19, %v764_v4  ;;  %v781_v7 = vmul.f32 %v780_v5, %v4899_v54  ;;  %v792_v8 = vmul.f32 %v791_v6, %v4899_v54  ;;  %v2138_v9 = vadd.f32 0.0036580483, %v2137_v45 }
  0x9d   : > { %v770_v51 = vmul.f32 %v769_v41, %v4897_v48  ;;  %vm2121_vm4 = vweird.f32 %v2115_v52  ;;  %v2127_v63 = vand.u32 2147483648, %v2115_v52  ;;  %v2149_v10 = vadd.f32 0.014752088, %v2148_v40 }
  0x9e   : > { %v4963_v56 = vmin.f32 %v813_v62, 16.0  ;;  %vm4965_vm5 = vcmp.eq.f32.partialorder %v2125_v0, 8.507059e+37  ;;  %v782_v11 = vadd.f32 0.18741608, %v781_v7  ;;  %v793_v12 = vadd.f32 0.4994258, %v792_v8 }
  0x9f   : > { %v3836_v1 = vclamps-f32 %v770_v51, 1.0  ;;  %v4067_v13 = vpop.eup %4066  ;;  %v2139_v48 = vmul.f32 %v2138_v9, %v4926_v37  ;;  %v2150_v39 = vmul.f32 %v2149_v10, %v4926_v37  ;;  %v2173_v16 = vmul.f32 %v4958_v46, %v4958_v46 }
  0xa0   : > { %v815_v14 = vmul.f32 2.1237322e-06, %v4963_v56  ;;  %v2117_v19 = vmul.f32 %v4067_v13, %v2115_v52  ;;  %v783_v24 = vmul.f32 %v782_v11, %v4899_v54  ;;  %v826_v29 = vmul.f32 3.8918573e-05, %v4963_v56 }
  0xa1   : > { %v3254_v17 = vadd.f32 1.0, %v3836_v1  ;;  %v794_v31 = vmul.f32 %v793_v12, %v4899_v54  ;;  %v2140_v32 = vadd.f32 0.05243302, %v2139_v48  ;;  %v2151_v36 = vadd.f32 0.112945676, %v2150_v39 }
  0xa2   : > { %v816_v26 = vadd.f32 0.00028619796, %v815_v14  ;;  %v2118_v59 = vsub.f32 1.0, %v2117_v19  ;;  %vm2122_vm6 = vweird.f32 %v4067_v13  ;;  %v784_v43 = vadd.f32 1.1283791, %v783_v24 }
  0xa3   : > { %v3318_v38 = vmul.f32 %v3254_v17, %v4883_v3  ;;  %v795_v21 = vadd.f32 1.0, %v794_v31  ;;  %v2141_v33 = vmul.f32 %v2140_v32, %v4926_v37  ;;  %v2152_v44 = vmul.f32 %v2151_v36, %v4926_v37  ;;  %vm4984_vm7 = vmor %vm2121_vm4, %vm2122_vm6 }
  0xa4   : > { %v817_v25 = vmul.f32 %v816_v26, %v4963_v56  ;;  %v2119_v61 = vmul.f32 %v4067_v13, %v2118_v59  ;;  %v2128_v18 = vor.u32 1.1754944e-38, %v2127_v63  ;;  %v827_v55 = vadd.f32 0.001143296, %v826_v29 }
  0xa5   : > { %3546 = vmatmul.f32.vlgmr.msra.gmra.mxu1 %v3318_v38  ;;  %v436_v54 = vmul.f32 %v4640_v22, %v366_v30  ;;  %4068 = vrcp.f32 %v795_v21  ;;  %v4989_v3 = vmul.f32 0.5, %v4902_v2  ;;  %v4992_v60 = vmul.f32 0.5, %v4919_v15 }
  0xa6   : > { %v4994_v58 = vmin.f32 %v2173_v16, 16.0  ;;  %v2120_v0 = vadd.f32 %v4067_v13, %v2119_v61  ;;  %v2142_v62 = vadd.f32 0.18741608, %v2141_v33  ;;  %v2153_v4 = vadd.f32 0.4994258, %v2152_v44 }
  0xa7   : > { %v818_v5 = vadd.f32 0.0036580483, %v817_v25  ;;  %v4997_v6 = vmul.f32 %v784_v43, %v4867_v50  ;;  %v805_v52 = vand.u32 2147483647, %v795_v21  ;;  %v828_v45 = vmul.f32 %v827_v55, %v4963_v56 }
  0xa8   : > { %v2175_v41 = vmul.f32 2.1237322e-06, %v4994_v58  ;;  %v2124_v2 = vsel %vm4984_vm7, %v4067_v13, %v2120_v0  ;;  %v2143_v15 = vmul.f32 %v2142_v62, %v4926_v37  ;;  %v2154_v40 = vmul.f32 %v2153_v4, %v4926_v37 }
  0xa9   : > { %v819_v51 = vmul.f32 %v818_v5, %v4963_v56  ;;  %v2129_v7 = vsel %vm4965_vm5, %v2128_v18, %v2124_v2  ;;  %v829_v8 = vadd.f32 0.014752088, %v828_v45  ;;  %v2186_v9 = vmul.f32 3.8918573e-05, %v4994_v58 }
  0xaa   : > { %v2176_v50 = vadd.f32 0.00028619796, %v2175_v41  ;;  %v2130_v63 = vmul.f32 %v2129_v7, %v4954_v35  ;;  %vm801_vm8 = vweird.f32 %v795_v21  ;;  %v5010_v10 = vadd.f32 1.0, %v2154_v40 }
  0xab   : > { %v820_v1 = vadd.f32 0.05243302, %v819_v51  ;;  %v4069_v11 = vpop.eup %4068  ;;  %v807_v12 = vand.u32 2147483648, %v795_v21  ;;  %v830_v13 = vmul.f32 %v829_v8, %v4963_v56  ;;  %v2187_v48 = vadd.f32 0.001143296, %v2186_v9 }
  0xac   : > { %v2177_v37 = vmul.f32 %v2176_v50, %v4994_v58  ;;  %v3870_v39 = vclamps-f32 %v2130_v63, 1.0  ;;  %v797_v42 = vmul.f32 %v4069_v11, %v795_v21  ;;  %vm5014_vm9 = vcmp.eq.f32.partialorder %v805_v52, 8.507059e+37 }
  0xad   : > { %v2144_v16 = vadd.f32 1.1283791, %v2143_v15  ;;  %vm802_vm10 = vweird.f32 %v4069_v11  ;;  %4070 = vrcp.f32 %v5010_v10  ;;  %v2165_v35 = vand.u32 2147483647, %v5010_v10 }
  0xae   : > { %v5021_v17 = vadd.f32 %v4647_v27, %v436_v54  ;;  %v3288_v19 = vadd.f32 1.0, %v3870_v39  ;;  %v798_v24 = vsub.f32 1.0, %v797_v42  ;;  %v821_v29 = vmul.f32 %v820_v1, %v4963_v56  ;;  %vm5030_vm11 = vmor %vm801_vm8, %vm802_vm10  ;;  %v400_v54 = vld [vmem:[%s4620_s28 + $0x130] sm:$0xff]  ;;  %v367_v39 = vld [vmem:[%s4620_s28 + $0x28] sm:$0xff] }
  0xaf   : > { %v831_v30 = vadd.f32 0.112945676, %v830_v13  ;;  %v808_v31 = vor.u32 1.1754944e-38, %v807_v12  ;;  %v2167_v32 = vand.u32 2147483648, %v5010_v10  ;;  %v2178_v36 = vadd.f32 0.0036580483, %v2177_v37 }
  0xb0   : > { %v2188_v26 = vmul.f32 %v2187_v48, %v4994_v58  ;;  %v3352_v38 = vmul.f32 %v3288_v19, %v4889_v49  ;;  %v799_v59 = vmul.f32 %v4069_v11, %v798_v24  ;;  %v822_v43 = vadd.f32 0.18741608, %v821_v29 }
  0xb1   : > { %v832_v33 = vmul.f32 %v831_v30, %v4963_v56  ;;  %v2145_v25 = vmul.f32 %v2144_v16, %v4909_v53  ;;  %v2179_v61 = vmul.f32 %v2178_v36, %v4994_v58  ;;  %v5037_v55 = vmul.f32 0.70710677, %v5021_v17 }
  0xb2   : > { %v2189_v18 = vadd.f32 0.014752088, %v2188_v26  ;;  %3597 = vmatmul.f32.gmra.mxu3 %v3352_v38  ;;  %v800_v49 = vadd.f32 %v4069_v11, %v799_v59  ;;  %vm2161_vm12 = vweird.f32 %v5010_v10  ;;  %vm5041_vm13 = vcmp.eq.f32.partialorder %v2165_v35, 8.507059e+37 }
  0xb3   : > { %v833_v21 = vadd.f32 0.4994258, %v832_v33  ;;  %v4071_v0 = vpop.eup %4070  ;;  %v823_v62 = vmul.f32 %v822_v43, %v4963_v56  ;;  %v2180_v53 = vadd.f32 0.05243302, %v2179_v61  ;;  %v853_v5 = vmul.f32 %v5037_v55, %v5037_v55 }
  0xb4   : > { %v2190_v4 = vmul.f32 %v2189_v18, %v4994_v58  ;;  %v804_v52 = vsel %vm5030_vm11, %v4069_v11, %v800_v49  ;;  %v2157_v45 = vmul.f32 %v4071_v0, %v5010_v10  ;;  %v2168_v41 = vor.u32 1.1754944e-38, %v2167_v32 }
  0xb5   : > { %v470_v2 = vmul.f32 %v4640_v22, %v400_v54  ;;  %v809_v15 = vsel %vm5014_vm9, %v808_v31, %v804_v52  ;;  %v834_v40 = vmul.f32 %v833_v21, %v4963_v56  ;;  %v2181_v51 = vmul.f32 %v2180_v53, %v4994_v58 }
  0xb6   : > { %v2191_v7 = vadd.f32 0.112945676, %v2190_v4  ;;  %v810_v8 = vmul.f32 %v809_v15, %v4997_v6  ;;  %v2158_v50 = vsub.f32 1.0, %v2157_v45  ;;  %vm2162_vm14 = vweird.f32 %v4071_v0 }
  0xb7   : > { %v5058_v9 = vmin.f32 %v853_v5, 16.0  ;;  %v824_v63 = vadd.f32 1.1283791, %v823_v62  ;;  %v835_v1 = vadd.f32 1.0, %v834_v40  ;;  %v2182_v11 = vadd.f32 0.18741608, %v2181_v51  ;;  %vm5068_vm15 = vmor %vm2161_vm12, %vm2162_vm14 }
  0xb8   : > { %v2192_v12 = vmul.f32 %v2191_v7, %v4994_v58  ;;  %v3837_v13 = vclamps-f32 %v810_v8, 1.0  ;;  %v2159_v37 = vmul.f32 %v4071_v0, %v2158_v50  ;;  %v5062_v48 = vmul.f32 0.5, %v4943_v47 }
  0xb9   : > { %v855_v56 = vmul.f32 2.1237322e-06, %v5058_v9  ;;  %4072 = vrcp.f32 %v835_v1  ;;  %v845_v42 = vand.u32 2147483647, %v835_v1  ;;  %v866_v14 = vmul.f32 3.8918573e-05, %v5058_v9 }
  0xba   : > { %v5074_v16 = vadd.f32 %v4647_v27, %v470_v2  ;;  %v3255_v35 = vadd.f32 1.0, %v3837_v13  ;;  %v2160_v19 = vadd.f32 %v4071_v0, %v2159_v37  ;;  %v2183_v47 = vmul.f32 %v2182_v11, %v4994_v58 }
  0xbb   : > { %v2193_v24 = vadd.f32 0.4994258, %v2192_v12  ;;  %v5078_v29 = vmul.f32 %v824_v63, %v4930_v20  ;;  %v847_v10 = vand.u32 2147483648, %v835_v1  ;;  %v856_v30 = vadd.f32 0.00028619796, %v855_v56 }
  0xbc   : > { %v437_v31 = vmul.f32 %v4642_v23, %v367_v39  ;;  %v3319_v32 = vmul.f32 %v3255_v35, %v4946_v34  ;;  %v2164_v36 = vsel %vm5068_vm15, %v4071_v0, %v2160_v19  ;;  %v2184_v26 = vadd.f32 1.1283791, %v2183_v47 }
  0xbd   : > { %v2194_v38 = vmul.f32 %v2193_v24, %v4994_v58  ;;  %v2169_v59 = vsel %vm5041_vm13, %v2168_v41, %v2164_v36  ;;  %v857_v43 = vmul.f32 %v856_v30, %v5058_v9  ;;  %v867_v33 = vadd.f32 0.001143296, %v866_v14 }
  0xbe   : > { %v5089_v20 = vmul.f32 0.70710677, %v5074_v16  ;;  %3436 = vmatmul.f32.gmra.mxu0 %v3319_v32  ;;  %v2170_v44 = vmul.f32 %v2169_v59, %v2145_v25  ;;  %vm841_vm0 = vweird.f32 %v835_v1  ;;  %vm5091_vm1 = vcmp.eq.f32.partialorder %v845_v42, 8.507059e+37  ;;  %v401_v25 = vld [vmem:[%s4620_s28 + $0x138] sm:$0xff] }
  0xbf   : > { %v2195_v61 = vadd.f32 1.0, %v2194_v38  ;;  %v4073_v18 = vpop.eup %4072  ;;  %v858_v58 = vadd.f32 0.0036580483, %v857_v43  ;;  %v868_v54 = vmul.f32 %v867_v33, %v5058_v9  ;;  %v5099_v57 = vadd.f32 %v4649_v28, %v437_v31 }
  0xc0   : > { %v2213_v49 = vmul.f32 %v5089_v20, %v5089_v20  ;;  %v3871_v21 = vclamps-f32 %v2170_v44, 1.0  ;;  %v837_v0 = vmul.f32 %v4073_v18, %v835_v1  ;;  %v848_v62 = vor.u32 1.1754944e-38, %v847_v10 }
  0xc1   : > { %4074 = vrcp.f32 %v2195_v61  ;;  %vm842_vm2 = vweird.f32 %v4073_v18  ;;  %v5103_v53 = vmul.f32 %v2184_v26, %v4958_v46  ;;  %v2205_v4 = vand.u32 2147483647, %v2195_v61 }
  0xc2   : > { %v859_v5 = vmul.f32 %v858_v58, %v5058_v9  ;;  %v3289_v52 = vadd.f32 1.0, %v3871_v21  ;;  %v838_v45 = vsub.f32 1.0, %v837_v0  ;;  %v869_v41 = vadd.f32 0.014752088, %v868_v54  ;;  %vm5117_vm4 = vmor %vm841_vm0, %vm842_vm2 }
  0xc3   : > { %v5106_v2 = vmin.f32 %v2213_v49, 16.0  ;;  %vm2201_vm3 = vweird.f32 %v2195_v61  ;;  %v5109_v40 = vmul.f32 0.70710677, %v5099_v57  ;;  %v471_v51 = vmul.f32 %v4642_v23, %v401_v25 }
  0xc4   : > { %v860_v15 = vadd.f32 0.05243302, %v859_v5  ;;  %v3353_v7 = vmul.f32 %v3289_v52, %v4989_v3  ;;  %v839_v8 = vmul.f32 %v4073_v18, %v838_v45  ;;  %v870_v46 = vmul.f32 %v869_v41, %v5058_v9  ;;  %v368_v5 = vld [vmem:[%s4620_s28 + $0x30] sm:$0xff] }
  0xc5   : > { %v2215_v50 = vmul.f32 2.1237322e-06, %v5106_v2  ;;  %vm5121_vm5 = vcmp.eq.f32.partialorder %v2205_v4, 8.507059e+37  ;;  %v2207_v12 = vand.u32 2147483648, %v2195_v61  ;;  %v2226_v3 = vmul.f32 3.8918573e-05, %v5106_v2 }
  0xc6   : > { %v861_v13 = vmul.f32 %v860_v15, %v5058_v9  ;;  %3487 = vmatmul.f32.gmra.mxu2 %v3353_v7  ;;  %v840_v56 = vadd.f32 %v4073_v18, %v839_v8  ;;  %v871_v39 = vadd.f32 0.112945676, %v870_v46  ;;  %v893_v1 = vmul.f32 %v5109_v40, %v5109_v40 }
  0xc7   : > { %v4075_v37 = vpop.eup %4074  ;;  %v2216_v6 = vadd.f32 0.00028619796, %v2215_v50  ;;  %v2227_v35 = vadd.f32 0.001143296, %v2226_v3  ;;  %v5130_v19 = vadd.f32 %v4649_v28, %v471_v51  ;;  %v2208_v44 = vor.u32 1.1754944e-38, %v2207_v12 }
  0xc8   : > { %v2197_v42 = vmul.f32 %v4075_v37, %v2195_v61  ;;  %v862_v14 = vadd.f32 0.18741608, %v861_v13  ;;  %v844_v47 = vsel %vm5117_vm4, %v4073_v18, %v840_v56  ;;  %vm2202_vm6 = vweird.f32 %v4075_v37 }
  0xc9   : > { %v872_v24 = vmul.f32 %v871_v39, %v5058_v9  ;;  %v2217_v10 = vmul.f32 %v2216_v6, %v5106_v2  ;;  %v849_v30 = vsel %vm5091_vm1, %v848_v62, %v844_v47  ;;  %v2228_v36 = vmul.f32 %v2227_v35, %v5106_v2  ;;  %vm5145_vm7 = vmor %vm2201_vm3, %vm2202_vm6 }
  0xca   : > { %v2198_v31 = vsub.f32 1.0, %v2197_v42  ;;  %v863_v32 = vmul.f32 %v862_v14, %v5058_v9  ;;  %v850_v26 = vmul.f32 %v849_v30, %v5078_v29  ;;  %v5141_v43 = vmin.f32 %v893_v1, 16.0 }
  0xcb   : > { %v873_v38 = vadd.f32 0.4994258, %v872_v24  ;;  %v2218_v59 = vadd.f32 0.0036580483, %v2217_v10  ;;  %v2229_v58 = vadd.f32 0.014752088, %v2228_v36  ;;  %v438_v50 = vmul.f32 %v4640_v22, %v368_v5 }
  0xcc   : > { %v2199_v33 = vmul.f32 %v4075_v37, %v2198_v31  ;;  %v864_v18 = vadd.f32 1.1283791, %v863_v32  ;;  %v3838_v54 = vclamps-f32 %v850_v26, 1.0  ;;  %v895_v21 = vmul.f32 2.1237322e-06, %v5141_v43 }
  0xcd   : > { %v874_v49 = vmul.f32 %v873_v38, %v5058_v9  ;;  %v2219_v29 = vmul.f32 %v2218_v59, %v5106_v2  ;;  %v2230_v62 = vmul.f32 %v2229_v58, %v5106_v2  ;;  %v906_v25 = vmul.f32 3.8918573e-05, %v5141_v43  ;;  %v402_v59 = vld [vmem:[%s4620_s28 + $0x140] sm:$0xff] }
  0xce   : > { %v2200_v0 = vadd.f32 %v4075_v37, %v2199_v33  ;;  %v5155_v4 = vmul.f32 0.70710677, %v5130_v19  ;;  %v3256_v61 = vadd.f32 1.0, %v3838_v54  ;;  %v896_v41 = vadd.f32 0.00028619796, %v895_v21 }
  0xcf   : > { %v875_v52 = vadd.f32 1.0, %v874_v49  ;;  %v2220_v45 = vadd.f32 0.05243302, %v2219_v29  ;;  %v5161_v15 = vmul.f32 0.5, %v5021_v17  ;;  %v2231_v51 = vadd.f32 0.112945676, %v2230_v62 }
  0xd0   : > { %v2204_v9 = vsel %vm5145_vm7, %v4075_v37, %v2200_v0  ;;  %v907_v7 = vadd.f32 0.001143296, %v906_v25  ;;  %v3320_v8 = vmul.f32 %v3256_v61, %v4992_v60  ;;  %v5169_v12 = vmul.f32 %v864_v18, %v5037_v55 }
  0xd1   : > { %v2209_v46 = vsel %vm5121_vm5, %v2208_v44, %v2204_v9  ;;  %4076 = vrcp.f32 %v875_v52  ;;  %v5172_v13 = vmul.f32 0.5, %v5074_v16  ;;  %v2221_v17 = vmul.f32 %v2220_v45, %v5106_v2 }
  0xd2   : > { %v2210_v63 = vmul.f32 %v2209_v46, %v5103_v53  ;;  %3549 = vmatmul.f32.gmra.mxu1 %v3320_v8  ;;  %v2232_v3 = vmul.f32 %v2231_v51, %v5106_v2  ;;  %v897_v60 = vmul.f32 %v896_v41, %v5141_v43  ;;  %v908_v11 = vmul.f32 %v907_v7, %v5141_v43 }
  0xd3   : > { %v2253_v37 = vmul.f32 %v5155_v4, %v5155_v4  ;;  %v885_v53 = vand.u32 2147483647, %v875_v52  ;;  %v2222_v39 = vadd.f32 0.18741608, %v2221_v17  ;;  %v5181_v55 = vmul.f32 0.5, %v5099_v57 }
  0xd4   : > { %v3872_v56 = vclamps-f32 %v2210_v63, 1.0  ;;  %v2233_v16 = vadd.f32 0.4994258, %v2232_v3  ;;  %v898_v6 = vadd.f32 0.0036580483, %v897_v60  ;;  %v5184_v42 = vadd.f32 %v4647_v27, %v438_v50 }
  0xd5   : > { %v909_v1 = vadd.f32 0.014752088, %v908_v11  ;;  %v887_v35 = vand.u32 2147483648, %v875_v52  ;;  %v2223_v47 = vmul.f32 %v2222_v39, %v5106_v2  ;;  %v5187_v24 = vmin.f32 %v2253_v37, 16.0 }
  0xd6   : > { %v3290_v14 = vadd.f32 1.0, %v3872_v56  ;;  %v2234_v30 = vmul.f32 %v2233_v16, %v5106_v2  ;;  %v899_v31 = vmul.f32 %v898_v6, %v5141_v43  ;;  %v5193_v32 = vmul.f32 0.70710677, %v5184_v42 }
  0xd7   : > { %v4077_v10 = vpop.eup %4076  ;;  %v910_v57 = vmul.f32 %v909_v1, %v5141_v43  ;;  %vm881_vm8 = vweird.f32 %v875_v52  ;;  %v2224_v38 = vadd.f32 1.1283791, %v2223_v47  ;;  %v2255_v2 = vmul.f32 2.1237322e-06, %v5187_v24 }
  0xd8   : > { %v3354_v36 = vmul.f32 %v3290_v14, %v5062_v48  ;;  %v877_v26 = vmul.f32 %v4077_v10, %v875_v52  ;;  %vm882_vm9 = vweird.f32 %v4077_v10  ;;  %v2235_v33 = vadd.f32 1.0, %v2234_v30  ;;  %v369_v14 = vld [vmem:[%s4620_s28 + $0x38] sm:$0xff] }
  0xd9   : > { %v900_v44 = vadd.f32 0.05243302, %v899_v31  ;;  %v911_v18 = vadd.f32 0.112945676, %v910_v57  ;;  %v2266_v54 = vmul.f32 3.8918573e-05, %v5187_v24  ;;  %v933_v34 = vmul.f32 %v5193_v32, %v5193_v32  ;;  %vm5213_vm11 = vmor %vm881_vm8, %vm882_vm9 }
  0xda   : > { %3600 = vmatmul.f32.gmra.mxu3 %v3354_v36  ;;  %v878_v58 = vsub.f32 1.0, %v877_v26  ;;  %vm5201_vm10 = vcmp.eq.f32.partialorder %v885_v53, 8.507059e+37  ;;  %v888_v48 = vor.u32 1.1754944e-38, %v887_v35  ;;  %4078 = vrcp.f32 %v2235_v33 }
  0xdb   : > { %v472_v29 = vmul.f32 %v4640_v22, %v402_v59  ;;  %v5207_v0 = vmul.f32 %v2224_v38, %v5089_v20  ;;  %v901_v62 = vmul.f32 %v900_v44, %v5141_v43  ;;  %v912_v25 = vmul.f32 %v911_v18, %v5141_v43 }
  0xdc   : > { %v879_v21 = vmul.f32 %v4077_v10, %v878_v58  ;;  %vm2241_vm12 = vweird.f32 %v2235_v33  ;;  %v2245_v61 = vand.u32 2147483647, %v2235_v33  ;;  %v2256_v45 = vadd.f32 0.00028619796, %v2255_v2 }
  0xdd   : > { %v2267_v41 = vadd.f32 0.001143296, %v2266_v54  ;;  %v902_v51 = vadd.f32 0.18741608, %v901_v62  ;;  %v913_v7 = vadd.f32 0.4994258, %v912_v25  ;;  %v439_v26 = vmul.f32 %v4642_v23, %v369_v14 }
  0xde   : > { %v880_v9 = vadd.f32 %v4077_v10, %v879_v21  ;;  %v5217_v8 = vmin.f32 %v933_v34, 16.0  ;;  %v2247_v20 = vand.u32 2147483648, %v2235_v33  ;;  %v5220_v46 = vmul.f32 0.5, %v5130_v19 }
  0xdf   : > { %v2257_v52 = vmul.f32 %v2256_v45, %v5187_v24  ;;  %v2268_v50 = vmul.f32 %v2267_v41, %v5187_v24  ;;  %v903_v17 = vmul.f32 %v902_v51, %v5141_v43  ;;  %v914_v3 = vmul.f32 %v913_v7, %v5141_v43 }
  0xe0   : > { %v884_v63 = vsel %vm5213_vm11, %v4077_v10, %v880_v9  ;;  %v935_v60 = vmul.f32 2.1237322e-06, %v5217_v8  ;;  %v4079_v11 = vpop.eup %4078  ;;  %v946_v53 = vmul.f32 3.8918573e-05, %v5217_v8  ;;  %vm5233_vm13 = vcmp.eq.f32.partialorder %v2245_v61, 8.507059e+37 }
  0xe1   : > { %v889_v37 = vsel %vm5201_vm10, %v888_v48, %v884_v63  ;;  %v2258_v19 = vadd.f32 0.0036580483, %v2257_v52  ;;  %v2269_v56 = vadd.f32 0.014752088, %v2268_v50  ;;  %v2237_v16 = vmul.f32 %v4079_v11, %v2235_v33 }
  0xe2   : > { %v890_v39 = vmul.f32 %v889_v37, %v5169_v12  ;;  %v904_v1 = vadd.f32 1.1283791, %v903_v17  ;;  %v915_v43 = vadd.f32 1.0, %v914_v3  ;;  %v936_v10 = vadd.f32 0.00028619796, %v935_v60 }
  0xe3   : > { %v2259_v35 = vmul.f32 %v2258_v19, %v5187_v24  ;;  %v2270_v47 = vmul.f32 %v2269_v56, %v5187_v24  ;;  %v2238_v31 = vsub.f32 1.0, %v2237_v16  ;;  %vm2242_vm14 = vweird.f32 %v4079_v11 }
  0xe4   : > { %v3839_v30 = vclamps-f32 %v890_v39, 1.0  ;;  %v947_v57 = vadd.f32 0.001143296, %v946_v53  ;;  %v2248_v36 = vor.u32 1.1754944e-38, %v2247_v20  ;;  %4080 = vrcp.f32 %v915_v43  ;;  %vm5245_vm15 = vmor %vm2241_vm12, %vm2242_vm14 }
  0xe5   : > { %v5241_v12 = vadd.f32 %v4647_v27, %v472_v29  ;;  %v2239_v59 = vmul.f32 %v4079_v11, %v2238_v31  ;;  %v2260_v44 = vadd.f32 0.05243302, %v2259_v35  ;;  %v2271_v18 = vadd.f32 0.112945676, %v2270_v47 }
  0xe6   : > { %v3257_v38 = vadd.f32 1.0, %v3839_v30  ;;  %v5250_v2 = vmul.f32 %v904_v1, %v5109_v40  ;;  %v925_v54 = vand.u32 2147483647, %v915_v43  ;;  %v937_v34 = vmul.f32 %v936_v10, %v5217_v8 }
  0xe7   : > { %v948_v49 = vmul.f32 %v947_v57, %v5217_v8  ;;  %v2240_v29 = vadd.f32 %v4079_v11, %v2239_v59  ;;  %v2261_v21 = vmul.f32 %v2260_v44, %v5187_v24  ;;  %v2272_v62 = vmul.f32 %v2271_v18, %v5187_v24  ;;  %v403_v59 = vld [vmem:[%s4620_s28 + $0x148] sm:$0xff] }
  0xe8   : > { %v3321_v48 = vmul.f32 %v3257_v38, %v5161_v15  ;;  %vm921_vm0 = vweird.f32 %v915_v43  ;;  %v938_v33 = vadd.f32 0.0036580483, %v937_v34  ;;  %v5258_v5 = vmul.f32 0.70710677, %v5241_v12 }
  0xe9   : > { %v949_v25 = vadd.f32 0.014752088, %v948_v49  ;;  %v2244_v40 = vsel %vm5245_vm15, %v4079_v11, %v2240_v29  ;;  %v927_v61 = vand.u32 2147483648, %v915_v43  ;;  %v2262_v45 = vadd.f32 0.18741608, %v2261_v21  ;;  %v370_v21 = vld [vmem:[%s4620_s28 + $0x40] sm:$0xff] }
  0xea   : > { %3439 = vmatmul.f32.gmra.mxu0 %v3321_v48  ;;  %v2273_v41 = vadd.f32 0.4994258, %v2272_v62  ;;  %v4081_v9 = vpop.eup %4080  ;;  %v2249_v15 = vsel %vm5233_vm13, %v2248_v36, %v2244_v40  ;;  %v939_v51 = vmul.f32 %v938_v33, %v5217_v8  ;;  %v2293_v20 = vmul.f32 %v5258_v5, %v5258_v5 }
  0xeb   : > { %v950_v7 = vmul.f32 %v949_v25, %v5217_v8  ;;  %v2250_v52 = vmul.f32 %v2249_v15, %v5207_v0  ;;  %v917_v50 = vmul.f32 %v4081_v9, %v915_v43  ;;  %v2263_v63 = vmul.f32 %v2262_v45, %v5187_v24 }
  0xec   : > { %v5271_v17 = vadd.f32 %v4649_v28, %v439_v26  ;;  %v2274_v3 = vmul.f32 %v2273_v41, %v5187_v24  ;;  %v940_v60 = vadd.f32 0.05243302, %v939_v51  ;;  %v5274_v37 = vmin.f32 %v2293_v20, 16.0 }
  0xed   : > { %v951_v11 = vadd.f32 0.112945676, %v950_v7  ;;  %v3873_v19 = vclamps-f32 %v2250_v52, 1.0  ;;  %v918_v56 = vsub.f32 1.0, %v917_v50  ;;  %vm922_vm1 = vweird.f32 %v4081_v9 }
  0xee   : > { %v2264_v53 = vadd.f32 1.1283791, %v2263_v63  ;;  %v2275_v39 = vadd.f32 1.0, %v2274_v3  ;;  %v941_v16 = vmul.f32 %v940_v60, %v5217_v8  ;;  %v2295_v6 = vmul.f32 2.1237322e-06, %v5274_v37  ;;  %vm5287_vm3 = vmor %vm921_vm0, %vm922_vm1 }
  0xef   : > { %v952_v0 = vmul.f32 %v951_v11, %v5217_v8  ;;  %v3291_v1 = vadd.f32 1.0, %v3873_v19  ;;  %v919_v14 = vmul.f32 %v4081_v9, %v918_v56  ;;  %vm5279_vm2 = vcmp.eq.f32.partialorder %v925_v54, 8.507059e+37 }
  0xf0   : > { %v5284_v35 = vmul.f32 0.70710677, %v5271_v17  ;;  %v928_v10 = vor.u32 1.1754944e-38, %v927_v61  ;;  %v5292_v30 = vmul.f32 %v2264_v53, %v5155_v4  ;;  %4082 = vrcp.f32 %v2275_v39 }
  0xf1   : > { %v2285_v31 = vand.u32 2147483647, %v2275_v39  ;;  %v3355_v57 = vmul.f32 %v3291_v1, %v5172_v13  ;;  %v920_v36 = vadd.f32 %v4081_v9, %v919_v14  ;;  %v942_v26 = vadd.f32 0.18741608, %v941_v16 }
  0xf2   : > { %v953_v38 = vadd.f32 0.4994258, %v952_v0  ;;  %vm2281_vm4 = vweird.f32 %v2275_v39  ;;  %v2287_v44 = vand.u32 2147483648, %v2275_v39  ;;  %v2296_v43 = vadd.f32 0.00028619796, %v2295_v6 }
  0xf3   : > { %v2306_v18 = vmul.f32 3.8918573e-05, %v5274_v37  ;;  %3490 = vmatmul.f32.gmra.mxu2 %v3355_v57  ;;  %v924_v58 = vsel %vm5287_vm3, %v4081_v9, %v920_v36  ;;  %v943_v4 = vmul.f32 %v942_v26, %v5217_v8  ;;  %v973_v13 = vmul.f32 %v5284_v35, %v5284_v35 }
  0xf4   : > { %v954_v54 = vmul.f32 %v953_v38, %v5217_v8  ;;  %v929_v34 = vsel %vm5279_vm2, %v928_v10, %v924_v58  ;;  %v2297_v49 = vmul.f32 %v2296_v43, %v5274_v37  ;;  %v473_v29 = vmul.f32 %v4642_v23, %v403_v59 }
  0xf5   : > { %v2307_v48 = vadd.f32 0.001143296, %v2306_v18  ;;  %v930_v62 = vmul.f32 %v929_v34, %v5250_v2  ;;  %vm5309_vm5 = vcmp.eq.f32.partialorder %v2285_v31, 8.507059e+37  ;;  %v944_v25 = vadd.f32 1.1283791, %v943_v4 }
  0xf6   : > { %v955_v8 = vadd.f32 1.0, %v954_v54  ;;  %v4083_v40 = vpop.eup %4082  ;;  %v2288_v61 = vor.u32 1.1754944e-38, %v2287_v44  ;;  %v2298_v45 = vadd.f32 0.0036580483, %v2297_v49  ;;  %v5314_v9 = vmin.f32 %v973_v13, 16.0 }
  0xf7   : > { %v2308_v41 = vmul.f32 %v2307_v48, %v5274_v37  ;;  %v3840_v15 = vclamps-f32 %v930_v62, 1.0  ;;  %v2277_v51 = vmul.f32 %v4083_v40, %v2275_v39  ;;  %v5317_v7 = vadd.f32 %v4649_v28, %v473_v29 }
  0xf8   : > { %v440_v2 = vmul.f32 %v4640_v22, %v370_v21  ;;  %vm2282_vm6 = vweird.f32 %v4083_v40  ;;  %v5321_v20 = vmul.f32 %v944_v25, %v5193_v32  ;;  %4084 = vrcp.f32 %v955_v8 }
  0xf9   : > { %v965_v52 = vand.u32 2147483647, %v955_v8  ;;  %v3258_v50 = vadd.f32 1.0, %v3840_v15  ;;  %v2278_v63 = vsub.f32 1.0, %v2277_v51  ;;  %v2299_v3 = vmul.f32 %v2298_v45, %v5274_v37  ;;  %vm5330_vm8 = vmor %vm2281_vm4, %vm2282_vm6 }
  0xfa   : > { %v2309_v60 = vadd.f32 0.014752088, %v2308_v41  ;;  %vm961_vm7 = vweird.f32 %v955_v8  ;;  %v967_v11 = vand.u32 2147483648, %v955_v8  ;;  %v975_v19 = vmul.f32 2.1237322e-06, %v5314_v9 }
  0xfb   : > { %v986_v56 = vmul.f32 3.8918573e-05, %v5314_v9  ;;  %v3322_v53 = vmul.f32 %v3258_v50, %v5181_v55  ;;  %v2279_v16 = vmul.f32 %v4083_v40, %v2278_v63  ;;  %v2300_v0 = vadd.f32 0.05243302, %v2299_v3 }
  0xfc   : > { %v2310_v32 = vmul.f32 %v2309_v60, %v5274_v37  ;;  %v976_v1 = vadd.f32 0.00028619796, %v975_v19  ;;  %v5335_v24 = vmul.f32 0.70710677, %v5317_v7  ;;  %v5338_v47 = vadd.f32 %v4647_v27, %v440_v2 }
  0xfd   : > { %v987_v14 = vadd.f32 0.001143296, %v986_v56  ;;  %3552 = vmatmul.f32.gmra.mxu1 %v3322_v53  ;;  %v2280_v55 = vadd.f32 %v4083_v40, %v2279_v16  ;;  %vm5340_vm9 = vcmp.eq.f32.partialorder %v965_v52, 8.507059e+37  ;;  %v2301_v39 = vmul.f32 %v2300_v0, %v5274_v37 }
  0xfe   : > { %v2311_v31 = vadd.f32 0.112945676, %v2310_v32  ;;  %v4085_v57 = vpop.eup %4084  ;;  %v977_v36 = vmul.f32 %v976_v1, %v5314_v9  ;;  %v2333_v38 = vmul.f32 %v5335_v24, %v5335_v24  ;;  %v5350_v59 = vmul.f32 0.70710677, %v5338_v47 }
  0xff   : > { %v988_v26 = vmul.f32 %v987_v14, %v5314_v9  ;;  %v2284_v44 = vsel %vm5330_vm8, %v4083_v40, %v2280_v55  ;;  %v957_v43 = vmul.f32 %v4085_v57, %v955_v8  ;;  %vm962_vm10 = vweird.f32 %v4085_v57 }
 0x100   : > { %v2302_v18 = vadd.f32 0.18741608, %v2301_v39  ;;  %v2289_v58 = vsel %vm5309_vm5, %v2288_v61, %v2284_v44  ;;  %v2312_v4 = vmul.f32 %v2311_v31, %v5274_v37  ;;  %v978_v54 = vadd.f32 0.0036580483, %v977_v36  ;;  %vm5368_vm11 = vmor %vm961_vm7, %vm962_vm10 }
 0x101   : > { %v989_v13 = vadd.f32 0.014752088, %v988_v26  ;;  %v2290_v34 = vmul.f32 %v2289_v58, %v5292_v30  ;;  %v958_v49 = vsub.f32 1.0, %v957_v43  ;;  %v5359_v29 = vmin.f32 %v2333_v38, 16.0  ;;  %v371_v30 = vld [vmem:[%s4620_s28 + $0x48] sm:$0xff] }
 0x102   : > { %v2303_v48 = vmul.f32 %v2302_v18, %v5274_v37  ;;  %v968_v21 = vor.u32 1.1754944e-38, %v967_v11  ;;  %v2313_v62 = vadd.f32 0.4994258, %v2312_v4  ;;  %v979_v25 = vmul.f32 %v978_v54, %v5314_v9 }
 0x103   : > { %v990_v40 = vmul.f32 %v989_v13, %v5314_v9  ;;  %v3874_v45 = vclamps-f32 %v2290_v34, 1.0  ;;  %v959_v33 = vmul.f32 %v4085_v57, %v958_v49  ;;  %v2335_v61 = vmul.f32 2.1237322e-06, %v5359_v29 }
 0x104   : > { %v1013_v41 = vmul.f32 %v5350_v59, %v5350_v59  ;;  %v2314_v15 = vmul.f32 %v2313_v62, %v5274_v37  ;;  %v980_v51 = vadd.f32 0.05243302, %v979_v25  ;;  %v2346_v52 = vmul.f32 3.8918573e-05, %v5359_v29 }
 0x105   : > { %v991_v2 = vadd.f32 0.112945676, %v990_v40  ;;  %v3292_v50 = vadd.f32 1.0, %v3874_v45  ;;  %v960_v63 = vadd.f32 %v4085_v57, %v959_v33  ;;  %v2304_v3 = vadd.f32 1.1283791, %v2303_v48 }
 0x106   : > { %v2336_v60 = vadd.f32 0.00028619796, %v2335_v61  ;;  %v2315_v11 = vadd.f32 1.0, %v2314_v15  ;;  %v981_v19 = vmul.f32 %v980_v51, %v5314_v9  ;;  %v2347_v8 = vadd.f32 0.001143296, %v2346_v52 }
 0x107   : > { %v992_v56 = vmul.f32 %v991_v2, %v5314_v9  ;;  %v3356_v53 = vmul.f32 %v3292_v50, %v5220_v46  ;;  %v571_v16 = vmul.f32 0.5, %v5184_v42  ;;  %v964_v37 = vsel %vm5368_vm11, %v4085_v57, %v960_v63  ;;  %v404_v57 = vld [vmem:[%s4620_s28 + $0x150] sm:$0xff] }
 0x108   : > { %v2337_v0 = vmul.f32 %v2336_v60, %v5359_v29  ;;  %v969_v32 = vsel %vm5340_vm9, %v968_v21, %v964_v37  ;;  %v5384_v6 = vmul.f32 0.5, %v5241_v12  ;;  %4086 = vrcp.f32 %v2315_v11 }
 0x109   : > { %v5387_v1 = vmul.f32 0.5, %v5271_v17  ;;  %3603 = vmatmul.f32.gmra.mxu3 %v3356_v53  ;;  %v970_v46 = vmul.f32 %v969_v32, %v5321_v20  ;;  %v5391_v42 = vmul.f32 %v2304_v3, %v5258_v5  ;;  %v982_v14 = vadd.f32 0.18741608, %v981_v19 }
 0x10a   : > { %v993_v55 = vadd.f32 0.4994258, %v992_v56  ;;  %v5394_v39 = vmul.f32 0.5, %v5317_v7  ;;  %v2338_v10 = vadd.f32 0.0036580483, %v2337_v0  ;;  %v2348_v31 = vmul.f32 %v2347_v8, %v5359_v29 }
 0x10b   : > { %v5397_v12 = vmin.f32 %v1013_v41, 16.0  ;;  %v3841_v36 = vclamps-f32 %v970_v46, 1.0  ;;  %v2325_v17 = vand.u32 2147483647, %v2315_v11  ;;  %v983_v26 = vmul.f32 %v982_v14, %v5314_v9 }
 0x10c   : > { %v994_v20 = vmul.f32 %v993_v55, %v5314_v9  ;;  %v2339_v5 = vmul.f32 %v2338_v10, %v5359_v29  ;;  %v2349_v38 = vadd.f32 0.014752088, %v2348_v31  ;;  %v2327_v18 = vand.u32 2147483648, %v2315_v11 }
 0x10d   : > { %v1015_v44 = vmul.f32 2.1237322e-06, %v5397_v12  ;;  %v1026_v7 = vmul.f32 3.8918573e-05, %v5397_v12  ;;  %v3259_v43 = vadd.f32 1.0, %v3841_v36  ;;  %v474_v4 = vmul.f32 %v4640_v22, %v404_v57 }
 0x10e   : > { %v5405_v58 = vadd.f32 1.0, %v994_v20  ;;  %v4087_v54 = vpop.eup %4086  ;;  %v2340_v13 = vadd.f32 0.05243302, %v2339_v5  ;;  %v2350_v34 = vmul.f32 %v2349_v38, %v5359_v29  ;;  %vm2321_vm12 = vweird.f32 %v2315_v11  ;;  %v405_v38 = vld [vmem:[%s4620_s28 + $0x158] sm:$0xff] }
 0x10f   : > { %v1016_v49 = vadd.f32 0.00028619796, %v1015_v44  ;;  %v1027_v9 = vadd.f32 0.001143296, %v1026_v7  ;;  %v3323_v48 = vmul.f32 %v3259_v43, %v571_v16  ;;  %v2317_v21 = vmul.f32 %v4087_v54, %v2315_v11 }
 0x110   : > { %vm5409_vm13 = vcmp.eq.f32.partialorder %v2325_v17, 8.507059e+37  ;;  %vm2322_vm14 = vweird.f32 %v4087_v54  ;;  %v984_v25 = vadd.f32 1.1283791, %v983_v26  ;;  %4088 = vrcp.f32 %v5405_v58 }
 0x111   : > { %v1005_v40 = vand.u32 2147483647, %v5405_v58  ;;  %3442 = vmatmul.f32.gmra.mxu0 %v3323_v48  ;;  %v2318_v45 = vsub.f32 1.0, %v2317_v21  ;;  %v2341_v33 = vmul.f32 %v2340_v13, %v5359_v29  ;;  %v2351_v61 = vadd.f32 0.112945676, %v2350_v34  ;;  %vm5426_vm15 = vmor %vm2321_vm12, %vm2322_vm14 }
 0x112   : > { %v1017_v41 = vmul.f32 %v1016_v49, %v5397_v12  ;;  %v2328_v15 = vor.u32 1.1754944e-38, %v2327_v18  ;;  %v1007_v51 = vand.u32 2147483648, %v5405_v58  ;;  %v1028_v2 = vmul.f32 %v1027_v9, %v5397_v12 }
 0x113   : > { %v5421_v52 = vadd.f32 %v4647_v27, %v474_v4  ;;  %v2319_v50 = vmul.f32 %v4087_v54, %v2318_v45  ;;  %v2342_v63 = vadd.f32 0.18741608, %v2341_v33  ;;  %v2352_v3 = vmul.f32 %v2351_v61, %v5359_v29 }
 0x114   : > { %v1018_v60 = vadd.f32 0.0036580483, %v1017_v41  ;;  %v985_v56 = vmul.f32 %v984_v25, %v5284_v35  ;;  %v1029_v8 = vadd.f32 0.014752088, %v1028_v2  ;;  %v441_v16 = vmul.f32 %v4642_v23, %v371_v30 }
 0x115   : > { %v5432_v53 = vmul.f32 0.70710677, %v5421_v52  ;;  %v2320_v37 = vadd.f32 %v4087_v54, %v2319_v50  ;;  %vm1001_vm0 = vweird.f32 %v5405_v58  ;;  %vm5436_vm1 = vcmp.eq.f32.partialorder %v1005_v40, 8.507059e+37 }
 0x116   : > { %v2353_v11 = vadd.f32 0.4994258, %v2352_v3  ;;  %v4089_v32 = vpop.eup %4088  ;;  %v2343_v46 = vmul.f32 %v2342_v63, %v5359_v29  ;;  %v1019_v35 = vmul.f32 %v1018_v60, %v5397_v12  ;;  %v1030_v14 = vmul.f32 %v1029_v8, %v5397_v12  ;;  %v372_v60 = vld [vmem:[%s4620_s28 + $0x50] sm:$0xff] }
 0x117   : > { %v2373_v55 = vmul.f32 %v5432_v53, %v5432_v53  ;;  %v2324_v10 = vsel %vm5426_vm15, %v4087_v54, %v2320_v37  ;;  %v997_v31 = vmul.f32 %v4089_v32, %v5405_v58  ;;  %v1008_v57 = vor.u32 1.1754944e-38, %v1007_v51 }
 0x118   : > { %v5449_v36 = vadd.f32 %v4649_v28, %v441_v16  ;;  %v2329_v17 = vsel %vm5409_vm13, %v2328_v15, %v2324_v10  ;;  %v2354_v26 = vmul.f32 %v2353_v11, %v5359_v29  ;;  %v1020_v20 = vadd.f32 0.05243302, %v1019_v35 }
 0x119   : > { %v1031_v5 = vadd.f32 0.112945676, %v1030_v14  ;;  %v2330_v44 = vmul.f32 %v2329_v17, %v5391_v42  ;;  %v998_v7 = vsub.f32 1.0, %v997_v31  ;;  %vm1002_vm2 = vweird.f32 %v4089_v32 }
 0x11a   : > { %v5456_v43 = vmin.f32 %v2373_v55, 16.0  ;;  %v2344_v18 = vadd.f32 1.1283791, %v2343_v46  ;;  %v2355_v4 = vadd.f32 1.0, %v2354_v26  ;;  %v1021_v54 = vmul.f32 %v1020_v20, %v5397_v12  ;;  %vm5464_vm3 = vmor %vm1001_vm0, %vm1002_vm2 }
 0x11b   : > { %v1032_v13 = vmul.f32 %v1031_v5, %v5397_v12  ;;  %v3875_v34 = vclamps-f32 %v2330_v44, 1.0  ;;  %v999_v49 = vmul.f32 %v4089_v32, %v998_v7  ;;  %v475_v29 = vmul.f32 %v4642_v23, %v405_v38 }
 0x11c   : > { %v2375_v9 = vmul.f32 2.1237322e-06, %v5456_v43  ;;  %4090 = vrcp.f32 %v2355_v4  ;;  %v2365_v48 = vand.u32 2147483647, %v2355_v4  ;;  %v2386_v21 = vmul.f32 3.8918573e-05, %v5456_v43 }
 0x11d   : > { %v5470_v62 = vmul.f32 0.70710677, %v5449_v36  ;;  %v3293_v25 = vadd.f32 1.0, %v3875_v34  ;;  %v1000_v40 = vadd.f32 %v4089_v32, %v999_v49  ;;  %v1022_v45 = vadd.f32 0.18741608, %v1021_v54 }
 0x11e   : > { %v1033_v33 = vadd.f32 0.4994258, %v1032_v13  ;;  %v5473_v61 = vmul.f32 %v2344_v18, %v5335_v24  ;;  %vm2361_vm4 = vweird.f32 %v2355_v4  ;;  %v2367_v58 = vand.u32 2147483648, %v2355_v4 }
 0x11f   : > { %v2376_v41 = vadd.f32 0.00028619796, %v2375_v9  ;;  %v3357_v30 = vmul.f32 %v3293_v25, %v5384_v6  ;;  %v1004_v15 = vsel %vm5464_vm3, %v4089_v32, %v1000_v40  ;;  %v1023_v51 = vmul.f32 %v1022_v45, %v5397_v12 }
 0x120   : > { %v1034_v2 = vmul.f32 %v1033_v33, %v5397_v12  ;;  %v1009_v50 = vsel %vm5436_vm1, %v1008_v57, %v1004_v15  ;;  %v2387_v3 = vadd.f32 0.001143296, %v2386_v21  ;;  %v1053_v24 = vmul.f32 %v5470_v62, %v5470_v62 }
 0x121   : > { %v2377_v63 = vmul.f32 %v2376_v41, %v5456_v43  ;;  %3493 = vmatmul.f32.gmra.mxu2 %v3357_v30  ;;  %v1010_v19 = vmul.f32 %v1009_v50, %v985_v56  ;;  %vm5486_vm5 = vcmp.eq.f32.partialorder %v2365_v48, 8.507059e+37  ;;  %v1024_v8 = vadd.f32 1.1283791, %v1023_v51 }
 0x122   : > { %v1035_v16 = vadd.f32 1.0, %v1034_v2  ;;  %v4091_v37 = vpop.eup %4090  ;;  %v2368_v12 = vor.u32 1.1754944e-38, %v2367_v58  ;;  %v2388_v0 = vmul.f32 %v2387_v3, %v5456_v43  ;;  %v5491_v32 = vmin.f32 %v1053_v24, 16.0 }
 0x123   : > { %v2378_v11 = vadd.f32 0.0036580483, %v2377_v63  ;;  %v3842_v46 = vclamps-f32 %v1010_v19, 1.0  ;;  %v2357_v35 = vmul.f32 %v4091_v37, %v2355_v4  ;;  %v5494_v14 = vadd.f32 %v4649_v28, %v475_v29 }
 0x124   : > { %v442_v56 = vmul.f32 %v4640_v22, %v372_v60  ;;  %vm2362_vm6 = vweird.f32 %v4091_v37  ;;  %v5498_v55 = vmul.f32 %v1024_v8, %v5350_v59  ;;  %4092 = vrcp.f32 %v1035_v16 }
 0x125   : > { %v1045_v10 = vand.u32 2147483647, %v1035_v16  ;;  %v3260_v31 = vadd.f32 1.0, %v3842_v46  ;;  %v2358_v57 = vsub.f32 1.0, %v2357_v35  ;;  %v2379_v17 = vmul.f32 %v2378_v11, %v5456_v43  ;;  %vm5507_vm8 = vmor %vm2361_vm4, %vm2362_vm6 }
 0x126   : > { %v2389_v26 = vadd.f32 0.014752088, %v2388_v0  ;;  %vm1041_vm7 = vweird.f32 %v1035_v16  ;;  %v1047_v20 = vand.u32 2147483648, %v1035_v16  ;;  %v1055_v5 = vmul.f32 2.1237322e-06, %v5491_v32 }
 0x127   : > { %v1066_v38 = vmul.f32 3.8918573e-05, %v5491_v32  ;;  %v3324_v44 = vmul.f32 %v3260_v31, %v5387_v1  ;;  %v2359_v7 = vmul.f32 %v4091_v37, %v2358_v57  ;;  %v2380_v18 = vadd.f32 0.05243302, %v2379_v17 }
 0x128   : > { %v2390_v59 = vmul.f32 %v2389_v26, %v5456_v43  ;;  %v1056_v13 = vadd.f32 0.00028619796, %v1055_v5  ;;  %v5512_v49 = vmul.f32 0.70710677, %v5494_v14  ;;  %v5515_v9 = vadd.f32 %v4647_v27, %v442_v56 }
 0x129   : > { %v1067_v34 = vadd.f32 0.001143296, %v1066_v38  ;;  %3555 = vmatmul.f32.gmra.mxu1 %v3324_v44  ;;  %v2360_v1 = vadd.f32 %v4091_v37, %v2359_v7  ;;  %vm5517_vm9 = vcmp.eq.f32.partialorder %v1045_v10, 8.507059e+37  ;;  %v2381_v4 = vmul.f32 %v2380_v18, %v5456_v43 }
 0x12a   : > { %v2391_v42 = vadd.f32 0.112945676, %v2390_v59  ;;  %v4093_v48 = vpop.eup %4092  ;;  %v1057_v21 = vmul.f32 %v1056_v13, %v5491_v32  ;;  %v2413_v40 = vmul.f32 %v5512_v49, %v5512_v49  ;;  %v5527_v45 = vmul.f32 0.70710677, %v5515_v9 }
 0x12b   : > { %v1068_v25 = vmul.f32 %v1067_v34, %v5491_v32  ;;  %v2364_v33 = vsel %vm5507_vm8, %v4091_v37, %v2360_v1  ;;  %v1037_v58 = vmul.f32 %v4093_v48, %v1035_v16  ;;  %vm1042_vm10 = vweird.f32 %v4093_v48 }
 0x12c   : > { %v2382_v41 = vadd.f32 0.18741608, %v2381_v4  ;;  %v2369_v30 = vsel %vm5486_vm5, %v2368_v12, %v2364_v33  ;;  %v2392_v15 = vmul.f32 %v2391_v42, %v5456_v43  ;;  %v1058_v51 = vadd.f32 0.0036580483, %v1057_v21  ;;  %vm5545_vm11 = vmor %vm1041_vm7, %vm1042_vm10 }
 0x12d   : > { %v1069_v2 = vadd.f32 0.014752088, %v1068_v25  ;;  %v2370_v50 = vmul.f32 %v2369_v30, %v5473_v61  ;;  %v1038_v63 = vsub.f32 1.0, %v1037_v58  ;;  %v5536_v24 = vmin.f32 %v2413_v40, 16.0  ;;  %v373_v61 = vld [vmem:[%s4620_s28 + $0x58] sm:$0xff] }
 0x12e   : > { %v2383_v3 = vmul.f32 %v2382_v41, %v5456_v43  ;;  %v1048_v60 = vor.u32 1.1754944e-38, %v1047_v20  ;;  %v2393_v19 = vadd.f32 0.4994258, %v2392_v15  ;;  %v1059_v8 = vmul.f32 %v1058_v51, %v5491_v32 }
 0x12f   : > { %v1070_v37 = vmul.f32 %v1069_v2, %v5491_v32  ;;  %v3876_v11 = vclamps-f32 %v2370_v50, 1.0  ;;  %v1039_v6 = vmul.f32 %v4093_v48, %v1038_v63  ;;  %v2415_v12 = vmul.f32 2.1237322e-06, %v5536_v24 }
 0x130   : > { %v1093_v0 = vmul.f32 %v5527_v45, %v5527_v45  ;;  %v2394_v46 = vmul.f32 %v2393_v19, %v5456_v43  ;;  %v1060_v35 = vadd.f32 0.05243302, %v1059_v8  ;;  %v2426_v10 = vmul.f32 3.8918573e-05, %v5536_v24 }
 0x131   : > { %v1071_v56 = vadd.f32 0.112945676, %v1070_v37  ;;  %v3294_v31 = vadd.f32 1.0, %v3876_v11  ;;  %v1040_v57 = vadd.f32 %v4093_v48, %v1039_v6  ;;  %v2384_v17 = vadd.f32 1.1283791, %v2383_v3 }
 0x132   : > { %v2416_v26 = vadd.f32 0.00028619796, %v2415_v12  ;;  %v2395_v20 = vadd.f32 1.0, %v2394_v46  ;;  %v1061_v5 = vmul.f32 %v1060_v35, %v5491_v32  ;;  %v2427_v16 = vadd.f32 0.001143296, %v2426_v10 }
 0x133   : > { %v1072_v38 = vmul.f32 %v1071_v56, %v5491_v32  ;;  %v3358_v44 = vmul.f32 %v3294_v31, %v5394_v39  ;;  %v573_v7 = vmul.f32 0.5, %v5338_v47  ;;  %v1044_v43 = vsel %vm5545_vm11, %v4093_v48, %v1040_v57  ;;  %v406_v48 = vld [vmem:[%s4620_s28 + $0x160] sm:$0xff] }
 0x134   : > { %v2417_v18 = vmul.f32 %v2416_v26, %v5536_v24  ;;  %v1049_v59 = vsel %vm5517_vm9, %v1048_v60, %v1044_v43  ;;  %v5561_v54 = vmul.f32 0.5, %v5421_v52  ;;  %4094 = vrcp.f32 %v2395_v20 }
 0x135   : > { %v5564_v13 = vmul.f32 0.5, %v5449_v36  ;;  %3606 = vmatmul.f32.gmra.mxu3 %v3358_v44  ;;  %v1050_v39 = vmul.f32 %v1049_v59, %v5498_v55  ;;  %v5568_v47 = vmul.f32 %v2384_v17, %v5432_v53  ;;  %v1062_v34 = vadd.f32 0.18741608, %v1061_v5 }
 0x136   : > { %v1073_v1 = vadd.f32 0.4994258, %v1072_v38  ;;  %v5571_v4 = vmul.f32 0.5, %v5494_v14  ;;  %v2418_v29 = vadd.f32 0.0036580483, %v2417_v18  ;;  %v2428_v42 = vmul.f32 %v2427_v16, %v5536_v24 }
 0x137   : > { %v5574_v52 = vmin.f32 %v1093_v0, 16.0  ;;  %v3843_v21 = vclamps-f32 %v1050_v39, 1.0  ;;  %v2405_v36 = vand.u32 2147483647, %v2395_v20  ;;  %v1063_v25 = vmul.f32 %v1062_v34, %v5491_v32 }
 0x138   : > { %v1074_v55 = vmul.f32 %v1073_v1, %v5491_v32  ;;  %v2419_v53 = vmul.f32 %v2418_v29, %v5536_v24  ;;  %v2429_v40 = vadd.f32 0.014752088, %v2428_v42  ;;  %v2407_v41 = vand.u32 2147483648, %v2395_v20 }
 0x139   : > { %v1095_v33 = vmul.f32 2.1237322e-06, %v5574_v52  ;;  %v1106_v14 = vmul.f32 3.8918573e-05, %v5574_v52  ;;  %v3261_v58 = vadd.f32 1.0, %v3843_v21  ;;  %v476_v15 = vmul.f32 %v4640_v22, %v406_v48 }
 0x13a   : > { %v5582_v30 = vadd.f32 1.0, %v1074_v55  ;;  %v4095_v51 = vpop.eup %4094  ;;  %v2420_v2 = vadd.f32 0.05243302, %v2419_v53  ;;  %v2430_v50 = vmul.f32 %v2429_v40, %v5536_v24  ;;  %vm2401_vm12 = vweird.f32 %v2395_v20  ;;  %v407_v40 = vld [vmem:[%s4620_s28 + $0x168] sm:$0xff] }
 0x13b   : > { %v1096_v63 = vadd.f32 0.00028619796, %v1095_v33  ;;  %v1107_v32 = vadd.f32 0.001143296, %v1106_v14  ;;  %v3325_v3 = vmul.f32 %v3261_v58, %v573_v7  ;;  %v2397_v60 = vmul.f32 %v4095_v51, %v2395_v20 }
 0x13c   : > { %vm5586_vm13 = vcmp.eq.f32.partialorder %v2405_v36, 8.507059e+37  ;;  %vm2402_vm14 = vweird.f32 %v4095_v51  ;;  %v1064_v8 = vadd.f32 1.1283791, %v1063_v25  ;;  %4096 = vrcp.f32 %v5582_v30 }
 0x13d   : > { %v1085_v37 = vand.u32 2147483647, %v5582_v30  ;;  %3445 = vmatmul.f32.gmra.mxu0 %v3325_v3  ;;  %v2398_v11 = vsub.f32 1.0, %v2397_v60  ;;  %v2421_v6 = vmul.f32 %v2420_v2, %v5536_v24  ;;  %v2431_v12 = vadd.f32 0.112945676, %v2430_v50  ;;  %vm5603_vm15 = vmor %vm2401_vm12, %vm2402_vm14 }
 0x13e   : > { %v1097_v0 = vmul.f32 %v1096_v63, %v5574_v52  ;;  %v2408_v46 = vor.u32 1.1754944e-38, %v2407_v41  ;;  %v1087_v35 = vand.u32 2147483648, %v5582_v30  ;;  %v1108_v56 = vmul.f32 %v1107_v32, %v5574_v52 }
 0x13f   : > { %v5598_v10 = vadd.f32 %v4647_v27, %v476_v15  ;;  %v2399_v31 = vmul.f32 %v4095_v51, %v2398_v11  ;;  %v2422_v57 = vadd.f32 0.18741608, %v2421_v6  ;;  %v2432_v17 = vmul.f32 %v2431_v12, %v5536_v24 }
 0x140   : > { %v1098_v26 = vadd.f32 0.0036580483, %v1097_v0  ;;  %v1065_v38 = vmul.f32 %v1064_v8, %v5470_v62  ;;  %v1109_v16 = vadd.f32 0.014752088, %v1108_v56  ;;  %v443_v7 = vmul.f32 %v4642_v23, %v373_v61 }
 0x141   : > { %v5609_v44 = vmul.f32 0.70710677, %v5598_v10  ;;  %v2400_v43 = vadd.f32 %v4095_v51, %v2399_v31  ;;  %vm1081_vm0 = vweird.f32 %v5582_v30  ;;  %vm5613_vm1 = vcmp.eq.f32.partialorder %v1085_v37, 8.507059e+37 }
 0x142   : > { %v2433_v20 = vadd.f32 0.4994258, %v2432_v17  ;;  %v4097_v59 = vpop.eup %4096  ;;  %v2423_v39 = vmul.f32 %v2422_v57, %v5536_v24  ;;  %v1099_v62 = vmul.f32 %v1098_v26, %v5574_v52  ;;  %v1110_v34 = vmul.f32 %v1109_v16, %v5574_v52  ;;  %v374_v26 = vld [vmem:[%s4620_s28 + $0x60] sm:$0xff] }
 0x143   : > { %v2453_v1 = vmul.f32 %v5609_v44, %v5609_v44  ;;  %v2404_v29 = vsel %vm5603_vm15, %v4095_v51, %v2400_v43  ;;  %v1077_v42 = vmul.f32 %v4097_v59, %v5582_v30  ;;  %v1088_v48 = vor.u32 1.1754944e-38, %v1087_v35 }
 0x144   : > { %v5626_v21 = vadd.f32 %v4649_v28, %v443_v7  ;;  %v2409_v36 = vsel %vm5586_vm13, %v2408_v46, %v2404_v29  ;;  %v2434_v25 = vmul.f32 %v2433_v20, %v5536_v24  ;;  %v1100_v55 = vadd.f32 0.05243302, %v1099_v62 }
 0x145   : > { %v1111_v53 = vadd.f32 0.112945676, %v1110_v34  ;;  %v2410_v33 = vmul.f32 %v2409_v36, %v5568_v47  ;;  %v1078_v14 = vsub.f32 1.0, %v1077_v42  ;;  %vm1082_vm2 = vweird.f32 %v4097_v59 }
 0x146   : > { %v5633_v58 = vmin.f32 %v2453_v1, 16.0  ;;  %v2424_v41 = vadd.f32 1.1283791, %v2423_v39  ;;  %v2435_v15 = vadd.f32 1.0, %v2434_v25  ;;  %v1101_v51 = vmul.f32 %v1100_v55, %v5574_v52  ;;  %vm5641_vm3 = vmor %vm1081_vm0, %vm1082_vm2 }
 0x147   : > { %v1112_v2 = vmul.f32 %v1111_v53, %v5574_v52  ;;  %v3877_v50 = vclamps-f32 %v2410_v33, 1.0  ;;  %v1079_v63 = vmul.f32 %v4097_v59, %v1078_v14  ;;  %v477_v24 = vmul.f32 %v4642_v23, %v407_v40 }
 0x148   : > { %v2455_v32 = vmul.f32 2.1237322e-06, %v5633_v58  ;;  %4098 = vrcp.f32 %v2435_v15  ;;  %v2445_v3 = vand.u32 2147483647, %v2435_v15  ;;  %v2466_v60 = vmul.f32 3.8918573e-05, %v5633_v58 }
 0x149   : > { %v5647_v19 = vmul.f32 0.70710677, %v5626_v21  ;;  %v3295_v8 = vadd.f32 1.0, %v3877_v50  ;;  %v1080_v37 = vadd.f32 %v4097_v59, %v1079_v63  ;;  %v1102_v11 = vadd.f32 0.18741608, %v1101_v51 }
 0x14a   : > { %v1113_v6 = vadd.f32 0.4994258, %v1112_v2  ;;  %v5650_v12 = vmul.f32 %v2424_v41, %v5512_v49  ;;  %vm2441_vm4 = vweird.f32 %v2435_v15  ;;  %v2447_v30 = vand.u32 2147483648, %v2435_v15 }
 0x14b   : > { %v2456_v0 = vadd.f32 0.00028619796, %v2455_v32  ;;  %v3359_v61 = vmul.f32 %v3295_v8, %v5561_v54  ;;  %v1084_v46 = vsel %vm5641_vm3, %v4097_v59, %v1080_v37  ;;  %v1103_v35 = vmul.f32 %v1102_v11, %v5574_v52 }
 0x14c   : > { %v1114_v56 = vmul.f32 %v1113_v6, %v5574_v52  ;;  %v1089_v31 = vsel %vm5613_vm1, %v1088_v48, %v1084_v46  ;;  %v2467_v17 = vadd.f32 0.001143296, %v2466_v60  ;;  %v1133_v49 = vmul.f32 %v5647_v19, %v5647_v19 }
 0x14d   : > { %v2457_v57 = vmul.f32 %v2456_v0, %v5633_v58  ;;  %3496 = vmatmul.f32.gmra.mxu2 %v3359_v61  ;;  %v1090_v5 = vmul.f32 %v1089_v31, %v1065_v38  ;;  %vm5663_vm5 = vcmp.eq.f32.partialorder %v2445_v3, 8.507059e+37  ;;  %v1104_v16 = vadd.f32 1.1283791, %v1103_v35 }
 0x14e   : > { %v1115_v7 = vadd.f32 1.0, %v1114_v56  ;;  %v4099_v43 = vpop.eup %4098  ;;  %v2448_v52 = vor.u32 1.1754944e-38, %v2447_v30  ;;  %v2468_v18 = vmul.f32 %v2467_v17, %v5633_v58  ;;  %v5668_v59 = vmin.f32 %v1133_v49, 16.0 }
 0x14f   : > { %v2458_v20 = vadd.f32 0.0036580483, %v2457_v57  ;;  %v3844_v39 = vclamps-f32 %v1090_v5, 1.0  ;;  %v2437_v62 = vmul.f32 %v4099_v43, %v2435_v15  ;;  %v5671_v34 = vadd.f32 %v4649_v28, %v477_v24 }
 0x150   : > { %v444_v38 = vmul.f32 %v4640_v22, %v374_v26  ;;  %vm2442_vm6 = vweird.f32 %v4099_v43  ;;  %v5675_v1 = vmul.f32 %v1104_v16, %v5527_v45  ;;  %4100 = vrcp.f32 %v1115_v7 }
 0x151   : > { %v1125_v29 = vand.u32 2147483647, %v1115_v7  ;;  %v3262_v42 = vadd.f32 1.0, %v3844_v39  ;;  %v2438_v48 = vsub.f32 1.0, %v2437_v62  ;;  %v2459_v36 = vmul.f32 %v2458_v20, %v5633_v58  ;;  %vm5684_vm8 = vmor %vm2441_vm4, %vm2442_vm6 }
 0x152   : > { %v2469_v25 = vadd.f32 0.014752088, %v2468_v18  ;;  %vm1121_vm7 = vweird.f32 %v1115_v7  ;;  %v1127_v55 = vand.u32 2147483648, %v1115_v7  ;;  %v1135_v53 = vmul.f32 2.1237322e-06, %v5668_v59 }
 0x153   : > { %v1146_v40 = vmul.f32 3.8918573e-05, %v5668_v59  ;;  %v3326_v33 = vmul.f32 %v3262_v42, %v5564_v13  ;;  %v2439_v14 = vmul.f32 %v4099_v43, %v2438_v48  ;;  %v2460_v41 = vadd.f32 0.05243302, %v2459_v36 }
 0x154   : > { %v2470_v45 = vmul.f32 %v2469_v25, %v5633_v58  ;;  %v1136_v2 = vadd.f32 0.00028619796, %v1135_v53  ;;  %v5689_v63 = vmul.f32 0.70710677, %v5671_v34  ;;  %v5692_v32 = vadd.f32 %v4647_v27, %v444_v38 }
 0x155   : > { %v1147_v50 = vadd.f32 0.001143296, %v1146_v40  ;;  %3558 = vmatmul.f32.gmra.mxu1 %v3326_v33  ;;  %v2440_v13 = vadd.f32 %v4099_v43, %v2439_v14  ;;  %vm5694_vm9 = vcmp.eq.f32.partialorder %v1125_v29, 8.507059e+37  ;;  %v2461_v15 = vmul.f32 %v2460_v41, %v5633_v58 }
 0x156   : > { %v2471_v47 = vadd.f32 0.112945676, %v2470_v45  ;;  %v4101_v3 = vpop.eup %4100  ;;  %v1137_v60 = vmul.f32 %v1136_v2, %v5668_v59  ;;  %v2493_v37 = vmul.f32 %v5689_v63, %v5689_v63  ;;  %v5704_v11 = vmul.f32 0.70710677, %v5692_v32 }
 0x157   : > { %v1148_v8 = vmul.f32 %v1147_v50, %v5668_v59  ;;  %v2444_v6 = vsel %vm5684_vm8, %v4099_v43, %v2440_v13  ;;  %v1117_v30 = vmul.f32 %v4101_v3, %v1115_v7  ;;  %vm1122_vm10 = vweird.f32 %v4101_v3 }
 0x158   : > { %v2462_v0 = vadd.f32 0.18741608, %v2461_v15  ;;  %v2449_v61 = vsel %vm5663_vm5, %v2448_v52, %v2444_v6  ;;  %v2472_v46 = vmul.f32 %v2471_v47, %v5633_v58  ;;  %v1138_v35 = vadd.f32 0.0036580483, %v1137_v60  ;;  %vm5722_vm11 = vmor %vm1121_vm7, %vm1122_vm10 }
 0x159   : > { %v1149_v56 = vadd.f32 0.014752088, %v1148_v8  ;;  %v2450_v31 = vmul.f32 %v2449_v61, %v5650_v12  ;;  %v1118_v57 = vsub.f32 1.0, %v1117_v30  ;;  %v5713_v49 = vmin.f32 %v2493_v37, 16.0  ;;  %v375_v12 = vld [vmem:[%s4620_s28 + $0x68] sm:$0xff] }
 0x15a   : > { %v2463_v17 = vmul.f32 %v2462_v0, %v5633_v58  ;;  %v1128_v26 = vor.u32 1.1754944e-38, %v1127_v55  ;;  %v2473_v5 = vadd.f32 0.4994258, %v2472_v46  ;;  %v1139_v16 = vmul.f32 %v1138_v35, %v5668_v59 }
 0x15b   : > { %v1150_v43 = vmul.f32 %v1149_v56, %v5668_v59  ;;  %v3878_v20 = vclamps-f32 %v2450_v31, 1.0  ;;  %v1119_v54 = vmul.f32 %v4101_v3, %v1118_v57  ;;  %v2495_v52 = vmul.f32 2.1237322e-06, %v5713_v49 }
 0x15c   : > { %v1173_v18 = vmul.f32 %v5704_v11, %v5704_v11  ;;  %v2474_v39 = vmul.f32 %v2473_v5, %v5633_v58  ;;  %v1140_v62 = vadd.f32 0.05243302, %v1139_v16  ;;  %v2506_v29 = vmul.f32 3.8918573e-05, %v5713_v49 }
 0x15d   : > { %v1151_v38 = vadd.f32 0.112945676, %v1150_v43  ;;  %v3296_v42 = vadd.f32 1.0, %v3878_v20  ;;  %v1120_v48 = vadd.f32 %v4101_v3, %v1119_v54  ;;  %v2464_v36 = vadd.f32 1.1283791, %v2463_v17 }
 0x15e   : > { %v2496_v25 = vadd.f32 0.00028619796, %v2495_v52  ;;  %v2475_v55 = vadd.f32 1.0, %v2474_v39  ;;  %v1141_v53 = vmul.f32 %v1140_v62, %v5668_v59  ;;  %v2507_v7 = vadd.f32 0.001143296, %v2506_v29 }
 0x15f   : > { %v1152_v40 = vmul.f32 %v1151_v38, %v5668_v59  ;;  %v3360_v33 = vmul.f32 %v3296_v42, %v5571_v4  ;;  %v575_v14 = vmul.f32 0.5, %v5515_v9  ;;  %v1124_v58 = vsel %vm5722_vm11, %v4101_v3, %v1120_v48  ;;  %v408_v3 = vld [vmem:[%s4620_s28 + $0x170] sm:$0xff] }
 0x160   : > { %v2497_v41 = vmul.f32 %v2496_v25, %v5713_v49  ;;  %v1129_v45 = vsel %vm5694_vm9, %v1128_v26, %v1124_v58  ;;  %v5738_v51 = vmul.f32 0.5, %v5598_v10  ;;  %4102 = vrcp.f32 %v2475_v55 }
 0x161   : > { %v5741_v2 = vmul.f32 0.5, %v5626_v21  ;;  %3609 = vmatmul.f32.gmra.mxu3 %v3360_v33  ;;  %v1130_v4 = vmul.f32 %v1129_v45, %v5675_v1  ;;  %v5745_v9 = vmul.f32 %v2464_v36, %v5609_v44  ;;  %v1142_v50 = vadd.f32 0.18741608, %v1141_v53 }
 0x162   : > { %v1153_v13 = vadd.f32 0.4994258, %v1152_v40  ;;  %v5748_v15 = vmul.f32 0.5, %v5671_v34  ;;  %v2498_v24 = vadd.f32 0.0036580483, %v2497_v41  ;;  %v2508_v47 = vmul.f32 %v2507_v7, %v5713_v49 }
 0x163   : > { %v5751_v10 = vmin.f32 %v1173_v18, 16.0  ;;  %v3845_v60 = vclamps-f32 %v1130_v4, 1.0  ;;  %v2485_v21 = vand.u32 2147483647, %v2475_v55  ;;  %v1143_v8 = vmul.f32 %v1142_v50, %v5668_v59 }
 0x164   : > { %v1154_v1 = vmul.f32 %v1153_v13, %v5668_v59  ;;  %v2499_v44 = vmul.f32 %v2498_v24, %v5713_v49  ;;  %v2509_v37 = vadd.f32 0.014752088, %v2508_v47  ;;  %v2487_v0 = vand.u32 2147483648, %v2475_v55 }
 0x165   : > { %v1175_v6 = vmul.f32 2.1237322e-06, %v5751_v10  ;;  %v1186_v34 = vmul.f32 3.8918573e-05, %v5751_v10  ;;  %v3263_v30 = vadd.f32 1.0, %v3845_v60  ;;  %v478_v46 = vmul.f32 %v4640_v22, %v408_v3 }
 0x166   : > { %v5759_v61 = vadd.f32 1.0, %v1154_v1  ;;  %v4103_v35 = vpop.eup %4102  ;;  %v2500_v56 = vadd.f32 0.05243302, %v2499_v44  ;;  %v2510_v31 = vmul.f32 %v2509_v37, %v5713_v49  ;;  %vm2481_vm12 = vweird.f32 %v2475_v55  ;;  %v409_v37 = vld [vmem:[%s4620_s28 + $0x178] sm:$0xff] }
 0x167   : > { %v1176_v57 = vadd.f32 0.00028619796, %v1175_v6  ;;  %v1187_v59 = vadd.f32 0.001143296, %v1186_v34  ;;  %v3327_v17 = vmul.f32 %v3263_v30, %v575_v14  ;;  %v2477_v26 = vmul.f32 %v4103_v35, %v2475_v55 }
 0x168   : > { %vm5763_vm13 = vcmp.eq.f32.partialorder %v2485_v21, 8.507059e+37  ;;  %vm2482_vm14 = vweird.f32 %v4103_v35  ;;  %v1144_v16 = vadd.f32 1.1283791, %v1143_v8  ;;  %4104 = vrcp.f32 %v5759_v61 }
 0x169   : > { %v1165_v43 = vand.u32 2147483647, %v5759_v61  ;;  %3448 = vmatmul.f32.gmra.mxu0 %v3327_v17  ;;  %v2478_v20 = vsub.f32 1.0, %v2477_v26  ;;  %v2501_v54 = vmul.f32 %v2500_v56, %v5713_v49  ;;  %v2511_v52 = vadd.f32 0.112945676, %v2510_v31  ;;  %vm5780_vm15 = vmor %vm2481_vm12, %vm2482_vm14 }
 0x16a   : > { %v1177_v18 = vmul.f32 %v1176_v57, %v5751_v10  ;;  %v2488_v39 = vor.u32 1.1754944e-38, %v2487_v0  ;;  %v1167_v62 = vand.u32 2147483648, %v5759_v61  ;;  %v1188_v38 = vmul.f32 %v1187_v59, %v5751_v10 }
 0x16b   : > { %v5775_v29 = vadd.f32 %v4647_v27, %v478_v46  ;;  %v2479_v42 = vmul.f32 %v4103_v35, %v2478_v20  ;;  %v2502_v48 = vadd.f32 0.18741608, %v2501_v54  ;;  %v2512_v36 = vmul.f32 %v2511_v52, %v5713_v49 }
 0x16c   : > { %v1178_v25 = vadd.f32 0.0036580483, %v1177_v18  ;;  %v1145_v40 = vmul.f32 %v1144_v16, %v5647_v19  ;;  %v1189_v7 = vadd.f32 0.014752088, %v1188_v38  ;;  %v445_v14 = vmul.f32 %v4642_v23, %v375_v12 }
 0x16d   : > { %v5786_v33 = vmul.f32 0.70710677, %v5775_v29  ;;  %v2480_v58 = vadd.f32 %v4103_v35, %v2479_v42  ;;  %vm1161_vm0 = vweird.f32 %v5759_v61  ;;  %vm5790_vm1 = vcmp.eq.f32.partialorder %v1165_v43, 8.507059e+37 }
 0x16e   : > { %v2513_v55 = vadd.f32 0.4994258, %v2512_v36  ;;  %v4105_v45 = vpop.eup %4104  ;;  %v2503_v4 = vmul.f32 %v2502_v48, %v5713_v49  ;;  %v1179_v19 = vmul.f32 %v1178_v25, %v5751_v10  ;;  %v1190_v50 = vmul.f32 %v1189_v7, %v5751_v10  ;;  %v376_v25 = vld [vmem:[%s4620_s28 + $0x70] sm:$0xff] }
 0x16f   : > { %v2533_v13 = vmul.f32 %v5786_v33, %v5786_v33  ;;  %v2484_v24 = vsel %vm5780_vm15, %v4103_v35, %v2480_v58  ;;  %v1157_v47 = vmul.f32 %v4105_v45, %v5759_v61  ;;  %v1168_v3 = vor.u32 1.1754944e-38, %v1167_v62 }
 0x170   : > { %v5803_v60 = vadd.f32 %v4649_v28, %v445_v14  ;;  %v2489_v21 = vsel %vm5763_vm13, %v2488_v39, %v2484_v24  ;;  %v2514_v8 = vmul.f32 %v2513_v55, %v5713_v49  ;;  %v1180_v1 = vadd.f32 0.05243302, %v1179_v19 }
 0x171   : > { %v1191_v44 = vadd.f32 0.112945676, %v1190_v50  ;;  %v2490_v6 = vmul.f32 %v2489_v21, %v5745_v9  ;;  %v1158_v34 = vsub.f32 1.0, %v1157_v47  ;;  %vm1162_vm2 = vweird.f32 %v4105_v45 }
 0x172   : > { %v5810_v30 = vmin.f32 %v2533_v13, 16.0  ;;  %v2504_v0 = vadd.f32 1.1283791, %v2503_v4  ;;  %v2515_v46 = vadd.f32 1.0, %v2514_v8  ;;  %v1181_v35 = vmul.f32 %v1180_v1, %v5751_v10  ;;  %vm5818_vm3 = vmor %vm1161_vm0, %vm1162_vm2 }
 0x173   : > { %v1192_v56 = vmul.f32 %v1191_v44, %v5751_v10  ;;  %v3879_v31 = vclamps-f32 %v2490_v6, 1.0  ;;  %v1159_v57 = vmul.f32 %v4105_v45, %v1158_v34  ;;  %v479_v49 = vmul.f32 %v4642_v23, %v409_v37 }
 0x174   : > { %v2535_v59 = vmul.f32 2.1237322e-06, %v5810_v30  ;;  %4106 = vrcp.f32 %v2515_v46  ;;  %v2525_v17 = vand.u32 2147483647, %v2515_v46  ;;  %v2546_v26 = vmul.f32 3.8918573e-05, %v5810_v30 }
 0x175   : > { %v5824_v5 = vmul.f32 0.70710677, %v5803_v60  ;;  %v3297_v16 = vadd.f32 1.0, %v3879_v31  ;;  %v1160_v43 = vadd.f32 %v4105_v45, %v1159_v57  ;;  %v1182_v20 = vadd.f32 0.18741608, %v1181_v35 }
 0x176   : > { %v1193_v54 = vadd.f32 0.4994258, %v1192_v56  ;;  %v5827_v52 = vmul.f32 %v2504_v0, %v5689_v63  ;;  %vm2521_vm4 = vweird.f32 %v2515_v46  ;;  %v2527_v61 = vand.u32 2147483648, %v2515_v46 }
 0x177   : > { %v2536_v18 = vadd.f32 0.00028619796, %v2535_v59  ;;  %v3361_v12 = vmul.f32 %v3297_v16, %v5738_v51  ;;  %v1164_v39 = vsel %vm5818_vm3, %v4105_v45, %v1160_v43  ;;  %v1183_v62 = vmul.f32 %v1182_v20, %v5751_v10 }
 0x178   : > { %v1194_v38 = vmul.f32 %v1193_v54, %v5751_v10  ;;  %v1169_v42 = vsel %vm5790_vm1, %v1168_v3, %v1164_v39  ;;  %v2547_v36 = vadd.f32 0.001143296, %v2546_v26  ;;  %v1213_v63 = vmul.f32 %v5824_v5, %v5824_v5 }
 0x179   : > { %v2537_v48 = vmul.f32 %v2536_v18, %v5810_v30  ;;  %3499 = vmatmul.f32.gmra.mxu2 %v3361_v12  ;;  %v1170_v53 = vmul.f32 %v1169_v42, %v1145_v40  ;;  %vm5840_vm5 = vcmp.eq.f32.partialorder %v2525_v17, 8.507059e+37  ;;  %v1184_v7 = vadd.f32 1.1283791, %v1183_v62 }
 0x17a   : > { %v1195_v14 = vadd.f32 1.0, %v1194_v38  ;;  %v4107_v58 = vpop.eup %4106  ;;  %v2528_v10 = vor.u32 1.1754944e-38, %v2527_v61  ;;  %v2548_v41 = vmul.f32 %v2547_v36, %v5810_v30  ;;  %v5845_v45 = vmin.f32 %v1213_v63, 16.0 }
 0x17b   : > { %v2538_v55 = vadd.f32 0.0036580483, %v2537_v48  ;;  %v3846_v4 = vclamps-f32 %v1170_v53, 1.0  ;;  %v2517_v19 = vmul.f32 %v4107_v58, %v2515_v46  ;;  %v5848_v50 = vadd.f32 %v4649_v28, %v479_v49 }
 0x17c   : > { %v446_v40 = vmul.f32 %v4640_v22, %v376_v25  ;;  %vm2522_vm6 = vweird.f32 %v4107_v58  ;;  %v5852_v13 = vmul.f32 %v1184_v7, %v5704_v11  ;;  %4108 = vrcp.f32 %v1195_v14 }
 0x17d   : > { %v1205_v24 = vand.u32 2147483647, %v1195_v14  ;;  %v3264_v47 = vadd.f32 1.0, %v3846_v4  ;;  %v2518_v3 = vsub.f32 1.0, %v2517_v19  ;;  %v2539_v21 = vmul.f32 %v2538_v55, %v5810_v30  ;;  %vm5861_vm8 = vmor %vm2521_vm4, %vm2522_vm6 }
 0x17e   : > { %v2549_v8 = vadd.f32 0.014752088, %v2548_v41  ;;  %vm1201_vm7 = vweird.f32 %v1195_v14  ;;  %v1207_v1 = vand.u32 2147483648, %v1195_v14  ;;  %v1215_v44 = vmul.f32 2.1237322e-06, %v5845_v45 }
 0x17f   : > { %v1226_v37 = vmul.f32 3.8918573e-05, %v5845_v45  ;;  %v3328_v6 = vmul.f32 %v3264_v47, %v5741_v2  ;;  %v2519_v34 = vmul.f32 %v4107_v58, %v2518_v3  ;;  %v2540_v0 = vadd.f32 0.05243302, %v2539_v21 }
 0x180   : > { %v2550_v11 = vmul.f32 %v2549_v8, %v5810_v30  ;;  %v1216_v56 = vadd.f32 0.00028619796, %v1215_v44  ;;  %v5866_v57 = vmul.f32 0.70710677, %v5848_v50  ;;  %v5869_v59 = vadd.f32 %v4647_v27, %v446_v40 }
 0x181   : > { %v1227_v31 = vadd.f32 0.001143296, %v1226_v37  ;;  %3561 = vmatmul.f32.gmra.mxu1 %v3328_v6  ;;  %v2520_v2 = vadd.f32 %v4107_v58, %v2519_v34  ;;  %vm5871_vm9 = vcmp.eq.f32.partialorder %v1205_v24, 8.507059e+37  ;;  %v2541_v46 = vmul.f32 %v2540_v0, %v5810_v30 }
 0x182   : > { %v2551_v9 = vadd.f32 0.112945676, %v2550_v11  ;;  %v4109_v17 = vpop.eup %4108  ;;  %v1217_v26 = vmul.f32 %v1216_v56, %v5845_v45  ;;  %v2573_v43 = vmul.f32 %v5866_v57, %v5866_v57  ;;  %v5881_v20 = vmul.f32 0.70710677, %v5869_v59 }
 0x183   : > { %v1228_v16 = vmul.f32 %v1227_v31, %v5845_v45  ;;  %v2524_v54 = vsel %vm5861_vm8, %v4107_v58, %v2520_v2  ;;  %v1197_v61 = vmul.f32 %v4109_v17, %v1195_v14  ;;  %vm1202_vm10 = vweird.f32 %v4109_v17 }
 0x184   : > { %v2542_v18 = vadd.f32 0.18741608, %v2541_v46  ;;  %v2529_v12 = vsel %vm5840_vm5, %v2528_v10, %v2524_v54  ;;  %v2552_v39 = vmul.f32 %v2551_v9, %v5810_v30  ;;  %v1218_v62 = vadd.f32 0.0036580483, %v1217_v26  ;;  %vm5899_vm11 = vmor %vm1201_vm7, %vm1202_vm10 }
 0x185   : > { %v1229_v38 = vadd.f32 0.014752088, %v1228_v16  ;;  %v2530_v42 = vmul.f32 %v2529_v12, %v5827_v52  ;;  %v1198_v48 = vsub.f32 1.0, %v1197_v61  ;;  %v5890_v63 = vmin.f32 %v2573_v43, 16.0  ;;  %v377_v52 = vld [vmem:[%s4620_s28 + $0x78] sm:$0xff] }
 0x186   : > { %v2543_v36 = vmul.f32 %v2542_v18, %v5810_v30  ;;  %v1208_v25 = vor.u32 1.1754944e-38, %v1207_v1  ;;  %v2553_v53 = vadd.f32 0.4994258, %v2552_v39  ;;  %v1219_v7 = vmul.f32 %v1218_v62, %v5845_v45 }
 0x187   : > { %v1230_v58 = vmul.f32 %v1229_v38, %v5845_v45  ;;  %v3880_v55 = vclamps-f32 %v2530_v42, 1.0  ;;  %v1199_v51 = vmul.f32 %v4109_v17, %v1198_v48  ;;  %v2575_v10 = vmul.f32 2.1237322e-06, %v5890_v63 }
 0x188   : > { %v1253_v41 = vmul.f32 %v5881_v20, %v5881_v20  ;;  %v2554_v4 = vmul.f32 %v2553_v53, %v5810_v30  ;;  %v1220_v19 = vadd.f32 0.05243302, %v1219_v7  ;;  %v2586_v24 = vmul.f32 3.8918573e-05, %v5890_v63 }
 0x189   : > { %v1231_v40 = vadd.f32 0.112945676, %v1230_v58  ;;  %v3298_v47 = vadd.f32 1.0, %v3880_v55  ;;  %v1200_v3 = vadd.f32 %v4109_v17, %v1199_v51  ;;  %v2544_v21 = vadd.f32 1.1283791, %v2543_v36 }
 0x18a   : > { %v2576_v8 = vadd.f32 0.00028619796, %v2575_v10  ;;  %v2555_v1 = vadd.f32 1.0, %v2554_v4  ;;  %v1221_v44 = vmul.f32 %v1220_v19, %v5845_v45  ;;  %v2587_v14 = vadd.f32 0.001143296, %v2586_v24 }
 0x18b   : > { %v1232_v37 = vmul.f32 %v1231_v40, %v5845_v45  ;;  %v3362_v6 = vmul.f32 %v3298_v47, %v5748_v15  ;;  %v577_v34 = vmul.f32 0.5, %v5692_v32  ;;  %v1204_v30 = vsel %vm5899_vm11, %v4109_v17, %v1200_v3  ;;  %v410_v17 = vld [vmem:[%s4620_s28 + $0x180] sm:$0xff] }
 0x18c   : > { %v2577_v0 = vmul.f32 %v2576_v8, %v5890_v63  ;;  %v1209_v11 = vsel %vm5871_vm9, %v1208_v25, %v1204_v30  ;;  %v5915_v35 = vmul.f32 0.5, %v5775_v29  ;;  %4110 = vrcp.f32 %v2555_v1 }
 0x18d   : > { %v5918_v56 = vmul.f32 0.5, %v5803_v60  ;;  %3612 = vmatmul.f32.gmra.mxu3 %v3362_v6  ;;  %v1210_v15 = vmul.f32 %v1209_v11, %v5852_v13  ;;  %v5922_v32 = vmul.f32 %v2544_v21, %v5786_v33  ;;  %v1222_v31 = vadd.f32 0.18741608, %v1221_v44 }
 0x18e   : > { %v1233_v2 = vadd.f32 0.4994258, %v1232_v37  ;;  %v5925_v46 = vmul.f32 0.5, %v5848_v50  ;;  %v2578_v49 = vadd.f32 0.0036580483, %v2577_v0  ;;  %v2588_v9 = vmul.f32 %v2587_v14, %v5890_v63 }
 0x18f   : > { %v5928_v29 = vmin.f32 %v1253_v41, 16.0  ;;  %v3847_v26 = vclamps-f32 %v1210_v15, 1.0  ;;  %v2565_v60 = vand.u32 2147483647, %v2555_v1  ;;  %v1223_v16 = vmul.f32 %v1222_v31, %v5845_v45 }
 0x190   : > { %v1234_v13 = vmul.f32 %v1233_v2, %v5845_v45  ;;  %v2579_v33 = vmul.f32 %v2578_v49, %v5890_v63  ;;  %v2589_v43 = vadd.f32 0.014752088, %v2588_v9  ;;  %v2567_v18 = vand.u32 2147483648, %v2555_v1 }
 0x191   : > { %v1255_v54 = vmul.f32 2.1237322e-06, %v5928_v29  ;;  %v1266_v50 = vmul.f32 3.8918573e-05, %v5928_v29  ;;  %v3265_v61 = vadd.f32 1.0, %v3847_v26  ;;  %v480_v39 = vmul.f32 %v4640_v22, %v410_v17 }
 0x192   : > { %v5936_v12 = vadd.f32 1.0, %v1234_v13  ;;  %v4111_v62 = vpop.eup %4110  ;;  %v2580_v38 = vadd.f32 0.05243302, %v2579_v33  ;;  %v2590_v42 = vmul.f32 %v2589_v43, %v5890_v63  ;;  %vm2561_vm12 = vweird.f32 %v2555_v1  ;;  %v411_v43 = vld [vmem:[%s4620_s28 + $0x188] sm:$0xff] }
 0x193   : > { %v1256_v48 = vadd.f32 0.00028619796, %v1255_v54  ;;  %v1267_v45 = vadd.f32 0.001143296, %v1266_v50  ;;  %v3329_v36 = vmul.f32 %v3265_v61, %v577_v34  ;;  %v2557_v25 = vmul.f32 %v4111_v62, %v2555_v1 }
 0x194   : > { %vm5940_vm13 = vcmp.eq.f32.partialorder %v2565_v60, 8.507059e+37  ;;  %vm2562_vm14 = vweird.f32 %v4111_v62  ;;  %v1224_v7 = vadd.f32 1.1283791, %v1223_v16  ;;  %4112 = vrcp.f32 %v5936_v12 }
 0x195   : > { %v1245_v58 = vand.u32 2147483647, %v5936_v12  ;;  %3451 = vmatmul.f32.gmra.mxu0 %v3329_v36  ;;  %v2558_v55 = vsub.f32 1.0, %v2557_v25  ;;  %v2581_v51 = vmul.f32 %v2580_v38, %v5890_v63  ;;  %v2591_v10 = vadd.f32 0.112945676, %v2590_v42  ;;  %vm5957_vm15 = vmor %vm2561_vm12, %vm2562_vm14 }
 0x196   : > { %v1257_v41 = vmul.f32 %v1256_v48, %v5928_v29  ;;  %v2568_v4 = vor.u32 1.1754944e-38, %v2567_v18  ;;  %v1247_v19 = vand.u32 2147483648, %v5936_v12  ;;  %v1268_v40 = vmul.f32 %v1267_v45, %v5928_v29 }
 0x197   : > { %v5952_v24 = vadd.f32 %v4647_v27, %v480_v39  ;;  %v2559_v47 = vmul.f32 %v4111_v62, %v2558_v55  ;;  %v2582_v3 = vadd.f32 0.18741608, %v2581_v51  ;;  %v2592_v21 = vmul.f32 %v2591_v10, %v5890_v63 }
 0x198   : > { %v1258_v8 = vadd.f32 0.0036580483, %v1257_v41  ;;  %v1225_v37 = vmul.f32 %v1224_v7, %v5824_v5  ;;  %v1269_v14 = vadd.f32 0.014752088, %v1268_v40  ;;  %v447_v34 = vmul.f32 %v4642_v23, %v377_v52 }
 0x199   : > { %v5963_v6 = vmul.f32 0.70710677, %v5952_v24  ;;  %v2560_v30 = vadd.f32 %v4111_v62, %v2559_v47  ;;  %vm1241_vm0 = vweird.f32 %v5936_v12  ;;  %vm5967_vm1 = vcmp.eq.f32.partialorder %v1245_v58, 8.507059e+37 }
 0x19a   : > { %v2593_v1 = vadd.f32 0.4994258, %v2592_v21  ;;  %v4113_v11 = vpop.eup %4112  ;;  %v2583_v15 = vmul.f32 %v2582_v3, %v5890_v63  ;;  %v1259_v5 = vmul.f32 %v1258_v8, %v5928_v29  ;;  %v1270_v31 = vmul.f32 %v1269_v14, %v5928_v29  ;;  %v378_v8 = vld [vmem:[%s4620_s28 + $0x80] sm:$0xff] }
 0x19b   : > { %v2613_v2 = vmul.f32 %v5963_v6, %v5963_v6  ;;  %v2564_v49 = vsel %vm5957_vm15, %v4111_v62, %v2560_v30  ;;  %v1237_v9 = vmul.f32 %v4113_v11, %v5936_v12  ;;  %v1248_v17 = vor.u32 1.1754944e-38, %v1247_v19 }
 0x19c   : > { %v5980_v26 = vadd.f32 %v4649_v28, %v447_v34  ;;  %v2569_v60 = vsel %vm5940_vm13, %v2568_v4, %v2564_v49  ;;  %v2594_v16 = vmul.f32 %v2593_v1, %v5890_v63  ;;  %v1260_v13 = vadd.f32 0.05243302, %v1259_v5 }
 0x19d   : > { %v1271_v33 = vadd.f32 0.112945676, %v1270_v31  ;;  %v2570_v54 = vmul.f32 %v2569_v60, %v5922_v32  ;;  %v1238_v50 = vsub.f32 1.0, %v1237_v9  ;;  %vm1242_vm2 = vweird.f32 %v4113_v11 }
 0x19e   : > { %v5987_v61 = vmin.f32 %v2613_v2, 16.0  ;;  %v2584_v18 = vadd.f32 1.1283791, %v2583_v15  ;;  %v2595_v39 = vadd.f32 1.0, %v2594_v16  ;;  %v1261_v62 = vmul.f32 %v1260_v13, %v5928_v29  ;;  %vm5995_vm3 = vmor %vm1241_vm0, %vm1242_vm2 }
 0x19f   : > { %v1272_v38 = vmul.f32 %v1271_v33, %v5928_v29  ;;  %v3881_v42 = vclamps-f32 %v2570_v54, 1.0  ;;  %v1239_v48 = vmul.f32 %v4113_v11, %v1238_v50  ;;  %v481_v63 = vmul.f32 %v4642_v23, %v411_v43 }
 0x1a0   : > { %v2615_v45 = vmul.f32 2.1237322e-06, %v5987_v61  ;;  %4114 = vrcp.f32 %v2595_v39  ;;  %v2605_v36 = vand.u32 2147483647, %v2595_v39  ;;  %v2626_v25 = vmul.f32 3.8918573e-05, %v5987_v61 }
 0x1a1   : > { %v6001_v53 = vmul.f32 0.70710677, %v5980_v26  ;;  %v3299_v7 = vadd.f32 1.0, %v3881_v42  ;;  %v1240_v58 = vadd.f32 %v4113_v11, %v1239_v48  ;;  %v1262_v55 = vadd.f32 0.18741608, %v1261_v62 }
 0x1a2   : > { %v1273_v51 = vadd.f32 0.4994258, %v1272_v38  ;;  %v6004_v10 = vmul.f32 %v2584_v18, %v5866_v57  ;;  %vm2601_vm4 = vweird.f32 %v2595_v39  ;;  %v2607_v12 = vand.u32 2147483648, %v2595_v39 }
 0x1a3   : > { %v2616_v41 = vadd.f32 0.00028619796, %v2615_v45  ;;  %v3363_v52 = vmul.f32 %v3299_v7, %v5915_v35  ;;  %v1244_v4 = vsel %vm5995_vm3, %v4113_v11, %v1240_v58  ;;  %v1263_v19 = vmul.f32 %v1262_v55, %v5928_v29 }
 0x1a4   : > { %v1274_v40 = vmul.f32 %v1273_v51, %v5928_v29  ;;  %v1249_v47 = vsel %vm5967_vm1, %v1248_v17, %v1244_v4  ;;  %v2627_v21 = vadd.f32 0.001143296, %v2626_v25  ;;  %v1293_v57 = vmul.f32 %v6001_v53, %v6001_v53 }
 0x1a5   : > { %v2617_v3 = vmul.f32 %v2616_v41, %v5987_v61  ;;  %3502 = vmatmul.f32.gmra.mxu2 %v3363_v52  ;;  %v1250_v44 = vmul.f32 %v1249_v47, %v1225_v37  ;;  %vm6017_vm5 = vcmp.eq.f32.partialorder %v2605_v36, 8.507059e+37  ;;  %v1264_v14 = vadd.f32 1.1283791, %v1263_v19 }
 0x1a6   : > { %v1275_v34 = vadd.f32 1.0, %v1274_v40  ;;  %v4115_v30 = vpop.eup %4114  ;;  %v2608_v29 = vor.u32 1.1754944e-38, %v2607_v12  ;;  %v2628_v0 = vmul.f32 %v2627_v21, %v5987_v61  ;;  %v6022_v11 = vmin.f32 %v1293_v57, 16.0 }
 0x1a7   : > { %v2618_v1 = vadd.f32 0.0036580483, %v2617_v3  ;;  %v3848_v15 = vclamps-f32 %v1250_v44, 1.0  ;;  %v2597_v5 = vmul.f32 %v4115_v30, %v2595_v39  ;;  %v6025_v31 = vadd.f32 %v4649_v28, %v481_v63 }
 0x1a8   : > { %v448_v37 = vmul.f32 %v4640_v22, %v378_v8  ;;  %vm2602_vm6 = vweird.f32 %v4115_v30  ;;  %v6029_v2 = vmul.f32 %v1264_v14, %v5881_v20  ;;  %4116 = vrcp.f32 %v1275_v34 }
 0x1a9   : > { %v1285_v49 = vand.u32 2147483647, %v1275_v34  ;;  %v3266_v9 = vadd.f32 1.0, %v3848_v15  ;;  %v2598_v17 = vsub.f32 1.0, %v2597_v5  ;;  %v2619_v60 = vmul.f32 %v2618_v1, %v5987_v61  ;;  %vm6038_vm8 = vmor %vm2601_vm4, %vm2602_vm6 }
 0x1aa   : > { %v2629_v16 = vadd.f32 0.014752088, %v2628_v0  ;;  %vm1281_vm7 = vweird.f32 %v1275_v34  ;;  %v1287_v13 = vand.u32 2147483648, %v1275_v34  ;;  %v1295_v33 = vmul.f32 2.1237322e-06, %v6022_v11 }
 0x1ab   : > { %v1306_v43 = vmul.f32 3.8918573e-05, %v6022_v11  ;;  %v3330_v54 = vmul.f32 %v3266_v9, %v5918_v56  ;;  %v2599_v50 = vmul.f32 %v4115_v30, %v2598_v17  ;;  %v2620_v18 = vadd.f32 0.05243302, %v2619_v60 }
 0x1ac   : > { %v2630_v20 = vmul.f32 %v2629_v16, %v5987_v61  ;;  %v1296_v38 = vadd.f32 0.00028619796, %v1295_v33  ;;  %v6043_v48 = vmul.f32 0.70710677, %v6025_v31  ;;  %v6046_v45 = vadd.f32 %v4647_v27, %v448_v37 }
 0x1ad   : > { %v1307_v42 = vadd.f32 0.001143296, %v1306_v43  ;;  %3564 = vmatmul.f32.gmra.mxu1 %v3330_v54  ;;  %v2600_v56 = vadd.f32 %v4115_v30, %v2599_v50  ;;  %vm6048_vm9 = vcmp.eq.f32.partialorder %v1285_v49, 8.507059e+37  ;;  %v2621_v39 = vmul.f32 %v2620_v18, %v5987_v61 }
 0x1ae   : > { %v2631_v32 = vadd.f32 0.112945676, %v2630_v20  ;;  %v4117_v36 = vpop.eup %4116  ;;  %v1297_v25 = vmul.f32 %v1296_v38, %v6022_v11  ;;  %v2653_v58 = vmul.f32 %v6043_v48, %v6043_v48  ;;  %v6058_v55 = vmul.f32 0.70710677, %v6046_v45 }
 0x1af   : > { %v1308_v7 = vmul.f32 %v1307_v42, %v6022_v11  ;;  %v2604_v51 = vsel %vm6038_vm8, %v4115_v30, %v2600_v56  ;;  %v1277_v12 = vmul.f32 %v4117_v36, %v1275_v34  ;;  %vm1282_vm10 = vweird.f32 %v4117_v36 }
 0x1b0   : > { %v2622_v41 = vadd.f32 0.18741608, %v2621_v39  ;;  %v2609_v52 = vsel %vm6017_vm5, %v2608_v29, %v2604_v51  ;;  %v2632_v4 = vmul.f32 %v2631_v32, %v5987_v61  ;;  %v1298_v19 = vadd.f32 0.0036580483, %v1297_v25  ;;  %vm6076_vm11 = vmor %vm1281_vm7, %vm1282_vm10 }
 0x1b1   : > { %v1309_v40 = vadd.f32 0.014752088, %v1308_v7  ;;  %v2610_v47 = vmul.f32 %v2609_v52, %v6004_v10  ;;  %v1278_v3 = vsub.f32 1.0, %v1277_v12  ;;  %v6067_v57 = vmin.f32 %v2653_v58, 16.0  ;;  %v379_v10 = vld [vmem:[%s4620_s28 + $0x88] sm:$0xff] }
 0x1b2   : > { %v2623_v21 = vmul.f32 %v2622_v41, %v5987_v61  ;;  %v1288_v8 = vor.u32 1.1754944e-38, %v1287_v13  ;;  %v2633_v44 = vadd.f32 0.4994258, %v2632_v4  ;;  %v1299_v14 = vmul.f32 %v1298_v19, %v6022_v11 }
 0x1b3   : > { %v1310_v30 = vmul.f32 %v1309_v40, %v6022_v11  ;;  %v3882_v1 = vclamps-f32 %v2610_v47, 1.0  ;;  %v1279_v35 = vmul.f32 %v4117_v36, %v1278_v3  ;;  %v2655_v29 = vmul.f32 2.1237322e-06, %v6067_v57 }
 0x1b4   : > { %v1333_v0 = vmul.f32 %v6058_v55, %v6058_v55  ;;  %v2634_v15 = vmul.f32 %v2633_v44, %v5987_v61  ;;  %v1300_v5 = vadd.f32 0.05243302, %v1299_v14  ;;  %v2666_v49 = vmul.f32 3.8918573e-05, %v6067_v57 }
 0x1b5   : > { %v1311_v37 = vadd.f32 0.112945676, %v1310_v30  ;;  %v3300_v9 = vadd.f32 1.0, %v3882_v1  ;;  %v1280_v17 = vadd.f32 %v4117_v36, %v1279_v35  ;;  %v2624_v60 = vadd.f32 1.1283791, %v2623_v21 }
 0x1b6   : > { %v2656_v16 = vadd.f32 0.00028619796, %v2655_v29  ;;  %v2635_v13 = vadd.f32 1.0, %v2634_v15  ;;  %v1301_v33 = vmul.f32 %v1300_v5, %v6022_v11  ;;  %v2667_v34 = vadd.f32 0.001143296, %v2666_v49 }
 0x1b7   : > { %v1312_v43 = vmul.f32 %v1311_v37, %v6022_v11  ;;  %v3364_v54 = vmul.f32 %v3300_v9, %v5925_v46  ;;  %v579_v50 = vmul.f32 0.5, %v5869_v59  ;;  %v1284_v61 = vsel %vm6076_vm11, %v4117_v36, %v1280_v17  ;;  %v412_v36 = vld [vmem:[%s4620_s28 + $0x190] sm:$0xff] }
 0x1b8   : > { %v2657_v18 = vmul.f32 %v2656_v16, %v6067_v57  ;;  %v1289_v20 = vsel %vm6048_vm9, %v1288_v8, %v1284_v61  ;;  %v6092_v62 = vmul.f32 0.5, %v5952_v24  ;;  %4118 = vrcp.f32 %v2635_v13 }
 0x1b9   : > { %v6095_v38 = vmul.f32 0.5, %v5980_v26  ;;  %3615 = vmatmul.f32.gmra.mxu3 %v3364_v54  ;;  %v1290_v46 = vmul.f32 %v1289_v20, %v6029_v2  ;;  %v6099_v59 = vmul.f32 %v2624_v60, %v5963_v6  ;;  %v1302_v42 = vadd.f32 0.18741608, %v1301_v33 }
 0x1ba   : > { %v1313_v56 = vadd.f32 0.4994258, %v1312_v43  ;;  %v6102_v39 = vmul.f32 0.5, %v6025_v31  ;;  %v2658_v63 = vadd.f32 0.0036580483, %v2657_v18  ;;  %v2668_v32 = vmul.f32 %v2667_v34, %v6067_v57 }
 0x1bb   : > { %v6105_v24 = vmin.f32 %v1333_v0, 16.0  ;;  %v3849_v25 = vclamps-f32 %v1290_v46, 1.0  ;;  %v2645_v26 = vand.u32 2147483647, %v2635_v13  ;;  %v1303_v7 = vmul.f32 %v1302_v42, %v6022_v11 }
 0x1bc   : > { %v1314_v2 = vmul.f32 %v1313_v56, %v6022_v11  ;;  %v2659_v6 = vmul.f32 %v2658_v63, %v6067_v57  ;;  %v2669_v58 = vadd.f32 0.014752088, %v2668_v32  ;;  %v2647_v41 = vand.u32 2147483648, %v2635_v13 }
 0x1bd   : > { %v1335_v51 = vmul.f32 2.1237322e-06, %v6105_v24  ;;  %v1346_v31 = vmul.f32 3.8918573e-05, %v6105_v24  ;;  %v3267_v12 = vadd.f32 1.0, %v3849_v25  ;;  %v482_v4 = vmul.f32 %v4640_v22, %v412_v36 }
 0x1be   : > { %v6113_v52 = vadd.f32 1.0, %v1314_v2  ;;  %v4119_v19 = vpop.eup %4118  ;;  %v2660_v40 = vadd.f32 0.05243302, %v2659_v6  ;;  %v2670_v47 = vmul.f32 %v2669_v58, %v6067_v57  ;;  %vm2641_vm12 = vweird.f32 %v2635_v13  ;;  %v413_v58 = vld [vmem:[%s4620_s28 + $0x198] sm:$0xff] }
 0x1bf   : > { %v1336_v3 = vadd.f32 0.00028619796, %v1335_v51  ;;  %v1347_v11 = vadd.f32 0.001143296, %v1346_v31  ;;  %v3331_v21 = vmul.f32 %v3267_v12, %v579_v50  ;;  %v2637_v8 = vmul.f32 %v4119_v19, %v2635_v13 }
 0x1c0   : > { %vm6117_vm13 = vcmp.eq.f32.partialorder %v2645_v26, 8.507059e+37  ;;  %vm2642_vm14 = vweird.f32 %v4119_v19  ;;  %v1304_v14 = vadd.f32 1.1283791, %v1303_v7  ;;  %4120 = vrcp.f32 %v6113_v52 }
 0x1c1   : > { %v1325_v30 = vand.u32 2147483647, %v6113_v52  ;;  %3454 = vmatmul.f32.gmra.mxu0 %v3331_v21  ;;  %v2638_v1 = vsub.f32 1.0, %v2637_v8  ;;  %v2661_v35 = vmul.f32 %v2660_v40, %v6067_v57  ;;  %v2671_v29 = vadd.f32 0.112945676, %v2670_v47  ;;  %vm6134_vm15 = vmor %vm2641_vm12, %vm2642_vm14 }
 0x1c2   : > { %v1337_v0 = vmul.f32 %v1336_v3, %v6105_v24  ;;  %v2648_v15 = vor.u32 1.1754944e-38, %v2647_v41  ;;  %v1327_v5 = vand.u32 2147483648, %v6113_v52  ;;  %v1348_v37 = vmul.f32 %v1347_v11, %v6105_v24 }
 0x1c3   : > { %v6129_v49 = vadd.f32 %v4647_v27, %v482_v4  ;;  %v2639_v9 = vmul.f32 %v4119_v19, %v2638_v1  ;;  %v2662_v17 = vadd.f32 0.18741608, %v2661_v35  ;;  %v2672_v60 = vmul.f32 %v2671_v29, %v6067_v57 }
 0x1c4   : > { %v1338_v16 = vadd.f32 0.0036580483, %v1337_v0  ;;  %v1305_v43 = vmul.f32 %v1304_v14, %v6001_v53  ;;  %v1349_v34 = vadd.f32 0.014752088, %v1348_v37  ;;  %v449_v50 = vmul.f32 %v4642_v23, %v379_v10 }
 0x1c5   : > { %v6140_v54 = vmul.f32 0.70710677, %v6129_v49  ;;  %v2640_v61 = vadd.f32 %v4119_v19, %v2639_v9  ;;  %vm1321_vm0 = vweird.f32 %v6113_v52  ;;  %vm6144_vm1 = vcmp.eq.f32.partialorder %v1325_v30, 8.507059e+37 }
 0x1c6   : > { %v2673_v13 = vadd.f32 0.4994258, %v2672_v60  ;;  %v4121_v20 = vpop.eup %4120  ;;  %v2663_v46 = vmul.f32 %v2662_v17, %v6067_v57  ;;  %v1339_v53 = vmul.f32 %v1338_v16, %v6105_v24  ;;  %v1350_v42 = vmul.f32 %v1349_v34, %v6105_v24  ;;  %v380_v16 = vld [vmem:[%s4620_s28 + $0x90] sm:$0xff] }
 0x1c7   : > { %v2693_v56 = vmul.f32 %v6140_v54, %v6140_v54  ;;  %v2644_v63 = vsel %vm6134_vm15, %v4119_v19, %v2640_v61  ;;  %v1317_v32 = vmul.f32 %v4121_v20, %v6113_v52  ;;  %v1328_v36 = vor.u32 1.1754944e-38, %v1327_v5 }
 0x1c8   : > { %v6157_v25 = vadd.f32 %v4649_v28, %v449_v50  ;;  %v2649_v26 = vsel %vm6117_vm13, %v2648_v15, %v2644_v63  ;;  %v2674_v7 = vmul.f32 %v2673_v13, %v6067_v57  ;;  %v1340_v2 = vadd.f32 0.05243302, %v1339_v53 }
 0x1c9   : > { %v1351_v6 = vadd.f32 0.112945676, %v1350_v42  ;;  %v2650_v51 = vmul.f32 %v2649_v26, %v6099_v59  ;;  %v1318_v31 = vsub.f32 1.0, %v1317_v32  ;;  %vm1322_vm2 = vweird.f32 %v4121_v20 }
 0x1ca   : > { %v6164_v12 = vmin.f32 %v2693_v56, 16.0  ;;  %v2664_v41 = vadd.f32 1.1283791, %v2663_v46  ;;  %v2675_v4 = vadd.f32 1.0, %v2674_v7  ;;  %v1341_v19 = vmul.f32 %v1340_v2, %v6105_v24  ;;  %vm6172_vm3 = vmor %vm1321_vm0, %vm1322_vm2 }
 0x1cb   : > { %v1352_v40 = vmul.f32 %v1351_v6, %v6105_v24  ;;  %v3883_v47 = vclamps-f32 %v2650_v51, 1.0  ;;  %v1319_v3 = vmul.f32 %v4121_v20, %v1318_v31  ;;  %v483_v57 = vmul.f32 %v4642_v23, %v413_v58 }
 0x1cc   : > { %v2695_v11 = vmul.f32 2.1237322e-06, %v6164_v12  ;;  %4122 = vrcp.f32 %v2675_v4  ;;  %v2685_v21 = vand.u32 2147483647, %v2675_v4  ;;  %v2706_v8 = vmul.f32 3.8918573e-05, %v6164_v12 }
 0x1cd   : > { %v6178_v44 = vmul.f32 0.70710677, %v6157_v25  ;;  %v3301_v14 = vadd.f32 1.0, %v3883_v47  ;;  %v1320_v30 = vadd.f32 %v4121_v20, %v1319_v3  ;;  %v1342_v1 = vadd.f32 0.18741608, %v1341_v19 }
 0x1ce   : > { %v1353_v35 = vadd.f32 0.4994258, %v1352_v40  ;;  %v6181_v29 = vmul.f32 %v2664_v41, %v6043_v48  ;;  %vm2681_vm4 = vweird.f32 %v2675_v4  ;;  %v2687_v52 = vand.u32 2147483648, %v2675_v4 }
 0x1cf   : > { %v2696_v0 = vadd.f32 0.00028619796, %v2695_v11  ;;  %v3365_v10 = vmul.f32 %v3301_v14, %v6092_v62  ;;  %v1324_v15 = vsel %vm6172_vm3, %v4121_v20, %v1320_v30  ;;  %v1343_v5 = vmul.f32 %v1342_v1, %v6105_v24 }
 0x1d0   : > { %v1354_v37 = vmul.f32 %v1353_v35, %v6105_v24  ;;  %v1329_v9 = vsel %vm6144_vm1, %v1328_v36, %v1324_v15  ;;  %v2707_v60 = vadd.f32 0.001143296, %v2706_v8  ;;  %v1373_v48 = vmul.f32 %v6178_v44, %v6178_v44 }
 0x1d1   : > { %v2697_v17 = vmul.f32 %v2696_v0, %v6164_v12  ;;  %3505 = vmatmul.f32.gmra.mxu2 %v3365_v10  ;;  %v1330_v33 = vmul.f32 %v1329_v9, %v1305_v43  ;;  %vm6194_vm5 = vcmp.eq.f32.partialorder %v2685_v21, 8.507059e+37  ;;  %v1344_v34 = vadd.f32 1.1283791, %v1343_v5 }
 0x1d2   : > { %v1355_v50 = vadd.f32 1.0, %v1354_v37  ;;  %v4123_v61 = vpop.eup %4122  ;;  %v2688_v24 = vor.u32 1.1754944e-38, %v2687_v52  ;;  %v2708_v18 = vmul.f32 %v2707_v60, %v6164_v12  ;;  %v6199_v20 = vmin.f32 %v1373_v48, 16.0 }
 0x1d3   : > { %v2698_v13 = vadd.f32 0.0036580483, %v2697_v17  ;;  %v3850_v46 = vclamps-f32 %v1330_v33, 1.0  ;;  %v2677_v53 = vmul.f32 %v4123_v61, %v2675_v4  ;;  %v6202_v42 = vadd.f32 %v4649_v28, %v483_v57 }
 0x1d4   : > { %v450_v43 = vmul.f32 %v4640_v22, %v380_v16  ;;  %vm2682_vm6 = vweird.f32 %v4123_v61  ;;  %v6206_v56 = vmul.f32 %v1344_v34, %v6058_v55  ;;  %4124 = vrcp.f32 %v1355_v50 }
 0x1d5   : > { %v1365_v63 = vand.u32 2147483647, %v1355_v50  ;;  %v3268_v32 = vadd.f32 1.0, %v3850_v46  ;;  %v2678_v36 = vsub.f32 1.0, %v2677_v53  ;;  %v2699_v26 = vmul.f32 %v2698_v13, %v6164_v12  ;;  %vm6215_vm8 = vmor %vm2681_vm4, %vm2682_vm6 }
 0x1d6   : > { %v2709_v7 = vadd.f32 0.014752088, %v2708_v18  ;;  %vm1361_vm7 = vweird.f32 %v1355_v50  ;;  %v1367_v2 = vand.u32 2147483648, %v1355_v50  ;;  %v1375_v6 = vmul.f32 2.1237322e-06, %v6199_v20 }
 0x1d7   : > { %v1386_v58 = vmul.f32 3.8918573e-05, %v6199_v20  ;;  %v3332_v51 = vmul.f32 %v3268_v32, %v6095_v38  ;;  %v2679_v31 = vmul.f32 %v4123_v61, %v2678_v36  ;;  %v2700_v41 = vadd.f32 0.05243302, %v2699_v26 }
 0x1d8   : > { %v2710_v55 = vmul.f32 %v2709_v7, %v6164_v12  ;;  %v1376_v40 = vadd.f32 0.00028619796, %v1375_v6  ;;  %v6220_v3 = vmul.f32 0.70710677, %v6202_v42  ;;  %v6223_v11 = vadd.f32 %v4647_v27, %v450_v43 }
 0x1d9   : > { %v1387_v47 = vadd.f32 0.001143296, %v1386_v58  ;;  %3567 = vmatmul.f32.gmra.mxu1 %v3332_v51  ;;  %v2680_v38 = vadd.f32 %v4123_v61, %v2679_v31  ;;  %vm6225_vm9 = vcmp.eq.f32.partialorder %v1365_v63, 8.507059e+37  ;;  %v2701_v4 = vmul.f32 %v2700_v41, %v6164_v12 }
 0x1da   : > { %v2711_v59 = vadd.f32 0.112945676, %v2710_v55  ;;  %v4125_v21 = vpop.eup %4124  ;;  %v1377_v8 = vmul.f32 %v1376_v40, %v6199_v20  ;;  %v2733_v30 = vmul.f32 %v6220_v3, %v6220_v3  ;;  %v6235_v1 = vmul.f32 0.70710677, %v6223_v11 }
 0x1db   : > { %v1388_v14 = vmul.f32 %v1387_v47, %v6199_v20  ;;  %v2684_v35 = vsel %vm6215_vm8, %v4123_v61, %v2680_v38  ;;  %v1357_v52 = vmul.f32 %v4125_v21, %v1355_v50  ;;  %vm1362_vm10 = vweird.f32 %v4125_v21 }
 0x1dc   : > { %v2702_v0 = vadd.f32 0.18741608, %v2701_v4  ;;  %v2689_v10 = vsel %vm6194_vm5, %v2688_v24, %v2684_v35  ;;  %v2712_v15 = vmul.f32 %v2711_v59, %v6164_v12  ;;  %v1378_v5 = vadd.f32 0.0036580483, %v1377_v8  ;;  %vm6253_vm11 = vmor %vm1361_vm7, %vm1362_vm10 }
 0x1dd   : > { %v1389_v37 = vadd.f32 0.014752088, %v1388_v14  ;;  %v2690_v9 = vmul.f32 %v2689_v10, %v6181_v29  ;;  %v1358_v17 = vsub.f32 1.0, %v1357_v52  ;;  %v6244_v48 = vmin.f32 %v2733_v30, 16.0  ;;  %v381_v29 = vld [vmem:[%s4620_s28 + $0x98] sm:$0xff] }
 0x1de   : > { %v2703_v60 = vmul.f32 %v2702_v0, %v6164_v12  ;;  %v1368_v16 = vor.u32 1.1754944e-38, %v1367_v2  ;;  %v2713_v33 = vadd.f32 0.4994258, %v2712_v15  ;;  %v1379_v34 = vmul.f32 %v1378_v5, %v6199_v20 }
 0x1df   : > { %v1390_v61 = vmul.f32 %v1389_v37, %v6199_v20  ;;  %v3884_v13 = vclamps-f32 %v2690_v9, 1.0  ;;  %v1359_v62 = vmul.f32 %v4125_v21, %v1358_v17  ;;  %v2735_v24 = vmul.f32 2.1237322e-06, %v6244_v48 }
 0x1e0   : > { %v1413_v18 = vmul.f32 %v6235_v1, %v6235_v1  ;;  %v2714_v46 = vmul.f32 %v2713_v33, %v6164_v12  ;;  %v1380_v53 = vadd.f32 0.05243302, %v1379_v34  ;;  %v2746_v63 = vmul.f32 3.8918573e-05, %v6244_v48 }
 0x1e1   : > { %v1391_v43 = vadd.f32 0.112945676, %v1390_v61  ;;  %v3302_v32 = vadd.f32 1.0, %v3884_v13  ;;  %v1360_v36 = vadd.f32 %v4125_v21, %v1359_v62  ;;  %v2704_v26 = vadd.f32 1.1283791, %v2703_v60 }
 0x1e2   : > { %v2736_v7 = vadd.f32 0.00028619796, %v2735_v24  ;;  %v2715_v2 = vadd.f32 1.0, %v2714_v46  ;;  %v1381_v6 = vmul.f32 %v1380_v53, %v6199_v20  ;;  %v2747_v50 = vadd.f32 0.001143296, %v2746_v63 }
 0x1e3   : > { %v1392_v58 = vmul.f32 %v1391_v43, %v6199_v20  ;;  %v3366_v51 = vmul.f32 %v3302_v32, %v6102_v39  ;;  %v581_v31 = vmul.f32 0.5, %v6046_v45  ;;  %v1364_v12 = vsel %vm6253_vm11, %v4125_v21, %v1360_v36  ;;  %v414_v21 = vld [vmem:[%s4620_s28 + $0x1a0] sm:$0xff] }
 0x1e4   : > { %v2737_v41 = vmul.f32 %v2736_v7, %v6244_v48  ;;  %v1369_v55 = vsel %vm6225_vm9, %v1368_v16, %v1364_v12  ;;  %v6269_v19 = vmul.f32 0.5, %v6129_v49  ;;  %4126 = vrcp.f32 %v2715_v2 }
 0x1e5   : > { %v6272_v40 = vmul.f32 0.5, %v6157_v25  ;;  %3618 = vmatmul.f32.gmra.mxu3 %v3366_v51  ;;  %v1370_v39 = vmul.f32 %v1369_v55, %v6206_v56  ;;  %v6276_v45 = vmul.f32 %v2704_v26, %v6140_v54  ;;  %v1382_v47 = vadd.f32 0.18741608, %v1381_v6 }
 0x1e6   : > { %v1393_v38 = vadd.f32 0.4994258, %v1392_v58  ;;  %v6279_v4 = vmul.f32 0.5, %v6202_v42  ;;  %v2738_v57 = vadd.f32 0.0036580483, %v2737_v41  ;;  %v2748_v59 = vmul.f32 %v2747_v50, %v6244_v48 }
 0x1e7   : > { %v6282_v49 = vmin.f32 %v1413_v18, 16.0  ;;  %v3851_v8 = vclamps-f32 %v1370_v39, 1.0  ;;  %v2725_v25 = vand.u32 2147483647, %v2715_v2  ;;  %v1383_v14 = vmul.f32 %v1382_v47, %v6199_v20 }
 0x1e8   : > { %v1394_v56 = vmul.f32 %v1393_v38, %v6199_v20  ;;  %v2739_v54 = vmul.f32 %v2738_v57, %v6244_v48  ;;  %v2749_v30 = vadd.f32 0.014752088, %v2748_v59  ;;  %v2727_v0 = vand.u32 2147483648, %v2715_v2 }
 0x1e9   : > { %v1415_v35 = vmul.f32 2.1237322e-06, %v6282_v49  ;;  %v1426_v42 = vmul.f32 3.8918573e-05, %v6282_v49  ;;  %v3269_v52 = vadd.f32 1.0, %v3851_v8  ;;  %v484_v15 = vmul.f32 %v4640_v22, %v414_v21 }
 0x1ea   : > { %v6290_v10 = vadd.f32 1.0, %v1394_v56  ;;  %v4127_v5 = vpop.eup %4126  ;;  %v2740_v37 = vadd.f32 0.05243302, %v2739_v54  ;;  %v2750_v9 = vmul.f32 %v2749_v30, %v6244_v48  ;;  %vm2721_vm12 = vweird.f32 %v2715_v2  ;;  %v415_v30 = vld [vmem:[%s4620_s28 + $0x1a8] sm:$0xff] }
 0x1eb   : > { %v1416_v17 = vadd.f32 0.00028619796, %v1415_v35  ;;  %v1427_v20 = vadd.f32 0.001143296, %v1426_v42  ;;  %v3333_v60 = vmul.f32 %v3269_v52, %v581_v31  ;;  %v2717_v16 = vmul.f32 %v4127_v5, %v2715_v2 }
 0x1ec   : > { %vm6294_vm13 = vcmp.eq.f32.partialorder %v2725_v25, 8.507059e+37  ;;  %vm2722_vm14 = vweird.f32 %v4127_v5  ;;  %v1384_v34 = vadd.f32 1.1283791, %v1383_v14  ;;  %4128 = vrcp.f32 %v6290_v10 }
 0x1ed   : > { %v1405_v61 = vand.u32 2147483647, %v6290_v10  ;;  %3457 = vmatmul.f32.gmra.mxu0 %v3333_v60  ;;  %v2718_v13 = vsub.f32 1.0, %v2717_v16  ;;  %v2741_v62 = vmul.f32 %v2740_v37, %v6244_v48  ;;  %v2751_v24 = vadd.f32 0.112945676, %v2750_v9  ;;  %vm6311_vm15 = vmor %vm2721_vm12, %vm2722_vm14 }
 0x1ee   : > { %v1417_v18 = vmul.f32 %v1416_v17, %v6282_v49  ;;  %v2728_v46 = vor.u32 1.1754944e-38, %v2727_v0  ;;  %v1407_v53 = vand.u32 2147483648, %v6290_v10  ;;  %v1428_v43 = vmul.f32 %v1427_v20, %v6282_v49 }
 0x1ef   : > { %v6306_v63 = vadd.f32 %v4647_v27, %v484_v15  ;;  %v2719_v32 = vmul.f32 %v4127_v5, %v2718_v13  ;;  %v2742_v36 = vadd.f32 0.18741608, %v2741_v62  ;;  %v2752_v26 = vmul.f32 %v2751_v24, %v6244_v48 }
 0x1f0   : > { %v1418_v7 = vadd.f32 0.0036580483, %v1417_v18  ;;  %v1385_v58 = vmul.f32 %v1384_v34, %v6178_v44  ;;  %v1429_v50 = vadd.f32 0.014752088, %v1428_v43  ;;  %v451_v31 = vmul.f32 %v4642_v23, %v381_v29 }
 0x1f1   : > { %v6317_v51 = vmul.f32 0.70710677, %v6306_v63  ;;  %v2720_v12 = vadd.f32 %v4127_v5, %v2719_v32  ;;  %vm1401_vm0 = vweird.f32 %v6290_v10  ;;  %vm6321_vm1 = vcmp.eq.f32.partialorder %v1405_v61, 8.507059e+37 }
 0x1f2   : > { %v2753_v2 = vadd.f32 0.4994258, %v2752_v26  ;;  %v4129_v55 = vpop.eup %4128  ;;  %v2743_v39 = vmul.f32 %v2742_v36, %v6244_v48  ;;  %v1419_v44 = vmul.f32 %v1418_v7, %v6282_v49  ;;  %v1430_v47 = vmul.f32 %v1429_v50, %v6282_v49  ;;  %v382_v7 = vld [vmem:[%s4620_s28 + $0xa0] sm:$0xff] }
 0x1f3   : > { %v2773_v38 = vmul.f32 %v6317_v51, %v6317_v51  ;;  %v2724_v57 = vsel %vm6311_vm15, %v4127_v5, %v2720_v12  ;;  %v1397_v59 = vmul.f32 %v4129_v55, %v6290_v10  ;;  %v1408_v21 = vor.u32 1.1754944e-38, %v1407_v53 }
 0x1f4   : > { %v6334_v8 = vadd.f32 %v4649_v28, %v451_v31  ;;  %v2729_v25 = vsel %vm6294_vm13, %v2728_v46, %v2724_v57  ;;  %v2754_v14 = vmul.f32 %v2753_v2, %v6244_v48  ;;  %v1420_v56 = vadd.f32 0.05243302, %v1419_v44 }
 0x1f5   : > { %v1431_v54 = vadd.f32 0.112945676, %v1430_v47  ;;  %v2730_v35 = vmul.f32 %v2729_v25, %v6276_v45  ;;  %v1398_v42 = vsub.f32 1.0, %v1397_v59  ;;  %vm1402_vm2 = vweird.f32 %v4129_v55 }
 0x1f6   : > { %v6341_v52 = vmin.f32 %v2773_v38, 16.0  ;;  %v2744_v0 = vadd.f32 1.1283791, %v2743_v39  ;;  %v2755_v15 = vadd.f32 1.0, %v2754_v14  ;;  %v1421_v5 = vmul.f32 %v1420_v56, %v6282_v49  ;;  %vm6349_vm3 = vmor %vm1401_vm0, %vm1402_vm2 }
 0x1f7   : > { %v1432_v37 = vmul.f32 %v1431_v54, %v6282_v49  ;;  %v3885_v9 = vclamps-f32 %v2730_v35, 1.0  ;;  %v1399_v17 = vmul.f32 %v4129_v55, %v1398_v42  ;;  %v485_v48 = vmul.f32 %v4642_v23, %v415_v30 }
 0x1f8   : > { %v2775_v20 = vmul.f32 2.1237322e-06, %v6341_v52  ;;  %4130 = vrcp.f32 %v2755_v15  ;;  %v2765_v60 = vand.u32 2147483647, %v2755_v15  ;;  %v2786_v16 = vmul.f32 3.8918573e-05, %v6341_v52 }
 0x1f9   : > { %v6355_v33 = vmul.f32 0.70710677, %v6334_v8  ;;  %v3303_v34 = vadd.f32 1.0, %v3885_v9  ;;  %v1400_v61 = vadd.f32 %v4129_v55, %v1399_v17  ;;  %v1422_v13 = vadd.f32 0.18741608, %v1421_v5 }
 0x1fa   : > { %v1433_v62 = vadd.f32 0.4994258, %v1432_v37  ;;  %v6358_v24 = vmul.f32 %v2744_v0, %v6220_v3  ;;  %vm2761_vm4 = vweird.f32 %v2755_v15  ;;  %v2767_v10 = vand.u32 2147483648, %v2755_v15 }
 0x1fb   : > { %v2776_v18 = vadd.f32 0.00028619796, %v2775_v20  ;;  %v3367_v29 = vmul.f32 %v3303_v34, %v6269_v19  ;;  %v1404_v46 = vsel %vm6349_vm3, %v4129_v55, %v1400_v61  ;;  %v1423_v53 = vmul.f32 %v1422_v13, %v6282_v49 }
 0x1fc   : > { %v1434_v43 = vmul.f32 %v1433_v62, %v6282_v49  ;;  %v1409_v32 = vsel %vm6321_vm1, %v1408_v21, %v1404_v46  ;;  %v2787_v26 = vadd.f32 0.001143296, %v2786_v16  ;;  %v1453_v3 = vmul.f32 %v6355_v33, %v6355_v33 }
 0x1fd   : > { %v2777_v36 = vmul.f32 %v2776_v18, %v6341_v52  ;;  %3508 = vmatmul.f32.gmra.mxu2 %v3367_v29  ;;  %v1410_v6 = vmul.f32 %v1409_v32, %v1385_v58  ;;  %vm6371_vm5 = vcmp.eq.f32.partialorder %v2765_v60, 8.507059e+37  ;;  %v1424_v50 = vadd.f32 1.1283791, %v1423_v53 }
 0x1fe   : > { %v1435_v31 = vadd.f32 1.0, %v1434_v43  ;;  %v4131_v12 = vpop.eup %4130  ;;  %v2768_v49 = vor.u32 1.1754944e-38, %v2767_v10  ;;  %v2788_v41 = vmul.f32 %v2787_v26, %v6341_v52  ;;  %v6376_v55 = vmin.f32 %v1453_v3, 16.0 }
 0x1ff   : > { %v2778_v2 = vadd.f32 0.0036580483, %v2777_v36  ;;  %v3852_v39 = vclamps-f32 %v1410_v6, 1.0  ;;  %v2757_v44 = vmul.f32 %v4131_v12, %v2755_v15  ;;  %v6379_v47 = vadd.f32 %v4649_v28, %v485_v48 }
 0x200   : > { %v452_v58 = vmul.f32 %v4640_v22, %v382_v7  ;;  %vm2762_vm6 = vweird.f32 %v4131_v12  ;;  %v6383_v38 = vmul.f32 %v1424_v50, %v6235_v1  ;;  %4132 = vrcp.f32 %v1435_v31 }
 0x201   : > { %v1445_v57 = vand.u32 2147483647, %v1435_v31  ;;  %v3270_v59 = vadd.f32 1.0, %v3852_v39  ;;  %v2758_v21 = vsub.f32 1.0, %v2757_v44  ;;  %v2779_v25 = vmul.f32 %v2778_v2, %v6341_v52  ;;  %vm6392_vm8 = vmor %vm2761_vm4, %vm2762_vm6 }
 0x202   : > { %v2789_v14 = vadd.f32 0.014752088, %v2788_v41  ;;  %vm1441_vm7 = vweird.f32 %v1435_v31  ;;  %v1447_v56 = vand.u32 2147483648, %v1435_v31  ;;  %v1455_v54 = vmul.f32 2.1237322e-06, %v6376_v55 }
 0x203   : > { %v1466_v30 = vmul.f32 3.8918573e-05, %v6376_v55  ;;  %v3334_v35 = vmul.f32 %v3270_v59, %v6272_v40  ;;  %v2759_v42 = vmul.f32 %v4131_v12, %v2758_v21  ;;  %v2780_v0 = vadd.f32 0.05243302, %v2779_v25 }
 0x204   : > { %v2790_v1 = vmul.f32 %v2789_v14, %v6341_v52  ;;  %v1456_v37 = vadd.f32 0.00028619796, %v1455_v54  ;;  %v6397_v17 = vmul.f32 0.70710677, %v6379_v47  ;;  %v6400_v20 = vadd.f32 %v4647_v27, %v452_v58 }
 0x205   : > { %v1467_v9 = vadd.f32 0.001143296, %v1466_v30  ;;  %3570 = vmatmul.f32.gmra.mxu1 %v3334_v35  ;;  %v2760_v40 = vadd.f32 %v4131_v12, %v2759_v42  ;;  %vm6402_vm9 = vcmp.eq.f32.partialorder %v1445_v57, 8.507059e+37  ;;  %v2781_v15 = vmul.f32 %v2780_v0, %v6341_v52 }
 0x206   : > { %v2791_v45 = vadd.f32 0.112945676, %v2790_v1  ;;  %v4133_v60 = vpop.eup %4132  ;;  %v1457_v16 = vmul.f32 %v1456_v37, %v6376_v55  ;;  %v2813_v61 = vmul.f32 %v6397_v17, %v6397_v17  ;;  %v6412_v13 = vmul.f32 0.70710677, %v6400_v20 }
 0x207   : > { %v1468_v34 = vmul.f32 %v1467_v9, %v6376_v55  ;;  %v2764_v62 = vsel %vm6392_vm8, %v4131_v12, %v2760_v40  ;;  %v1437_v10 = vmul.f32 %v4133_v60, %v1435_v31  ;;  %vm1442_vm10 = vweird.f32 %v4133_v60 }
 0x208   : > { %v2782_v18 = vadd.f32 0.18741608, %v2781_v15  ;;  %v2769_v29 = vsel %vm6371_vm5, %v2768_v49, %v2764_v62  ;;  %v2792_v46 = vmul.f32 %v2791_v45, %v6341_v52  ;;  %v1458_v53 = vadd.f32 0.0036580483, %v1457_v16  ;;  %vm6430_vm11 = vmor %vm1441_vm7, %vm1442_vm10 }
 0x209   : > { %v1469_v43 = vadd.f32 0.014752088, %v1468_v34  ;;  %v2770_v32 = vmul.f32 %v2769_v29, %v6358_v24  ;;  %v1438_v36 = vsub.f32 1.0, %v1437_v10  ;;  %v6421_v3 = vmin.f32 %v2813_v61, 16.0  ;;  %v383_v24 = vld [vmem:[%s4620_s28 + $0xa8] sm:$0xff] }
 0x20a   : > { %v2783_v26 = vmul.f32 %v2782_v18, %v6341_v52  ;;  %v1448_v7 = vor.u32 1.1754944e-38, %v1447_v56  ;;  %v2793_v6 = vadd.f32 0.4994258, %v2792_v46  ;;  %v1459_v50 = vmul.f32 %v1458_v53, %v6376_v55 }
 0x20b   : > { %v1470_v12 = vmul.f32 %v1469_v43, %v6376_v55  ;;  %v3886_v2 = vclamps-f32 %v2770_v32, 1.0  ;;  %v1439_v19 = vmul.f32 %v4133_v60, %v1438_v36  ;;  %v2815_v49 = vmul.f32 2.1237322e-06, %v6421_v3 }
 0x20c   : > { %v1493_v41 = vmul.f32 %v6412_v13, %v6412_v13  ;;  %v2794_v39 = vmul.f32 %v2793_v6, %v6341_v52  ;;  %v1460_v44 = vadd.f32 0.05243302, %v1459_v50  ;;  %v2826_v57 = vmul.f32 3.8918573e-05, %v6421_v3 }
 0x20d   : > { %v1471_v58 = vadd.f32 0.112945676, %v1470_v12  ;;  %v3304_v59 = vadd.f32 1.0, %v3886_v2  ;;  %v1440_v21 = vadd.f32 %v4133_v60, %v1439_v19  ;;  %v2784_v25 = vadd.f32 1.1283791, %v2783_v26 }
 0x20e   : > { %v2816_v14 = vadd.f32 0.00028619796, %v2815_v49  ;;  %v2795_v56 = vadd.f32 1.0, %v2794_v39  ;;  %v1461_v54 = vmul.f32 %v1460_v44, %v6376_v55  ;;  %v2827_v31 = vadd.f32 0.001143296, %v2826_v57 }
 0x20f   : > { %v1472_v30 = vmul.f32 %v1471_v58, %v6376_v55  ;;  %v3368_v35 = vmul.f32 %v3304_v59, %v6279_v4  ;;  %v583_v42 = vmul.f32 0.5, %v6223_v11  ;;  %v1444_v52 = vsel %vm6430_vm11, %v4133_v60, %v1440_v21  ;;  %v416_v60 = vld [vmem:[%s4620_s28 + $0x1b0] sm:$0xff] }
 0x210   : > { %v2817_v0 = vmul.f32 %v2816_v14, %v6421_v3  ;;  %v1449_v1 = vsel %vm6402_vm9, %v1448_v7, %v1444_v52  ;;  %v6446_v5 = vmul.f32 0.5, %v6306_v63  ;;  %4134 = vrcp.f32 %v2795_v56 }
 0x211   : > { %v6449_v37 = vmul.f32 0.5, %v6334_v8  ;;  %3621 = vmatmul.f32.gmra.mxu3 %v3368_v35  ;;  %v1450_v4 = vmul.f32 %v1449_v1, %v6383_v38  ;;  %v6453_v11 = vmul.f32 %v2784_v25, %v6317_v51  ;;  %v1462_v9 = vadd.f32 0.18741608, %v1461_v54 }
 0x212   : > { %v1473_v40 = vadd.f32 0.4994258, %v1472_v30  ;;  %v6456_v15 = vmul.f32 0.5, %v6379_v47  ;;  %v2818_v48 = vadd.f32 0.0036580483, %v2817_v0  ;;  %v2828_v45 = vmul.f32 %v2827_v31, %v6421_v3 }
 0x213   : > { %v6459_v63 = vmin.f32 %v1493_v41, 16.0  ;;  %v3853_v16 = vclamps-f32 %v1450_v4, 1.0  ;;  %v2805_v8 = vand.u32 2147483647, %v2795_v56  ;;  %v1463_v34 = vmul.f32 %v1462_v9, %v6376_v55 }
 0x214   : > { %v1474_v38 = vmul.f32 %v1473_v40, %v6376_v55  ;;  %v2819_v51 = vmul.f32 %v2818_v48, %v6421_v3  ;;  %v2829_v61 = vadd.f32 0.014752088, %v2828_v45  ;;  %v2807_v18 = vand.u32 2147483648, %v2795_v56 }
 0x215   : > { %v1495_v62 = vmul.f32 2.1237322e-06, %v6459_v63  ;;  %v1506_v47 = vmul.f32 3.8918573e-05, %v6459_v63  ;;  %v3271_v10 = vadd.f32 1.0, %v3853_v16  ;;  %v486_v46 = vmul.f32 %v4640_v22, %v416_v60 }
 0x216   : > { %v6467_v29 = vadd.f32 1.0, %v1474_v38  ;;  %v4135_v53 = vpop.eup %4134  ;;  %v2820_v43 = vadd.f32 0.05243302, %v2819_v51  ;;  %v2830_v32 = vmul.f32 %v2829_v61, %v6421_v3  ;;  %vm2801_vm12 = vweird.f32 %v2795_v56  ;;  %v417_v61 = vld [vmem:[%s4620_s28 + $0x1b8] sm:$0xff] }
 0x217   : > { %v1496_v36 = vadd.f32 0.00028619796, %v1495_v62  ;;  %v1507_v55 = vadd.f32 0.001143296, %v1506_v47  ;;  %v3335_v26 = vmul.f32 %v3271_v10, %v583_v42  ;;  %v2797_v7 = vmul.f32 %v4135_v53, %v2795_v56 }
 0x218   : > { %vm6471_vm13 = vcmp.eq.f32.partialorder %v2805_v8, 8.507059e+37  ;;  %vm2802_vm14 = vweird.f32 %v4135_v53  ;;  %v1464_v50 = vadd.f32 1.1283791, %v1463_v34  ;;  %4136 = vrcp.f32 %v6467_v29 }
 0x219   : > { %v1485_v12 = vand.u32 2147483647, %v6467_v29  ;;  %3460 = vmatmul.f32.gmra.mxu0 %v3335_v26  ;;  %v2798_v2 = vsub.f32 1.0, %v2797_v7  ;;  %v2821_v19 = vmul.f32 %v2820_v43, %v6421_v3  ;;  %v2831_v49 = vadd.f32 0.112945676, %v2830_v32  ;;  %vm6488_vm15 = vmor %vm2801_vm12, %vm2802_vm14 }
 0x21a   : > { %v1497_v41 = vmul.f32 %v1496_v36, %v6459_v63  ;;  %v2808_v39 = vor.u32 1.1754944e-38, %v2807_v18  ;;  %v1487_v44 = vand.u32 2147483648, %v6467_v29  ;;  %v1508_v58 = vmul.f32 %v1507_v55, %v6459_v63 }
 0x21b   : > { %v6483_v57 = vadd.f32 %v4647_v27, %v486_v46  ;;  %v2799_v59 = vmul.f32 %v4135_v53, %v2798_v2  ;;  %v2822_v21 = vadd.f32 0.18741608, %v2821_v19  ;;  %v2832_v25 = vmul.f32 %v2831_v49, %v6421_v3 }
 0x21c   : > { %v1498_v14 = vadd.f32 0.0036580483, %v1497_v41  ;;  %v1465_v30 = vmul.f32 %v1464_v50, %v6355_v33  ;;  %v1509_v31 = vadd.f32 0.014752088, %v1508_v58  ;;  %v453_v42 = vmul.f32 %v4642_v23, %v383_v24 }
 0x21d   : > { %v6494_v35 = vmul.f32 0.70710677, %v6483_v57  ;;  %v2800_v52 = vadd.f32 %v4135_v53, %v2799_v59  ;;  %vm1481_vm0 = vweird.f32 %v6467_v29  ;;  %vm6498_vm1 = vcmp.eq.f32.partialorder %v1485_v12, 8.507059e+37 }
 0x21e   : > { %v2833_v56 = vadd.f32 0.4994258, %v2832_v25  ;;  %v4137_v1 = vpop.eup %4136  ;;  %v2823_v4 = vmul.f32 %v2822_v21, %v6421_v3  ;;  %v1499_v33 = vmul.f32 %v1498_v14, %v6459_v63  ;;  %v1510_v9 = vmul.f32 %v1509_v31, %v6459_v63  ;;  %v384_v14 = vld [vmem:[%s4620_s28 + $0xb0] sm:$0xff] }
 0x21f   : > { %v2853_v40 = vmul.f32 %v6494_v35, %v6494_v35  ;;  %v2804_v48 = vsel %vm6488_vm15, %v4135_v53, %v2800_v52  ;;  %v1477_v45 = vmul.f32 %v4137_v1, %v6467_v29  ;;  %v1488_v60 = vor.u32 1.1754944e-38, %v1487_v44 }
 0x220   : > { %v6511_v16 = vadd.f32 %v4649_v28, %v453_v42  ;;  %v2809_v8 = vsel %vm6471_vm13, %v2808_v39, %v2804_v48  ;;  %v2834_v34 = vmul.f32 %v2833_v56, %v6421_v3  ;;  %v1500_v38 = vadd.f32 0.05243302, %v1499_v33 }
 0x221   : > { %v1511_v51 = vadd.f32 0.112945676, %v1510_v9  ;;  %v2810_v62 = vmul.f32 %v2809_v8, %v6453_v11  ;;  %v1478_v47 = vsub.f32 1.0, %v1477_v45  ;;  %vm1482_vm2 = vweird.f32 %v4137_v1 }
 0x222   : > { %v6518_v10 = vmin.f32 %v2853_v40, 16.0  ;;  %v2824_v18 = vadd.f32 1.1283791, %v2823_v4  ;;  %v2835_v46 = vadd.f32 1.0, %v2834_v34  ;;  %v1501_v53 = vmul.f32 %v1500_v38, %v6459_v63  ;;  %vm6526_vm3 = vmor %vm1481_vm0, %vm1482_vm2 }
 0x223   : > { %v1512_v43 = vmul.f32 %v1511_v51, %v6459_v63  ;;  %v3887_v32 = vclamps-f32 %v2810_v62, 1.0  ;;  %v1479_v36 = vmul.f32 %v4137_v1, %v1478_v47  ;;  %v487_v3 = vmul.f32 %v4642_v23, %v417_v61 }
 0x224   : > { %v2855_v55 = vmul.f32 2.1237322e-06, %v6518_v10  ;;  %4138 = vrcp.f32 %v2835_v46  ;;  %v2845_v26 = vand.u32 2147483647, %v2835_v46  ;;  %v2866_v7 = vmul.f32 3.8918573e-05, %v6518_v10 }
 0x225   : > { %v6532_v6 = vmul.f32 0.70710677, %v6511_v16  ;;  %v3305_v50 = vadd.f32 1.0, %v3887_v32  ;;  %v1480_v12 = vadd.f32 %v4137_v1, %v1479_v36  ;;  %v1502_v2 = vadd.f32 0.18741608, %v1501_v53 }
 0x226   : > { %v1513_v19 = vadd.f32 0.4994258, %v1512_v43  ;;  %v6535_v49 = vmul.f32 %v2824_v18, %v6397_v17  ;;  %vm2841_vm4 = vweird.f32 %v2835_v46  ;;  %v2847_v29 = vand.u32 2147483648, %v2835_v46 }
 0x227   : > { %v2856_v41 = vadd.f32 0.00028619796, %v2855_v55  ;;  %v3369_v24 = vmul.f32 %v3305_v50, %v6446_v5  ;;  %v1484_v39 = vsel %vm6526_vm3, %v4137_v1, %v1480_v12  ;;  %v1503_v44 = vmul.f32 %v1502_v2, %v6459_v63 }
 0x228   : > { %v1514_v58 = vmul.f32 %v1513_v19, %v6459_v63  ;;  %v1489_v59 = vsel %vm6498_vm1, %v1488_v60, %v1484_v39  ;;  %v2867_v25 = vadd.f32 0.001143296, %v2866_v7  ;;  %v1533_v17 = vmul.f32 %v6532_v6, %v6532_v6 }
 0x229   : > { %v2857_v21 = vmul.f32 %v2856_v41, %v6518_v10  ;;  %3511 = vmatmul.f32.gmra.mxu2 %v3369_v24  ;;  %v1490_v54 = vmul.f32 %v1489_v59, %v1465_v30  ;;  %vm6548_vm5 = vcmp.eq.f32.partialorder %v2845_v26, 8.507059e+37  ;;  %v1504_v31 = vadd.f32 1.1283791, %v1503_v44 }
 0x22a   : > { %v1515_v42 = vadd.f32 1.0, %v1514_v58  ;;  %v4139_v52 = vpop.eup %4138  ;;  %v2848_v63 = vor.u32 1.1754944e-38, %v2847_v29  ;;  %v2868_v0 = vmul.f32 %v2867_v25, %v6518_v10  ;;  %v6553_v1 = vmin.f32 %v1533_v17, 16.0 }
 0x22b   : > { %v2858_v56 = vadd.f32 0.0036580483, %v2857_v21  ;;  %v3854_v4 = vclamps-f32 %v1490_v54, 1.0  ;;  %v2837_v33 = vmul.f32 %v4139_v52, %v2835_v46  ;;  %v6556_v9 = vadd.f32 %v4649_v28, %v487_v3 }
 0x22c   : > { %v454_v30 = vmul.f32 %v4640_v22, %v384_v14  ;;  %vm2842_vm6 = vweird.f32 %v4139_v52  ;;  %v6560_v40 = vmul.f32 %v1504_v31, %v6412_v13  ;;  %4140 = vrcp.f32 %v1515_v42 }
 0x22d   : > { %v1525_v48 = vand.u32 2147483647, %v1515_v42  ;;  %v3272_v45 = vadd.f32 1.0, %v3854_v4  ;;  %v2838_v60 = vsub.f32 1.0, %v2837_v33  ;;  %v2859_v8 = vmul.f32 %v2858_v56, %v6518_v10  ;;  %vm6569_vm8 = vmor %vm2841_vm4, %vm2842_vm6 }
 0x22e   : > { %v2869_v34 = vadd.f32 0.014752088, %v2868_v0  ;;  %vm1521_vm7 = vweird.f32 %v1515_v42  ;;  %v1527_v38 = vand.u32 2147483648, %v1515_v42  ;;  %v1535_v51 = vmul.f32 2.1237322e-06, %v6553_v1 }
 0x22f   : > { %v1546_v61 = vmul.f32 3.8918573e-05, %v6553_v1  ;;  %v3336_v62 = vmul.f32 %v3272_v45, %v6449_v37  ;;  %v2839_v47 = vmul.f32 %v4139_v52, %v2838_v60  ;;  %v2860_v18 = vadd.f32 0.05243302, %v2859_v8 }
 0x230   : > { %v2870_v13 = vmul.f32 %v2869_v34, %v6518_v10  ;;  %v1536_v43 = vadd.f32 0.00028619796, %v1535_v51  ;;  %v6574_v36 = vmul.f32 0.70710677, %v6556_v9  ;;  %v6577_v55 = vadd.f32 %v4647_v27, %v454_v30 }
 0x231   : > { %v1547_v32 = vadd.f32 0.001143296, %v1546_v61  ;;  %3573 = vmatmul.f32.gmra.mxu1 %v3336_v62  ;;  %v2840_v37 = vadd.f32 %v4139_v52, %v2839_v47  ;;  %vm6579_vm9 = vcmp.eq.f32.partialorder %v1525_v48, 8.507059e+37  ;;  %v2861_v46 = vmul.f32 %v2860_v18, %v6518_v10 }
 0x232   : > { %v2871_v11 = vadd.f32 0.112945676, %v2870_v13  ;;  %v4141_v26 = vpop.eup %4140  ;;  %v1537_v7 = vmul.f32 %v1536_v43, %v6553_v1  ;;  %v2893_v12 = vmul.f32 %v6574_v36, %v6574_v36  ;;  %v6589_v2 = vmul.f32 0.70710677, %v6577_v55 }
 0x233   : > { %v1548_v50 = vmul.f32 %v1547_v32, %v6553_v1  ;;  %v2844_v19 = vsel %vm6569_vm8, %v4139_v52, %v2840_v37  ;;  %v1517_v29 = vmul.f32 %v4141_v26, %v1515_v42  ;;  %vm1522_vm10 = vweird.f32 %v4141_v26 }
 0x234   : > { %v2862_v41 = vadd.f32 0.18741608, %v2861_v46  ;;  %v2849_v24 = vsel %vm6548_vm5, %v2848_v63, %v2844_v19  ;;  %v2872_v39 = vmul.f32 %v2871_v11, %v6518_v10  ;;  %v1538_v44 = vadd.f32 0.0036580483, %v1537_v7  ;;  %vm6607_vm11 = vmor %vm1521_vm7, %vm1522_vm10 }
 0x235   : > { %v1549_v58 = vadd.f32 0.014752088, %v1548_v50  ;;  %v2850_v59 = vmul.f32 %v2849_v24, %v6535_v49  ;;  %v1518_v21 = vsub.f32 1.0, %v1517_v29  ;;  %v6598_v17 = vmin.f32 %v2893_v12, 16.0  ;;  %v385_v49 = vld [vmem:[%s4620_s28 + $0xb8] sm:$0xff] }
 0x236   : > { %v2863_v25 = vmul.f32 %v2862_v41, %v6518_v10  ;;  %v1528_v14 = vor.u32 1.1754944e-38, %v1527_v38  ;;  %v2873_v54 = vadd.f32 0.4994258, %v2872_v39  ;;  %v1539_v31 = vmul.f32 %v1538_v44, %v6553_v1 }
 0x237   : > { %v1550_v52 = vmul.f32 %v1549_v58, %v6553_v1  ;;  %v3888_v56 = vclamps-f32 %v2850_v59, 1.0  ;;  %v1519_v5 = vmul.f32 %v4141_v26, %v1518_v21  ;;  %v2895_v63 = vmul.f32 2.1237322e-06, %v6598_v17 }
 0x238   : > { %v1573_v0 = vmul.f32 %v6589_v2, %v6589_v2  ;;  %v2874_v4 = vmul.f32 %v2873_v54, %v6518_v10  ;;  %v1540_v33 = vadd.f32 0.05243302, %v1539_v31  ;;  %v2906_v48 = vmul.f32 3.8918573e-05, %v6598_v17 }
 0x239   : > { %v1551_v30 = vadd.f32 0.112945676, %v1550_v52  ;;  %v3306_v45 = vadd.f32 1.0, %v3888_v56  ;;  %v1520_v60 = vadd.f32 %v4141_v26, %v1519_v5  ;;  %v2864_v8 = vadd.f32 1.1283791, %v2863_v25 }
 0x23a   : > { %v2896_v34 = vadd.f32 0.00028619796, %v2895_v63  ;;  %v2875_v38 = vadd.f32 1.0, %v2874_v4  ;;  %v1541_v51 = vmul.f32 %v1540_v33, %v6553_v1  ;;  %v2907_v42 = vadd.f32 0.001143296, %v2906_v48 }
 0x23b   : > { %v1552_v61 = vmul.f32 %v1551_v30, %v6553_v1  ;;  %v3370_v62 = vmul.f32 %v3306_v45, %v6456_v15  ;;  %v585_v47 = vmul.f32 0.5, %v6400_v20  ;;  %v1524_v10 = vsel %vm6607_vm11, %v4141_v26, %v1520_v60  ;;  %v418_v26 = vld [vmem:[%s4620_s28 + $0x1c0] sm:$0xff] }
 0x23c   : > { %v2897_v18 = vmul.f32 %v2896_v34, %v6598_v17  ;;  %v1529_v13 = vsel %vm6579_vm9, %v1528_v14, %v1524_v10  ;;  %v6623_v53 = vmul.f32 0.5, %v6483_v57  ;;  %4142 = vrcp.f32 %v2875_v38 }
 0x23d   : > { %v6626_v43 = vmul.f32 0.5, %v6511_v16  ;;  %3624 = vmatmul.f32.gmra.mxu3 %v3370_v62  ;;  %v1530_v15 = vmul.f32 %v1529_v13, %v6560_v40  ;;  %v6630_v20 = vmul.f32 %v2864_v8, %v6494_v35  ;;  %v1542_v32 = vadd.f32 0.18741608, %v1541_v51 }
 0x23e   : > { %v1553_v37 = vadd.f32 0.4994258, %v1552_v61  ;;  %v6633_v46 = vmul.f32 0.5, %v6556_v9  ;;  %v2898_v3 = vadd.f32 0.0036580483, %v2897_v18  ;;  %v2908_v11 = vmul.f32 %v2907_v42, %v6598_v17 }
 0x23f   : > { %v6636_v57 = vmin.f32 %v1573_v0, 16.0  ;;  %v3855_v7 = vclamps-f32 %v1530_v15, 1.0  ;;  %v2885_v16 = vand.u32 2147483647, %v2875_v38  ;;  %v1543_v50 = vmul.f32 %v1542_v32, %v6553_v1 }
 0x240   : > { %v1554_v40 = vmul.f32 %v1553_v37, %v6553_v1  ;;  %v2899_v35 = vmul.f32 %v2898_v3, %v6598_v17  ;;  %v2909_v12 = vadd.f32 0.014752088, %v2908_v11  ;;  %v2887_v41 = vand.u32 2147483648, %v2875_v38 }
 0x241   : > { %v1575_v19 = vmul.f32 2.1237322e-06, %v6636_v57  ;;  %v1586_v9 = vmul.f32 3.8918573e-05, %v6636_v57  ;;  %v3273_v29 = vadd.f32 1.0, %v3855_v7  ;;  %v488_v39 = vmul.f32 %v4640_v22, %v418_v26 }
 0x242   : > { %v6644_v24 = vadd.f32 1.0, %v1554_v40  ;;  %v4143_v44 = vpop.eup %4142  ;;  %v2900_v58 = vadd.f32 0.05243302, %v2899_v35  ;;  %v2910_v59 = vmul.f32 %v2909_v12, %v6598_v17  ;;  %vm2881_vm12 = vweird.f32 %v2875_v38  ;;  %v419_v12 = vld [vmem:[%s4620_s28 + $0x1c8] sm:$0xff] }
 0x243   : > { %v1576_v21 = vadd.f32 0.00028619796, %v1575_v19  ;;  %v1587_v1 = vadd.f32 0.001143296, %v1586_v9  ;;  %v3337_v25 = vmul.f32 %v3273_v29, %v585_v47  ;;  %v2877_v14 = vmul.f32 %v4143_v44, %v2875_v38 }
 0x244   : > { %vm6648_vm13 = vcmp.eq.f32.partialorder %v2885_v16, 8.507059e+37  ;;  %vm2882_vm14 = vweird.f32 %v4143_v44  ;;  %v1544_v31 = vadd.f32 1.1283791, %v1543_v50  ;;  %4144 = vrcp.f32 %v6644_v24 }
 0x245   : > { %v1565_v52 = vand.u32 2147483647, %v6644_v24  ;;  %3463 = vmatmul.f32.gmra.mxu0 %v3337_v25  ;;  %v2878_v56 = vsub.f32 1.0, %v2877_v14  ;;  %v2901_v5 = vmul.f32 %v2900_v58, %v6598_v17  ;;  %v2911_v63 = vadd.f32 0.112945676, %v2910_v59  ;;  %vm6665_vm15 = vmor %vm2881_vm12, %vm2882_vm14 }
 0x246   : > { %v1577_v0 = vmul.f32 %v1576_v21, %v6636_v57  ;;  %v2888_v4 = vor.u32 1.1754944e-38, %v2887_v41  ;;  %v1567_v33 = vand.u32 2147483648, %v6644_v24  ;;  %v1588_v30 = vmul.f32 %v1587_v1, %v6636_v57 }
 0x247   : > { %v6660_v48 = vadd.f32 %v4647_v27, %v488_v39  ;;  %v2879_v45 = vmul.f32 %v4143_v44, %v2878_v56  ;;  %v2902_v60 = vadd.f32 0.18741608, %v2901_v5  ;;  %v2912_v8 = vmul.f32 %v2911_v63, %v6598_v17 }
 0x248   : > { %v1578_v34 = vadd.f32 0.0036580483, %v1577_v0  ;;  %v1545_v61 = vmul.f32 %v1544_v31, %v6532_v6  ;;  %v1589_v42 = vadd.f32 0.014752088, %v1588_v30  ;;  %v455_v47 = vmul.f32 %v4642_v23, %v385_v49 }
 0x249   : > { %v6671_v62 = vmul.f32 0.70710677, %v6660_v48  ;;  %v2880_v10 = vadd.f32 %v4143_v44, %v2879_v45  ;;  %vm1561_vm0 = vweird.f32 %v6644_v24  ;;  %vm6675_vm1 = vcmp.eq.f32.partialorder %v1565_v52, 8.507059e+37 }
 0x24a   : > { %v2913_v38 = vadd.f32 0.4994258, %v2912_v8  ;;  %v4145_v13 = vpop.eup %4144  ;;  %v2903_v15 = vmul.f32 %v2902_v60, %v6598_v17  ;;  %v1579_v6 = vmul.f32 %v1578_v34, %v6636_v57  ;;  %v1590_v32 = vmul.f32 %v1589_v42, %v6636_v57  ;;  %v386_v34 = vld [vmem:[%s4620_s28 + $0xc0] sm:$0xff] }
 0x24b   : > { %v2933_v37 = vmul.f32 %v6671_v62, %v6671_v62  ;;  %v2884_v3 = vsel %vm6665_vm15, %v4143_v44, %v2880_v10  ;;  %v1557_v11 = vmul.f32 %v4145_v13, %v6644_v24  ;;  %v1568_v26 = vor.u32 1.1754944e-38, %v1567_v33 }
 0x24c   : > { %v6688_v7 = vadd.f32 %v4649_v28, %v455_v47  ;;  %v2889_v16 = vsel %vm6648_vm13, %v2888_v4, %v2884_v3  ;;  %v2914_v50 = vmul.f32 %v2913_v38, %v6598_v17  ;;  %v1580_v40 = vadd.f32 0.05243302, %v1579_v6 }
 0x24d   : > { %v1591_v35 = vadd.f32 0.112945676, %v1590_v32  ;;  %v2890_v19 = vmul.f32 %v2889_v16, %v6630_v20  ;;  %v1558_v9 = vsub.f32 1.0, %v1557_v11  ;;  %vm1562_vm2 = vweird.f32 %v4145_v13 }
 0x24e   : > { %v6695_v29 = vmin.f32 %v2933_v37, 16.0  ;;  %v2904_v41 = vadd.f32 1.1283791, %v2903_v15  ;;  %v2915_v39 = vadd.f32 1.0, %v2914_v50  ;;  %v1581_v44 = vmul.f32 %v1580_v40, %v6636_v57  ;;  %vm6703_vm3 = vmor %vm1561_vm0, %vm1562_vm2 }
 0x24f   : > { %v1592_v58 = vmul.f32 %v1591_v35, %v6636_v57  ;;  %v3889_v59 = vclamps-f32 %v2890_v19, 1.0  ;;  %v1559_v21 = vmul.f32 %v4145_v13, %v1558_v9  ;;  %v489_v17 = vmul.f32 %v4642_v23, %v419_v12 }
 0x250   : > { %v2935_v1 = vmul.f32 2.1237322e-06, %v6695_v29  ;;  %4146 = vrcp.f32 %v2915_v39  ;;  %v2925_v25 = vand.u32 2147483647, %v2915_v39  ;;  %v2946_v14 = vmul.f32 3.8918573e-05, %v6695_v29 }
 0x251   : > { %v6709_v54 = vmul.f32 0.70710677, %v6688_v7  ;;  %v3307_v31 = vadd.f32 1.0, %v3889_v59  ;;  %v1560_v52 = vadd.f32 %v4145_v13, %v1559_v21  ;;  %v1582_v56 = vadd.f32 0.18741608, %v1581_v44 }
 0x252   : > { %v1593_v5 = vadd.f32 0.4994258, %v1592_v58  ;;  %v6712_v63 = vmul.f32 %v2904_v41, %v6574_v36  ;;  %vm2921_vm4 = vweird.f32 %v2915_v39  ;;  %v2927_v24 = vand.u32 2147483648, %v2915_v39 }
 0x253   : > { %v2936_v0 = vadd.f32 0.00028619796, %v2935_v1  ;;  %v3371_v49 = vmul.f32 %v3307_v31, %v6623_v53  ;;  %v1564_v4 = vsel %vm6703_vm3, %v4145_v13, %v1560_v52  ;;  %v1583_v33 = vmul.f32 %v1582_v56, %v6636_v57 }
 0x254   : > { %v1594_v30 = vmul.f32 %v1593_v5, %v6636_v57  ;;  %v1569_v45 = vsel %vm6675_vm1, %v1568_v26, %v1564_v4  ;;  %v2947_v8 = vadd.f32 0.001143296, %v2946_v14  ;;  %v1613_v36 = vmul.f32 %v6709_v54, %v6709_v54 }
 0x255   : > { %v2937_v60 = vmul.f32 %v2936_v0, %v6695_v29  ;;  %3514 = vmatmul.f32.gmra.mxu2 %v3371_v49  ;;  %v1570_v51 = vmul.f32 %v1569_v45, %v1545_v61  ;;  %vm6725_vm5 = vcmp.eq.f32.partialorder %v2925_v25, 8.507059e+37  ;;  %v1584_v42 = vadd.f32 1.1283791, %v1583_v33 }
 0x256   : > { %v1595_v47 = vadd.f32 1.0, %v1594_v30  ;;  %v4147_v10 = vpop.eup %4146  ;;  %v2928_v57 = vor.u32 1.1754944e-38, %v2927_v24  ;;  %v2948_v18 = vmul.f32 %v2947_v8, %v6695_v29  ;;  %v6730_v13 = vmin.f32 %v1613_v36, 16.0 }
 0x257   : > { %v2938_v38 = vadd.f32 0.0036580483, %v2937_v60  ;;  %v3856_v15 = vclamps-f32 %v1570_v51, 1.0  ;;  %v2917_v6 = vmul.f32 %v4147_v10, %v2915_v39  ;;  %v6733_v32 = vadd.f32 %v4649_v28, %v489_v17 }
 0x258   : > { %v456_v61 = vmul.f32 %v4640_v22, %v386_v34  ;;  %vm2922_vm6 = vweird.f32 %v4147_v10  ;;  %v6737_v37 = vmul.f32 %v1584_v42, %v6589_v2  ;;  %4148 = vrcp.f32 %v1595_v47 }
 0x259   : > { %v1605_v3 = vand.u32 2147483647, %v1595_v47  ;;  %v3274_v11 = vadd.f32 1.0, %v3856_v15  ;;  %v2918_v26 = vsub.f32 1.0, %v2917_v6  ;;  %v2939_v16 = vmul.f32 %v2938_v38, %v6695_v29  ;;  %vm6746_vm8 = vmor %vm2921_vm4, %vm2922_vm6 }
 0x25a   : > { %v2949_v50 = vadd.f32 0.014752088, %v2948_v18  ;;  %vm1601_vm7 = vweird.f32 %v1595_v47  ;;  %v1607_v40 = vand.u32 2147483648, %v1595_v47  ;;  %v1615_v35 = vmul.f32 2.1237322e-06, %v6730_v13 }
 0x25b   : > { %v1626_v12 = vmul.f32 3.8918573e-05, %v6730_v13  ;;  %v3338_v19 = vmul.f32 %v3274_v11, %v6626_v43  ;;  %v2919_v9 = vmul.f32 %v4147_v10, %v2918_v26  ;;  %v2940_v41 = vadd.f32 0.05243302, %v2939_v16 }
 0x25c   : > { %v2950_v2 = vmul.f32 %v2949_v50, %v6695_v29  ;;  %v1616_v58 = vadd.f32 0.00028619796, %v1615_v35  ;;  %v6751_v21 = vmul.f32 0.70710677, %v6733_v32  ;;  %v6754_v1 = vadd.f32 %v4647_v27, %v456_v61 }
 0x25d   : > { %v1627_v59 = vadd.f32 0.001143296, %v1626_v12  ;;  %3576 = vmatmul.f32.gmra.mxu1 %v3338_v19  ;;  %v2920_v43 = vadd.f32 %v4147_v10, %v2919_v9  ;;  %vm6756_vm9 = vcmp.eq.f32.partialorder %v1605_v3, 8.507059e+37  ;;  %v2941_v39 = vmul.f32 %v2940_v41, %v6695_v29 }
 0x25e   : > { %v2951_v20 = vadd.f32 0.112945676, %v2950_v2  ;;  %v4149_v25 = vpop.eup %4148  ;;  %v1617_v14 = vmul.f32 %v1616_v58, %v6730_v13  ;;  %v2973_v52 = vmul.f32 %v6751_v21, %v6751_v21  ;;  %v6766_v56 = vmul.f32 0.70710677, %v6754_v1 }
 0x25f   : > { %v1628_v31 = vmul.f32 %v1627_v59, %v6730_v13  ;;  %v2924_v5 = vsel %vm6746_vm8, %v4147_v10, %v2920_v43  ;;  %v1597_v24 = vmul.f32 %v4149_v25, %v1595_v47  ;;  %vm1602_vm10 = vweird.f32 %v4149_v25 }
 0x260   : > { %v2942_v0 = vadd.f32 0.18741608, %v2941_v39  ;;  %v2929_v49 = vsel %vm6725_vm5, %v2928_v57, %v2924_v5  ;;  %v2952_v4 = vmul.f32 %v2951_v20, %v6695_v29  ;;  %v1618_v33 = vadd.f32 0.0036580483, %v1617_v14  ;;  %vm6784_vm11 = vmor %vm1601_vm7, %vm1602_vm10 }
 0x261   : > { %v1629_v30 = vadd.f32 0.014752088, %v1628_v31  ;;  %v2930_v45 = vmul.f32 %v2929_v49, %v6712_v63  ;;  %v1598_v60 = vsub.f32 1.0, %v1597_v24  ;;  %v6775_v36 = vmin.f32 %v2973_v52, 16.0  ;;  %v387_v63 = vld [vmem:[%s4620_s28 + $0xc8] sm:$0xff] }
 0x262   : > { %v2943_v8 = vmul.f32 %v2942_v0, %v6695_v29  ;;  %v1608_v34 = vor.u32 1.1754944e-38, %v1607_v40  ;;  %v2953_v51 = vadd.f32 0.4994258, %v2952_v4  ;;  %v1619_v42 = vmul.f32 %v1618_v33, %v6730_v13 }
 0x263   : > { %v1630_v10 = vmul.f32 %v1629_v30, %v6730_v13  ;;  %v3890_v38 = vclamps-f32 %v2930_v45, 1.0  ;;  %v1599_v53 = vmul.f32 %v4149_v25, %v1598_v60  ;;  %v2975_v57 = vmul.f32 2.1237322e-06, %v6775_v36 }
 0x264   : > { %v1653_v18 = vmul.f32 %v6766_v56, %v6766_v56  ;;  %v2954_v15 = vmul.f32 %v2953_v51, %v6695_v29  ;;  %v1620_v6 = vadd.f32 0.05243302, %v1619_v42  ;;  %v2986_v3 = vmul.f32 3.8918573e-05, %v6775_v36 }
 0x265   : > { %v1631_v61 = vadd.f32 0.112945676, %v1630_v10  ;;  %v3308_v11 = vadd.f32 1.0, %v3890_v38  ;;  %v1600_v26 = vadd.f32 %v4149_v25, %v1599_v53  ;;  %v2944_v16 = vadd.f32 1.1283791, %v2943_v8 }
 0x266   : > { %v2976_v50 = vadd.f32 0.00028619796, %v2975_v57  ;;  %v2955_v40 = vadd.f32 1.0, %v2954_v15  ;;  %v1621_v35 = vmul.f32 %v1620_v6, %v6730_v13  ;;  %v2987_v47 = vadd.f32 0.001143296, %v2986_v3 }
 0x267   : > { %v1632_v12 = vmul.f32 %v1631_v61, %v6730_v13  ;;  %v3372_v19 = vmul.f32 %v3308_v11, %v6633_v46  ;;  %v587_v9 = vmul.f32 0.5, %v6577_v55  ;;  %v1604_v29 = vsel %vm6784_vm11, %v4149_v25, %v1600_v26  ;;  %v420_v25 = vld [vmem:[%s4620_s28 + $0x1d0] sm:$0xff] }
 0x268   : > { %v2977_v41 = vmul.f32 %v2976_v50, %v6775_v36  ;;  %v1609_v2 = vsel %vm6756_vm9, %v1608_v34, %v1604_v29  ;;  %v6800_v44 = vmul.f32 0.5, %v6660_v48  ;;  %4150 = vrcp.f32 %v2955_v40 }
 0x269   : > { %v6803_v58 = vmul.f32 0.5, %v6688_v7  ;;  %3627 = vmatmul.f32.gmra.mxu3 %v3372_v19  ;;  %v1610_v46 = vmul.f32 %v1609_v2, %v6737_v37  ;;  %v6807_v55 = vmul.f32 %v2944_v16, %v6671_v62  ;;  %v1622_v59 = vadd.f32 0.18741608, %v1621_v35 }
 0x26a   : > { %v1633_v43 = vadd.f32 0.4994258, %v1632_v12  ;;  %v6810_v39 = vmul.f32 0.5, %v6733_v32  ;;  %v2978_v17 = vadd.f32 0.0036580483, %v2977_v41  ;;  %v2988_v20 = vmul.f32 %v2987_v47, %v6775_v36 }
 0x26b   : > { %v6813_v48 = vmin.f32 %v1653_v18, 16.0  ;;  %v3857_v14 = vclamps-f32 %v1610_v46, 1.0  ;;  %v2965_v7 = vand.u32 2147483647, %v2955_v40  ;;  %v1623_v31 = vmul.f32 %v1622_v59, %v6730_v13 }
 0x26c   : > { %v1634_v37 = vmul.f32 %v1633_v43, %v6730_v13  ;;  %v2979_v62 = vmul.f32 %v2978_v17, %v6775_v36  ;;  %v2989_v52 = vadd.f32 0.014752088, %v2988_v20  ;;  %v2967_v0 = vand.u32 2147483648, %v2955_v40 }
 0x26d   : > { %v1655_v5 = vmul.f32 2.1237322e-06, %v6813_v48  ;;  %v1666_v32 = vmul.f32 3.8918573e-05, %v6813_v48  ;;  %v3275_v24 = vadd.f32 1.0, %v3857_v14  ;;  %v490_v4 = vmul.f32 %v4640_v22, %v420_v25 }
 0x26e   : > { %v6821_v49 = vadd.f32 1.0, %v1634_v37  ;;  %v4151_v33 = vpop.eup %4150  ;;  %v2980_v30 = vadd.f32 0.05243302, %v2979_v62  ;;  %v2990_v45 = vmul.f32 %v2989_v52, %v6775_v36  ;;  %vm2961_vm12 = vweird.f32 %v2955_v40  ;;  %v421_v52 = vld [vmem:[%s4620_s28 + $0x1d8] sm:$0xff] }
 0x26f   : > { %v1656_v60 = vadd.f32 0.00028619796, %v1655_v5  ;;  %v1667_v13 = vadd.f32 0.001143296, %v1666_v32  ;;  %v3339_v8 = vmul.f32 %v3275_v24, %v587_v9  ;;  %v2957_v34 = vmul.f32 %v4151_v33, %v2955_v40 }
 0x270   : > { %vm6825_vm13 = vcmp.eq.f32.partialorder %v2965_v7, 8.507059e+37  ;;  %vm2962_vm14 = vweird.f32 %v4151_v33  ;;  %v1624_v42 = vadd.f32 1.1283791, %v1623_v31  ;;  %4152 = vrcp.f32 %v6821_v49 }
 0x271   : > { %v1645_v10 = vand.u32 2147483647, %v6821_v49  ;;  %3466 = vmatmul.f32.gmra.mxu0 %v3339_v8  ;;  %v2958_v38 = vsub.f32 1.0, %v2957_v34  ;;  %v2981_v53 = vmul.f32 %v2980_v30, %v6775_v36  ;;  %v2991_v57 = vadd.f32 0.112945676, %v2990_v45  ;;  %vm6842_vm15 = vmor %vm2961_vm12, %vm2962_vm14 }
 0x272   : > { %v1657_v18 = vmul.f32 %v1656_v60, %v6813_v48  ;;  %v2968_v15 = vor.u32 1.1754944e-38, %v2967_v0  ;;  %v1647_v6 = vand.u32 2147483648, %v6821_v49  ;;  %v1668_v61 = vmul.f32 %v1667_v13, %v6813_v48 }
 0x273   : > { %v6837_v3 = vadd.f32 %v4647_v27, %v490_v4  ;;  %v2959_v11 = vmul.f32 %v4151_v33, %v2958_v38  ;;  %v2982_v26 = vadd.f32 0.18741608, %v2981_v53  ;;  %v2992_v16 = vmul.f32 %v2991_v57, %v6775_v36 }
 0x274   : > { %v1658_v50 = vadd.f32 0.0036580483, %v1657_v18  ;;  %v1625_v12 = vmul.f32 %v1624_v42, %v6709_v54  ;;  %v1669_v47 = vadd.f32 0.014752088, %v1668_v61  ;;  %v457_v9 = vmul.f32 %v4642_v23, %v387_v63 }
 0x275   : > { %v6848_v19 = vmul.f32 0.70710677, %v6837_v3  ;;  %v2960_v29 = vadd.f32 %v4151_v33, %v2959_v11  ;;  %vm1641_vm0 = vweird.f32 %v6821_v49  ;;  %vm6852_vm1 = vcmp.eq.f32.partialorder %v1645_v10, 8.507059e+37 }
 0x276   : > { %v2993_v40 = vadd.f32 0.4994258, %v2992_v16  ;;  %v4153_v2 = vpop.eup %4152  ;;  %v2983_v46 = vmul.f32 %v2982_v26, %v6775_v36  ;;  %v1659_v54 = vmul.f32 %v1658_v50, %v6813_v48  ;;  %v1670_v59 = vmul.f32 %v1669_v47, %v6813_v48  ;;  %v388_v50 = vld [vmem:[%s4620_s28 + $0xd0] sm:$0xff] }
 0x277   : > { %v3013_v43 = vmul.f32 %v6848_v19, %v6848_v19  ;;  %v2964_v17 = vsel %vm6842_vm15, %v4151_v33, %v2960_v29  ;;  %v1637_v20 = vmul.f32 %v4153_v2, %v6821_v49  ;;  %v1648_v25 = vor.u32 1.1754944e-38, %v1647_v6 }
 0x278   : > { %v6865_v14 = vadd.f32 %v4649_v28, %v457_v9  ;;  %v2969_v7 = vsel %vm6825_vm13, %v2968_v15, %v2964_v17  ;;  %v2994_v31 = vmul.f32 %v2993_v40, %v6775_v36  ;;  %v1660_v37 = vadd.f32 0.05243302, %v1659_v54 }
 0x279   : > { %v1671_v62 = vadd.f32 0.112945676, %v1670_v59  ;;  %v2970_v5 = vmul.f32 %v2969_v7, %v6807_v55  ;;  %v1638_v32 = vsub.f32 1.0, %v1637_v20  ;;  %vm1642_vm2 = vweird.f32 %v4153_v2 }
 0x27a   : > { %v6872_v24 = vmin.f32 %v3013_v43, 16.0  ;;  %v2984_v0 = vadd.f32 1.1283791, %v2983_v46  ;;  %v2995_v4 = vadd.f32 1.0, %v2994_v31  ;;  %v1661_v33 = vmul.f32 %v1660_v37, %v6813_v48  ;;  %vm6880_vm3 = vmor %vm1641_vm0, %vm1642_vm2 }
 0x27b   : > { %v1672_v30 = vmul.f32 %v1671_v62, %v6813_v48  ;;  %v3891_v45 = vclamps-f32 %v2970_v5, 1.0  ;;  %v1639_v60 = vmul.f32 %v4153_v2, %v1638_v32  ;;  %v491_v36 = vmul.f32 %v4642_v23, %v421_v52 }
 0x27c   : > { %v3015_v13 = vmul.f32 2.1237322e-06, %v6872_v24  ;;  %4154 = vrcp.f32 %v2995_v4  ;;  %v3005_v8 = vand.u32 2147483647, %v2995_v4  ;;  %v3026_v34 = vmul.f32 3.8918573e-05, %v6872_v24 }
 0x27d   : > { %v6886_v51 = vmul.f32 0.70710677, %v6865_v14  ;;  %v3309_v42 = vadd.f32 1.0, %v3891_v45  ;;  %v1640_v10 = vadd.f32 %v4153_v2, %v1639_v60  ;;  %v1662_v38 = vadd.f32 0.18741608, %v1661_v33 }
 0x27e   : > { %v1673_v53 = vadd.f32 0.4994258, %v1672_v30  ;;  %v6889_v57 = vmul.f32 %v2984_v0, %v6751_v21  ;;  %vm3001_vm4 = vweird.f32 %v2995_v4  ;;  %v3007_v49 = vand.u32 2147483648, %v2995_v4 }
 0x27f   : > { %v3016_v18 = vadd.f32 0.00028619796, %v3015_v13  ;;  %v3373_v63 = vmul.f32 %v3309_v42, %v6800_v44  ;;  %v1644_v15 = vsel %vm6880_vm3, %v4153_v2, %v1640_v10  ;;  %v1663_v6 = vmul.f32 %v1662_v38, %v6813_v48 }
 0x280   : > { %v1674_v61 = vmul.f32 %v1673_v53, %v6813_v48  ;;  %v1649_v11 = vsel %vm6852_vm1, %v1648_v25, %v1644_v15  ;;  %v3027_v16 = vadd.f32 0.001143296, %v3026_v34  ;;  %v1693_v21 = vmul.f32 %v6886_v51, %v6886_v51 }
 0x281   : > { %v3017_v26 = vmul.f32 %v3016_v18, %v6872_v24  ;;  %3517 = vmatmul.f32.gmra.mxu2 %v3373_v63  ;;  %v1650_v35 = vmul.f32 %v1649_v11, %v1625_v12  ;;  %vm6902_vm5 = vcmp.eq.f32.partialorder %v3005_v8, 8.507059e+37  ;;  %v1664_v47 = vadd.f32 1.1283791, %v1663_v6 }
 0x282   : > { %v1675_v9 = vadd.f32 1.0, %v1674_v61  ;;  %v4155_v29 = vpop.eup %4154  ;;  %v3008_v48 = vor.u32 1.1754944e-38, %v3007_v49  ;;  %v3028_v41 = vmul.f32 %v3027_v16, %v6872_v24  ;;  %v6907_v2 = vmin.f32 %v1693_v21, 16.0 }
 0x283   : > { %v3018_v40 = vadd.f32 0.0036580483, %v3017_v26  ;;  %v3858_v46 = vclamps-f32 %v1650_v35, 1.0  ;;  %v2997_v54 = vmul.f32 %v4155_v29, %v2995_v4  ;;  %v6910_v59 = vadd.f32 %v4649_v28, %v491_v36 }
 0x284   : > { %v458_v12 = vmul.f32 %v4640_v22, %v388_v50  ;;  %vm3002_vm6 = vweird.f32 %v4155_v29  ;;  %v6914_v43 = vmul.f32 %v1664_v47, %v6766_v56  ;;  %4156 = vrcp.f32 %v1675_v9 }
 0x285   : > { %v1685_v17 = vand.u32 2147483647, %v1675_v9  ;;  %v3276_v20 = vadd.f32 1.0, %v3858_v46  ;;  %v2998_v25 = vsub.f32 1.0, %v2997_v54  ;;  %v3019_v7 = vmul.f32 %v3018_v40, %v6872_v24  ;;  %vm6923_vm8 = vmor %vm3001_vm4, %vm3002_vm6 }
 0x286   : > { %v3029_v31 = vadd.f32 0.014752088, %v3028_v41  ;;  %vm1681_vm7 = vweird.f32 %v1675_v9  ;;  %v1687_v37 = vand.u32 2147483648, %v1675_v9  ;;  %v1695_v62 = vmul.f32 2.1237322e-06, %v6907_v2 }
 0x287   : > { %v1706_v52 = vmul.f32 3.8918573e-05, %v6907_v2  ;;  %v3340_v5 = vmul.f32 %v3276_v20, %v6803_v58  ;;  %v2999_v32 = vmul.f32 %v4155_v29, %v2998_v25  ;;  %v3020_v0 = vadd.f32 0.05243302, %v3019_v7 }
 0x288   : > { %v3030_v56 = vmul.f32 %v3029_v31, %v6872_v24  ;;  %v1696_v30 = vadd.f32 0.00028619796, %v1695_v62  ;;  %v6928_v60 = vmul.f32 0.70710677, %v6910_v59  ;;  %v6931_v13 = vadd.f32 %v4647_v27, %v458_v12 }
 0x289   : > { %v1707_v45 = vadd.f32 0.001143296, %v1706_v52  ;;  %3579 = vmatmul.f32.gmra.mxu1 %v3340_v5  ;;  %v3000_v58 = vadd.f32 %v4155_v29, %v2999_v32  ;;  %vm6933_vm9 = vcmp.eq.f32.partialorder %v1685_v17, 8.507059e+37  ;;  %v3021_v4 = vmul.f32 %v3020_v0, %v6872_v24 }
 0x28a   : > { %v3031_v55 = vadd.f32 0.112945676, %v3030_v56  ;;  %v4157_v8 = vpop.eup %4156  ;;  %v1697_v34 = vmul.f32 %v1696_v30, %v6907_v2  ;;  %v3053_v10 = vmul.f32 %v6928_v60, %v6928_v60  ;;  %v6943_v38 = vmul.f32 0.70710677, %v6931_v13 }
 0x28b   : > { %v1708_v42 = vmul.f32 %v1707_v45, %v6907_v2  ;;  %v3004_v53 = vsel %vm6923_vm8, %v4155_v29, %v3000_v58  ;;  %v1677_v49 = vmul.f32 %v4157_v8, %v1675_v9  ;;  %vm1682_vm10 = vweird.f32 %v4157_v8 }
 0x28c   : > { %v3022_v18 = vadd.f32 0.18741608, %v3021_v4  ;;  %v3009_v63 = vsel %vm6902_vm5, %v3008_v48, %v3004_v53  ;;  %v3032_v15 = vmul.f32 %v3031_v55, %v6872_v24  ;;  %v1698_v6 = vadd.f32 0.0036580483, %v1697_v34  ;;  %vm6961_vm11 = vmor %vm1681_vm7, %vm1682_vm10 }
 0x28d   : > { %v1709_v61 = vadd.f32 0.014752088, %v1708_v42  ;;  %v3010_v11 = vmul.f32 %v3009_v63, %v6889_v57  ;;  %v1678_v26 = vsub.f32 1.0, %v1677_v49  ;;  %v6952_v21 = vmin.f32 %v3053_v10, 16.0  ;;  %v389_v57 = vld [vmem:[%s4620_s28 + $0xd8] sm:$0xff] }
 0x28e   : > { %v3023_v16 = vmul.f32 %v3022_v18, %v6872_v24  ;;  %v1688_v50 = vor.u32 1.1754944e-38, %v1687_v37  ;;  %v3033_v35 = vadd.f32 0.4994258, %v3032_v15  ;;  %v1699_v47 = vmul.f32 %v1698_v6, %v6907_v2 }
 0x28f   : > { %v1710_v29 = vmul.f32 %v1709_v61, %v6907_v2  ;;  %v3892_v40 = vclamps-f32 %v3010_v11, 1.0  ;;  %v1679_v44 = vmul.f32 %v4157_v8, %v1678_v26  ;;  %v3055_v48 = vmul.f32 2.1237322e-06, %v6952_v21 }
 0x290   : > { %v1733_v41 = vmul.f32 %v6943_v38, %v6943_v38  ;;  %v3034_v46 = vmul.f32 %v3033_v35, %v6872_v24  ;;  %v1700_v54 = vadd.f32 0.05243302, %v1699_v47  ;;  %v3066_v17 = vmul.f32 3.8918573e-05, %v6952_v21 }
 0x291   : > { %v1711_v12 = vadd.f32 0.112945676, %v1710_v29  ;;  %v3310_v20 = vadd.f32 1.0, %v3892_v40  ;;  %v1680_v25 = vadd.f32 %v4157_v8, %v1679_v44  ;;  %v3024_v7 = vadd.f32 1.1283791, %v3023_v16 }
 0x292   : > { %v3056_v31 = vadd.f32 0.00028619796, %v3055_v48  ;;  %v3035_v37 = vadd.f32 1.0, %v3034_v46  ;;  %v1701_v62 = vmul.f32 %v1700_v54, %v6907_v2  ;;  %v3067_v9 = vadd.f32 0.001143296, %v3066_v17 }
 0x293   : > { %v1712_v52 = vmul.f32 %v1711_v12, %v6907_v2  ;;  %v3374_v5 = vmul.f32 %v3310_v20, %v6810_v39  ;;  %v1684_v24 = vsel %vm6961_vm11, %v4157_v8, %v1680_v25  ;;  %v589_v0 = vmul.f32 0.5, %v6754_v1  ;;  %v422_v8 = vld [vmem:[%s4620_s28 + $0x1e0] sm:$0xff] }
 0x294   : > { %v3057_v32 = vmul.f32 %v3056_v31, %v6952_v21  ;;  %v1689_v56 = vsel %vm6933_vm9, %v1688_v50, %v1684_v24  ;;  %v6977_v33 = vmul.f32 0.5, %v6837_v3  ;;  %4158 = vrcp.f32 %v3035_v37 }
 0x295   : > { %3630 = vmatmul.f32.gmra.mxu3 %v3374_v5  ;;  %v1690_v30 = vmul.f32 %v1689_v56, %v6914_v43  ;;  %v6981_v39 = vmul.f32 0.5, %v6865_v14  ;;  %v1702_v45 = vadd.f32 0.18741608, %v1701_v62  ;;  %v1713_v58 = vadd.f32 0.4994258, %v1712_v52 }
 0x296   : > { %v6984_v4 = vmul.f32 %v3024_v7, %v6848_v19  ;;  %v3058_v55 = vadd.f32 0.0036580483, %v3057_v32  ;;  %v3068_v1 = vmul.f32 %v3067_v9, %v6952_v21  ;;  %v6987_v36 = vmin.f32 %v1733_v41, 16.0 }
 0x297   : > { %v3859_v3 = vclamps-f32 %v1690_v30, 1.0  ;;  %v3045_v34 = vand.u32 2147483647, %v3035_v37  ;;  %v1703_v42 = vmul.f32 %v1702_v45, %v6907_v2  ;;  %v1714_v43 = vmul.f32 %v1713_v58, %v6907_v2 }
 0x298   : > { %v3059_v14 = vmul.f32 %v3058_v55, %v6952_v21  ;;  %v3069_v10 = vadd.f32 0.014752088, %v3068_v1  ;;  %v1735_v53 = vmul.f32 2.1237322e-06, %v6987_v36  ;;  %v1746_v19 = vmul.f32 3.8918573e-05, %v6987_v36 }
 0x299   : > { %v3277_v49 = vadd.f32 1.0, %v3859_v3  ;;  %v3047_v18 = vand.u32 2147483648, %v3035_v37  ;;  %v6995_v63 = vadd.f32 1.0, %v1714_v43  ;;  %v492_v15 = vmul.f32 %v4640_v22, %v422_v8 }
 0x29a   : > { %v4159_v6 = vpop.eup %4158  ;;  %v3060_v61 = vadd.f32 0.05243302, %v3059_v14  ;;  %v3070_v11 = vmul.f32 %v3069_v10, %v6952_v21  ;;  %v1736_v26 = vadd.f32 0.00028619796, %v1735_v53  ;;  %v1747_v2 = vadd.f32 0.001143296, %v1746_v19 }
 0x29b   : > { %v3341_v16 = vmul.f32 %v3277_v49, %v589_v0  ;;  %v3037_v50 = vmul.f32 %v4159_v6, %v3035_v37  ;;  %vm3041_vm12 = vweird.f32 %v3035_v37  ;;  %v7000_v35 = vmul.f32 0.5, %v6910_v59  ;;  %v423_v19 = vld [vmem:[%s4620_s28 + $0x1e8] sm:$0xff] }
 0x29c   : > { %vm3042_vm13 = vweird.f32 %v4159_v6  ;;  %vm7002_vm14 = vcmp.eq.f32.partialorder %v3045_v34, 8.507059e+37  ;;  %v1704_v29 = vadd.f32 1.1283791, %v1703_v42  ;;  %4160 = vrcp.f32 %v6995_v63 }
 0x29d   : > { %3469 = vmatmul.f32.gmra.mxu0 %v3341_v16  ;;  %v3038_v40 = vsub.f32 1.0, %v3037_v50  ;;  %v3061_v44 = vmul.f32 %v3060_v61, %v6952_v21  ;;  %v3071_v48 = vadd.f32 0.112945676, %v3070_v11  ;;  %v1737_v41 = vmul.f32 %v1736_v26, %v6987_v36  ;;  %vm7018_vm15 = vmor %vm3041_vm12, %vm3042_vm13 }
 0x29e   : > { %v3048_v46 = vor.u32 1.1754944e-38, %v3047_v18  ;;  %v1725_v59 = vand.u32 2147483647, %v6995_v63  ;;  %v1748_v54 = vmul.f32 %v1747_v2, %v6987_v36  ;;  %v7013_v12 = vadd.f32 %v4647_v27, %v492_v15 }
 0x29f   : > { %v3039_v17 = vmul.f32 %v4159_v6, %v3038_v40  ;;  %v3062_v20 = vadd.f32 0.18741608, %v3061_v44  ;;  %v3072_v25 = vmul.f32 %v3071_v48, %v6952_v21  ;;  %v1738_v7 = vadd.f32 0.0036580483, %v1737_v41 }
 0x2a0   : > { %v1705_v62 = vmul.f32 %v1704_v29, %v6886_v51  ;;  %v1749_v52 = vadd.f32 0.014752088, %v1748_v54  ;;  %v7024_v9 = vmul.f32 0.70710677, %v7013_v12  ;;  %v459_v5 = vmul.f32 %v4642_v23, %v389_v57 }
 0x2a1   : > { %v3040_v24 = vadd.f32 %v4159_v6, %v3039_v17  ;;  %vm1721_vm0 = vweird.f32 %v6995_v63  ;;  %v1727_v32 = vand.u32 2147483648, %v6995_v63  ;;  %v3073_v0 = vadd.f32 0.4994258, %v3072_v25 }
 0x2a2   : > { %v4161_v56 = vpop.eup %4160  ;;  %v3063_v37 = vmul.f32 %v3062_v20, %v6952_v21  ;;  %v1739_v30 = vmul.f32 %v1738_v7, %v6987_v36  ;;  %v1750_v51 = vmul.f32 %v1749_v52, %v6987_v36  ;;  %v3093_v45 = vmul.f32 %v7024_v9, %v7024_v9 }
 0x2a3   : > { %v3044_v58 = vsel %vm7018_vm15, %v4159_v6, %v3040_v24  ;;  %v1717_v55 = vmul.f32 %v4161_v56, %v6995_v63  ;;  %vm7037_vm1 = vcmp.eq.f32.partialorder %v1725_v59, 8.507059e+37  ;;  %v7042_v8 = vadd.f32 %v4649_v28, %v459_v5  ;;  %v390_v5 = vld [vmem:[%s4620_s28 + $0xe0] sm:$0xff] }
 0x2a4   : > { %v3049_v3 = vsel %vm7002_vm14, %v3048_v46, %v3044_v58  ;;  %v3074_v34 = vmul.f32 %v3073_v0, %v6952_v21  ;;  %v1740_v42 = vadd.f32 0.05243302, %v1739_v30  ;;  %v1751_v43 = vadd.f32 0.112945676, %v1750_v51 }
 0x2a5   : > { %v3050_v14 = vmul.f32 %v3049_v3, %v6984_v4  ;;  %v1718_v10 = vsub.f32 1.0, %v1717_v55  ;;  %vm1722_vm2 = vweird.f32 %v4161_v56  ;;  %v7048_v53 = vmin.f32 %v3093_v45, 16.0 }
 0x2a6   : > { %v3064_v49 = vadd.f32 1.1283791, %v3063_v37  ;;  %v3075_v18 = vadd.f32 1.0, %v3074_v34  ;;  %v1741_v15 = vmul.f32 %v1740_v42, %v6987_v36  ;;  %v1752_v6 = vmul.f32 %v1751_v43, %v6987_v36  ;;  %vm7056_vm3 = vmor %vm1721_vm0, %vm1722_vm2 }
 0x2a7   : > { %v3893_v61 = vclamps-f32 %v3050_v14, 1.0  ;;  %v1719_v11 = vmul.f32 %v4161_v56, %v1718_v10  ;;  %v1728_v26 = vor.u32 1.1754944e-38, %v1727_v32  ;;  %v3095_v21 = vmul.f32 2.1237322e-06, %v7048_v53 }
 0x2a8   : > { %4162 = vrcp.f32 %v3075_v18  ;;  %v3106_v2 = vmul.f32 3.8918573e-05, %v7048_v53  ;;  %v7062_v16 = vmul.f32 0.70710677, %v7042_v8  ;;  %v493_v50 = vmul.f32 %v4642_v23, %v423_v19 }
 0x2a9   : > { %v3311_v47 = vadd.f32 1.0, %v3893_v61  ;;  %v1720_v29 = vadd.f32 %v4161_v56, %v1719_v11  ;;  %v1742_v40 = vadd.f32 0.18741608, %v1741_v15  ;;  %v1753_v44 = vadd.f32 0.4994258, %v1752_v6 }
 0x2aa   : > { %v7066_v48 = vmul.f32 %v3064_v49, %v6928_v60  ;;  %v3085_v63 = vand.u32 2147483647, %v3075_v18  ;;  %v3087_v41 = vand.u32 2147483648, %v3075_v18  ;;  %v3096_v57 = vadd.f32 0.00028619796, %v3095_v21 }
 0x2ab   : > { %v3375_v46 = vmul.f32 %v3311_v47, %v6977_v33  ;;  %v1724_v59 = vsel %vm7056_vm3, %v4161_v56, %v1720_v29  ;;  %v1743_v54 = vmul.f32 %v1742_v40, %v6987_v36  ;;  %v1754_v17 = vmul.f32 %v1753_v44, %v6987_v36 }
 0x2ac   : > { %v1729_v20 = vsel %vm7037_vm1, %v1728_v26, %v1724_v59  ;;  %v3097_v25 = vmul.f32 %v3096_v57, %v7048_v53  ;;  %v3107_v60 = vadd.f32 0.001143296, %v3106_v2  ;;  %v1773_v7 = vmul.f32 %v7062_v16, %v7062_v16 }
 0x2ad   : > { %3520 = vmatmul.f32.gmra.mxu2 %v3375_v46  ;;  %v1730_v31 = vmul.f32 %v1729_v20, %v1705_v62  ;;  %vm3081_vm4 = vweird.f32 %v3075_v18  ;;  %v1744_v33 = vadd.f32 1.1283791, %v1743_v54  ;;  %v1755_v52 = vadd.f32 1.0, %v1754_v17 }
 0x2ae   : > { %v4163_v24 = vpop.eup %4162  ;;  %vm7079_vm5 = vcmp.eq.f32.partialorder %v3085_v63, 8.507059e+37  ;;  %v3098_v36 = vadd.f32 0.0036580483, %v3097_v25  ;;  %v3108_v0 = vmul.f32 %v3107_v60, %v7048_v53  ;;  %v7084_v56 = vmin.f32 %v1773_v7, 16.0 }
 0x2af   : > { %v3860_v37 = vclamps-f32 %v1730_v31, 1.0  ;;  %v3077_v30 = vmul.f32 %v4163_v24, %v3075_v18  ;;  %v3088_v51 = vor.u32 1.1754944e-38, %v3087_v41  ;;  %v7087_v45 = vadd.f32 %v4649_v28, %v493_v50 }
 0x2b0   : > { %vm3082_vm6 = vweird.f32 %v4163_v24  ;;  %v7090_v62 = vmul.f32 %v1744_v33, %v6943_v38  ;;  %4164 = vrcp.f32 %v1755_v52  ;;  %v460_v58 = vmul.f32 %v4640_v22, %v390_v5 }
 0x2b1   : > { %v3278_v55 = vadd.f32 1.0, %v3860_v37  ;;  %v3078_v1 = vsub.f32 1.0, %v3077_v30  ;;  %v3099_v3 = vmul.f32 %v3098_v36, %v7048_v53  ;;  %v3109_v34 = vadd.f32 0.014752088, %v3108_v0  ;;  %vm7100_vm8 = vmor %vm3081_vm4, %vm3082_vm6 }
 0x2b2   : > { %vm1761_vm7 = vweird.f32 %v1755_v52  ;;  %v1765_v42 = vand.u32 2147483647, %v1755_v52  ;;  %v1775_v43 = vmul.f32 2.1237322e-06, %v7084_v56  ;;  %v1786_v14 = vmul.f32 3.8918573e-05, %v7084_v56 }
 0x2b3   : > { %v3342_v10 = vmul.f32 %v3278_v55, %v6981_v39  ;;  %v3079_v19 = vmul.f32 %v4163_v24, %v3078_v1  ;;  %v3100_v49 = vadd.f32 0.05243302, %v3099_v3  ;;  %v3110_v38 = vmul.f32 %v3109_v34, %v7048_v53 }
 0x2b4   : > { %v1776_v6 = vadd.f32 0.00028619796, %v1775_v43  ;;  %v1787_v61 = vadd.f32 0.001143296, %v1786_v14  ;;  %v7105_v11 = vmul.f32 0.70710677, %v7087_v45  ;;  %v7108_v26 = vadd.f32 %v4647_v27, %v460_v58 }
 0x2b5   : > { %3582 = vmatmul.f32.gmra.mxu1 %v3342_v10  ;;  %v3080_v39 = vadd.f32 %v4163_v24, %v3079_v19  ;;  %v1767_v21 = vand.u32 2147483648, %v1755_v52  ;;  %v3101_v4 = vmul.f32 %v3100_v49, %v7048_v53  ;;  %v3111_v2 = vadd.f32 0.112945676, %v3110_v38 }
 0x2b6   : > { %v4165_v50 = vpop.eup %4164  ;;  %vm7111_vm9 = vcmp.eq.f32.partialorder %v1765_v42, 8.507059e+37  ;;  %v1777_v47 = vmul.f32 %v1776_v6, %v7084_v56  ;;  %v1788_v29 = vmul.f32 %v1787_v61, %v7084_v56  ;;  %v3133_v40 = vmul.f32 %v7105_v11, %v7105_v11 }
 0x2b7   : > { %v3084_v44 = vsel %vm7100_vm8, %v4163_v24, %v3080_v39  ;;  %v1757_v63 = vmul.f32 %v4165_v50, %v1755_v52  ;;  %v3102_v41 = vadd.f32 0.18741608, %v3101_v4  ;;  %v7122_v57 = vmul.f32 0.70710677, %v7108_v26 }
 0x2b8   : > { %v3089_v46 = vsel %vm7079_vm5, %v3088_v51, %v3084_v44  ;;  %v3112_v59 = vmul.f32 %v3111_v2, %v7048_v53  ;;  %v1778_v54 = vadd.f32 0.0036580483, %v1777_v47  ;;  %v1789_v17 = vadd.f32 0.014752088, %v1788_v29 }
 0x2b9   : > { %v3090_v20 = vmul.f32 %v3089_v46, %v7066_v48  ;;  %v1758_v25 = vsub.f32 1.0, %v1757_v63  ;;  %vm1762_vm10 = vweird.f32 %v4165_v50  ;;  %v7128_v60 = vmin.f32 %v3133_v40, 16.0 }
 0x2ba   : > { %v1768_v7 = vor.u32 1.1754944e-38, %v1767_v21  ;;  %v3113_v31 = vadd.f32 0.4994258, %v3112_v59  ;;  %v1779_v33 = vmul.f32 %v1778_v54, %v7084_v56  ;;  %v1790_v5 = vmul.f32 %v1789_v17, %v7084_v56  ;;  %vm7135_vm11 = vmor %vm1761_vm7, %vm1762_vm10 }
 0x2bb   : > { %v3894_v24 = vclamps-f32 %v3090_v20, 1.0  ;;  %v1759_v36 = vmul.f32 %v4165_v50, %v1758_v25  ;;  %v3103_v32 = vmul.f32 %v3102_v41, %v7048_v53  ;;  %v3135_v0 = vmul.f32 2.1237322e-06, %v7128_v60 }
 0x2bc   : > { %v3114_v48 = vmul.f32 %v3113_v31, %v7048_v53  ;;  %v1780_v30 = vadd.f32 0.05243302, %v1779_v33  ;;  %v1791_v51 = vadd.f32 0.112945676, %v1790_v5  ;;  %v3146_v58 = vmul.f32 3.8918573e-05, %v7128_v60 }
 0x2bd   : > { %v3312_v55 = vadd.f32 1.0, %v3894_v24  ;;  %v1760_v1 = vadd.f32 %v4165_v50, %v1759_v36  ;;  %v3136_v3 = vadd.f32 0.00028619796, %v3135_v0  ;;  %v1813_v34 = vmul.f32 %v7122_v57, %v7122_v57 }
 0x2be   : > { %v3115_v42 = vadd.f32 1.0, %v3114_v48  ;;  %v1781_v43 = vmul.f32 %v1780_v30, %v7084_v56  ;;  %v1792_v52 = vmul.f32 %v1791_v51, %v7084_v56  ;;  %v3147_v14 = vadd.f32 0.001143296, %v3146_v58  ;;  %v391_v48 = vld [vmem:[%s4620_s28 + $0xe8] sm:$0xff] }
 0x2bf   : > { %v3376_v10 = vmul.f32 %v3312_v55, %v7000_v35  ;;  %v1764_v53 = vsel %vm7135_vm11, %v4165_v50, %v1760_v1  ;;  %v3137_v19 = vmul.f32 %v3136_v3, %v7128_v60  ;;  %v591_v49 = vmul.f32 0.5, %v6931_v13  ;;  %v424_v50 = vld [vmem:[%s4620_s28 + $0x1f0] sm:$0xff] }
 0x2c0   : > { %v1769_v38 = vsel %vm7111_vm9, %v1768_v7, %v1764_v53  ;;  %4166 = vrcp.f32 %v3115_v42  ;;  %v7154_v6 = vmul.f32 0.5, %v7013_v12  ;;  %v1782_v61 = vadd.f32 0.18741608, %v1781_v43 }
 0x2c1   : > { %3633 = vmatmul.f32.gmra.mxu3 %v3376_v10  ;;  %v1770_v15 = vmul.f32 %v1769_v38, %v7090_v62  ;;  %v1793_v39 = vadd.f32 0.4994258, %v1792_v52  ;;  %v3104_v35 = vadd.f32 1.1283791, %v3103_v32  ;;  %v3138_v21 = vadd.f32 0.0036580483, %v3137_v19 }
 0x2c2   : > { %v3148_v4 = vmul.f32 %v3147_v14, %v7128_v60  ;;  %v7157_v2 = vmin.f32 %v1813_v34, 16.0  ;;  %v3125_v47 = vand.u32 2147483647, %v3115_v42  ;;  %v1783_v18 = vmul.f32 %v1782_v61, %v7084_v56 }
 0x2c3   : > { %v3861_v13 = vclamps-f32 %v1770_v15, 1.0  ;;  %v1794_v29 = vmul.f32 %v1793_v39, %v7084_v56  ;;  %v3139_v62 = vmul.f32 %v3138_v21, %v7128_v60  ;;  %v3127_v41 = vand.u32 2147483648, %v3115_v42 }
 0x2c4   : > { %v3149_v40 = vadd.f32 0.014752088, %v3148_v4  ;;  %v1815_v12 = vmul.f32 2.1237322e-06, %v7157_v2  ;;  %v1826_v44 = vmul.f32 3.8918573e-05, %v7157_v2  ;;  %v494_v59 = vmul.f32 %v4640_v22, %v424_v50 }
 0x2c5   : > { %v3279_v63 = vadd.f32 1.0, %v3861_v13  ;;  %v7165_v46 = vadd.f32 1.0, %v1794_v29  ;;  %v3140_v17 = vadd.f32 0.05243302, %v3139_v62  ;;  %v3105_v31 = vmul.f32 %v3104_v35, %v7024_v9 }
 0x2c6   : > { %v4167_v54 = vpop.eup %4166  ;;  %v3150_v20 = vmul.f32 %v3149_v40, %v7128_v60  ;;  %v1816_v25 = vadd.f32 0.00028619796, %v1815_v12  ;;  %v1827_v56 = vadd.f32 0.001143296, %v1826_v44  ;;  %v7171_v5 = vmul.f32 0.5, %v7042_v8 }
 0x2c7   : > { %v3343_v7 = vmul.f32 %v3279_v63, %v591_v49  ;;  %v3117_v33 = vmul.f32 %v4167_v54, %v3115_v42  ;;  %vm3121_vm12 = vweird.f32 %v3115_v42  ;;  %vm3122_vm13 = vweird.f32 %v4167_v54 }
 0x2c8   : > { %v1784_v24 = vadd.f32 1.1283791, %v1783_v18  ;;  %4168 = vrcp.f32 %v7165_v46  ;;  %v3141_v32 = vmul.f32 %v3140_v17, %v7128_v60  ;;  %v3151_v0 = vadd.f32 0.112945676, %v3150_v20  ;;  %vm7188_vm15 = vmor %vm3121_vm12, %vm3122_vm13  ;;  %v425_v20 = vld [vmem:[%s4620_s28 + $0x1f8] sm:$0xff] }
 0x2c9   : > { %3472 = vmatmul.f32.gmra.mxu0 %v3343_v7  ;;  %v3118_v36 = vsub.f32 1.0, %v3117_v33  ;;  %v1817_v37 = vmul.f32 %v1816_v25, %v7157_v2  ;;  %vm7177_vm14 = vcmp.eq.f32.partialorder %v3125_v47, 8.507059e+37  ;;  %v3128_v9 = vor.u32 1.1754944e-38, %v3127_v41 }
 0x2ca   : > { %v1828_v8 = vmul.f32 %v1827_v56, %v7157_v2  ;;  %v7183_v51 = vadd.f32 %v4647_v27, %v494_v59  ;;  %v3142_v55 = vadd.f32 0.18741608, %v3141_v32  ;;  %v3152_v1 = vmul.f32 %v3151_v0, %v7128_v60 }
 0x2cb   : > { %v3119_v58 = vmul.f32 %v4167_v54, %v3118_v36  ;;  %v1818_v3 = vadd.f32 0.0036580483, %v1817_v37  ;;  %v1785_v43 = vmul.f32 %v1784_v24, %v7062_v16  ;;  %v461_v10 = vmul.f32 %v4642_v23, %v391_v48 }
 0x2cc   : > { %v1829_v52 = vadd.f32 0.014752088, %v1828_v8  ;;  %v7194_v14 = vmul.f32 0.70710677, %v7183_v51  ;;  %vm1801_vm0 = vweird.f32 %v7165_v46  ;;  %v1805_v19 = vand.u32 2147483647, %v7165_v46 }
 0x2cd   : > { %v3120_v53 = vadd.f32 %v4167_v54, %v3119_v58  ;;  %v3153_v49 = vadd.f32 0.4994258, %v3152_v1  ;;  %v1807_v42 = vand.u32 2147483648, %v7165_v46  ;;  %v1819_v15 = vmul.f32 %v1818_v3, %v7157_v2 }
 0x2ce   : > { %v4169_v38 = vpop.eup %4168  ;;  %v1830_v61 = vmul.f32 %v1829_v52, %v7157_v2  ;;  %v3173_v16 = vmul.f32 %v7194_v14, %v7194_v14  ;;  %v3143_v21 = vmul.f32 %v3142_v55, %v7128_v60  ;;  %v7209_v4 = vadd.f32 %v4649_v28, %v461_v10 }
 0x2cf   : > { %v3124_v39 = vsel %vm7188_vm15, %v4167_v54, %v3120_v53  ;;  %v1797_v35 = vmul.f32 %v4169_v38, %v7165_v46  ;;  %v3154_v13 = vmul.f32 %v3153_v49, %v7128_v60  ;;  %v1820_v47 = vadd.f32 0.05243302, %v1819_v15 }
 0x2d0   : > { %v3129_v50 = vsel %vm7177_vm14, %v3128_v9, %v3124_v39  ;;  %v1831_v18 = vadd.f32 0.112945676, %v1830_v61  ;;  %vm1802_vm1 = vweird.f32 %v4169_v38  ;;  %v7214_v40 = vmin.f32 %v3173_v16, 16.0  ;;  %v392_v16 = vld [vmem:[%s4620_s28 + $0xf0] sm:$0xff] }
 0x2d1   : > { %v3130_v29 = vmul.f32 %v3129_v50, %v3105_v31  ;;  %v1798_v62 = vsub.f32 1.0, %v1797_v35  ;;  %vm7216_vm2 = vcmp.eq.f32.partialorder %v1805_v19, 8.507059e+37  ;;  %v3155_v44 = vadd.f32 1.0, %v3154_v13  ;;  %vm7226_vm3 = vmor %vm1801_vm0, %vm1802_vm1 }
 0x2d2   : > { %v1821_v63 = vmul.f32 %v1820_v47, %v7157_v2  ;;  %v1832_v41 = vmul.f32 %v1831_v18, %v7157_v2  ;;  %v1808_v17 = vor.u32 1.1754944e-38, %v1807_v42  ;;  %v3175_v60 = vmul.f32 2.1237322e-06, %v7214_v40 }
 0x2d3   : > { %v3895_v59 = vclamps-f32 %v3130_v29, 1.0  ;;  %v1799_v54 = vmul.f32 %v4169_v38, %v1798_v62  ;;  %v3144_v56 = vadd.f32 1.1283791, %v3143_v21  ;;  %4170 = vrcp.f32 %v3155_v44 }
 0x2d4   : > { %v3186_v7 = vmul.f32 3.8918573e-05, %v7214_v40  ;;  %v7232_v31 = vmul.f32 0.70710677, %v7209_v4  ;;  %v1822_v36 = vadd.f32 0.18741608, %v1821_v63  ;;  %v495_v46 = vmul.f32 %v4642_v23, %v425_v20 }
 0x2d5   : > { %v3313_v33 = vadd.f32 1.0, %v3895_v59  ;;  %v1800_v24 = vadd.f32 %v4169_v38, %v1799_v54  ;;  %v1833_v32 = vadd.f32 0.4994258, %v1832_v41  ;;  %v3165_v0 = vand.u32 2147483647, %v3155_v44 }
 0x2d6   : > { %v3167_v37 = vand.u32 2147483648, %v3155_v44  ;;  %v3176_v48 = vadd.f32 0.00028619796, %v3175_v60  ;;  %v1823_v8 = vmul.f32 %v1822_v36, %v7157_v2  ;;  %v3187_v3 = vadd.f32 0.001143296, %v3186_v7 }
 0x2d7   : > { %v3377_v30 = vmul.f32 %v3313_v33, %v7154_v6  ;;  %v1804_v9 = vsel %vm7226_vm3, %v4169_v38, %v1800_v24  ;;  %v1834_v58 = vmul.f32 %v1833_v32, %v7157_v2  ;;  %v1853_v34 = vmul.f32 %v7232_v31, %v7232_v31 }
 0x2d8   : > { %v1809_v55 = vsel %vm7216_vm2, %v1808_v17, %v1804_v9  ;;  %v3177_v1 = vmul.f32 %v3176_v48, %v7214_v40  ;;  %v7246_v6 = vmul.f32 0.5, %v7087_v45  ;;  %v3145_v10 = vmul.f32 %v3144_v56, %v7105_v11 }
 0x2d9   : > { %3523 = vmatmul.f32.gmra.mxu2 %v3377_v30  ;;  %v1810_v52 = vmul.f32 %v1809_v55, %v1785_v43  ;;  %v1835_v53 = vadd.f32 1.0, %v1834_v58  ;;  %v4171_v19 = vpop.eup %4170  ;;  %vm3161_vm4 = vweird.f32 %v3155_v44  ;;  %v3188_v49 = vmul.f32 %v3187_v3, %v7214_v40 }
 0x2da   : > { %v3178_v2 = vadd.f32 0.0036580483, %v3177_v1  ;;  %v7250_v38 = vmin.f32 %v1853_v34, 16.0  ;;  %v3157_v15 = vmul.f32 %v4171_v19, %v3155_v44  ;;  %vm7252_vm5 = vcmp.eq.f32.partialorder %v3165_v0, 8.507059e+37 }
 0x2db   : > { %v3862_v42 = vclamps-f32 %v1810_v52, 1.0  ;;  %v3168_v43 = vor.u32 1.1754944e-38, %v3167_v37  ;;  %vm3162_vm6 = vweird.f32 %v4171_v19  ;;  %v1824_v45 = vadd.f32 1.1283791, %v1823_v8 }
 0x2dc   : > { %4172 = vrcp.f32 %v1835_v53  ;;  %v7258_v11 = vadd.f32 %v4649_v28, %v495_v46  ;;  %v3158_v35 = vsub.f32 1.0, %v3157_v15  ;;  %v3179_v21 = vmul.f32 %v3178_v2, %v7214_v40  ;;  %vm7268_vm7 = vmor %vm3161_vm4, %vm3162_vm6 }
 0x2dd   : > { %v3280_v39 = vadd.f32 1.0, %v3862_v42  ;;  %v3189_v50 = vadd.f32 0.014752088, %v3188_v49  ;;  %v1845_v13 = vand.u32 2147483647, %v1835_v53  ;;  %v462_v29 = vmul.f32 %v4640_v22, %v392_v16 }
 0x2de   : > { %v1855_v47 = vmul.f32 2.1237322e-06, %v7250_v38  ;;  %v1866_v18 = vmul.f32 3.8918573e-05, %v7250_v38  ;;  %v3159_v12 = vmul.f32 %v4171_v19, %v3158_v35  ;;  %v3180_v63 = vadd.f32 0.05243302, %v3179_v21 }
 0x2df   : > { %v3344_v62 = vmul.f32 %v3280_v39, %v7171_v5  ;;  %v3190_v41 = vmul.f32 %v3189_v50, %v7214_v40  ;;  %v1825_v54 = vmul.f32 %v1824_v45, %v7122_v57  ;;  %v7274_v20 = vmul.f32 0.70710677, %v7258_v11 }
 0x2e0   : > { %v1856_v17 = vadd.f32 0.00028619796, %v1855_v47  ;;  %v1867_v60 = vadd.f32 0.001143296, %v1866_v18  ;;  %v3160_v22 = vadd.f32 %v4171_v19, %v3159_v12  ;;  %vm1841_vm8 = vweird.f32 %v1835_v53 }
 0x2e1   : > { %3585 = vmatmul.f32.gmra.mxu1 %v3344_v62  ;;  %v1847_v5 = vand.u32 2147483648, %v1835_v53  ;;  %v3191_v25 = vadd.f32 0.112945676, %v3190_v41  ;;  %v3213_v33 = vmul.f32 %v7274_v20, %v7274_v20  ;;  %v7281_v57 = vadd.f32 %v4647_v27, %v462_v29 }
 0x2e2   : > { %v4173_v56 = vpop.eup %4172  ;;  %v1857_v7 = vmul.f32 %v1856_v17, %v7250_v38  ;;  %v1868_v44 = vmul.f32 %v1867_v60, %v7250_v38  ;;  %v3164_v24 = vsel %vm7268_vm7, %v4171_v19, %v3160_v22  ;;  %vm7285_vm9 = vcmp.eq.f32.partialorder %v1845_v13, 8.507059e+37 }
 0x2e3   : > { %v1837_v36 = vmul.f32 %v4173_v56, %v1835_v53  ;;  %v3181_v0 = vmul.f32 %v3180_v63, %v7214_v40  ;;  %v3169_v37 = vsel %vm7252_vm5, %v3168_v43, %v3164_v24  ;;  %v3192_v48 = vmul.f32 %v3191_v25, %v7214_v40 }
 0x2e4   : > { %v1858_v46 = vadd.f32 0.0036580483, %v1857_v7  ;;  %v1869_v30 = vadd.f32 0.014752088, %v1868_v44  ;;  %v3170_v9 = vmul.f32 %v3169_v37, %v3145_v10  ;;  %vm1842_vm10 = vweird.f32 %v4173_v56 }
 0x2e5   : > { %v1838_v27 = vsub.f32 1.0, %v1837_v36  ;;  %v7293_v8 = vmin.f32 %v3213_v33, 16.0  ;;  %v3193_v58 = vadd.f32 0.4994258, %v3192_v48  ;;  %v7298_v3 = vmul.f32 0.70710677, %v7281_v57  ;;  %vm7302_vm11 = vmor %vm1841_vm8, %vm1842_vm10 }
 0x2e6   : > { %v1859_v55 = vmul.f32 %v1858_v46, %v7250_v38  ;;  %v1870_v1 = vmul.f32 %v1869_v30, %v7250_v38  ;;  %v3896_v34 = vclamps-f32 %v3170_v9, 1.0  ;;  %v1848_v19 = vor.u32 1.1754944e-38, %v1847_v5 }
 0x2e7   : > { %v1839_v52 = vmul.f32 %v4173_v56, %v1838_v27  ;;  %v3215_v2 = vmul.f32 2.1237322e-06, %v7293_v8  ;;  %v3194_v49 = vmul.f32 %v3193_v58, %v7214_v40  ;;  %v3226_v61 = vmul.f32 3.8918573e-05, %v7293_v8 }
 0x2e8   : > { %v1860_v42 = vadd.f32 0.05243302, %v1859_v55  ;;  %v1871_v15 = vadd.f32 0.112945676, %v1870_v1  ;;  %v3314_v43 = vadd.f32 1.0, %v3896_v34  ;;  %v1893_v53 = vmul.f32 %v7298_v3, %v7298_v3 }
 0x2e9   : > { %v1840_v16 = vadd.f32 %v4173_v56, %v1839_v52  ;;  %v3182_v45 = vadd.f32 0.18741608, %v3181_v0  ;;  %v3216_v39 = vadd.f32 0.00028619796, %v3215_v2  ;;  %v3195_v35 = vadd.f32 1.0, %v3194_v49 }
 0x2ea   : > { %v1872_v21 = vmul.f32 %v1871_v15, %v7250_v38  ;;  %v3227_v50 = vadd.f32 0.001143296, %v3226_v61  ;;  %v3378_v13 = vmul.f32 %v3314_v43, %v7246_v6  ;;  %v1861_v18 = vmul.f32 %v1860_v42, %v7250_v38 }
 0x2eb   : > { %v1844_v47 = vsel %vm7302_vm11, %v4173_v56, %v1840_v16  ;;  %v3217_v29 = vmul.f32 %v3216_v39, %v7293_v8  ;;  %4174 = vrcp.f32 %v3195_v35  ;;  %v593_v41 = vmul.f32 0.5, %v7108_v26  ;;  %v393_v56 = vld [vmem:[%s4620_s28 + $0xf8] sm:$0xff] }
 0x2ec   : > { %v1849_v62 = vsel %vm7285_vm9, %v1848_v19, %v1844_v47  ;;  %3636 = vmatmul.f32.gmra.mxu3 %v3378_v13  ;;  %v1873_v63 = vadd.f32 0.4994258, %v1872_v21  ;;  %v3228_v6 = vmul.f32 %v3227_v50, %v7293_v8  ;;  %v7320_v17 = vmin.f32 %v1893_v53, 16.0 }
 0x2ed   : > { %v1850_v12 = vmul.f32 %v1849_v62, %v1825_v54  ;;  %v3218_v59 = vadd.f32 0.0036580483, %v3217_v29  ;;  %v3183_v22 = vmul.f32 %v3182_v45, %v7214_v40  ;;  %v1862_v5 = vadd.f32 0.18741608, %v1861_v18 }
 0x2ee   : > { %v1874_v25 = vmul.f32 %v1873_v63, %v7250_v38  ;;  %v3229_v7 = vadd.f32 0.014752088, %v3228_v6  ;;  %v1895_v44 = vmul.f32 2.1237322e-06, %v7320_v17  ;;  %v1906_v54 = vmul.f32 3.8918573e-05, %v7320_v17 }
 0x2ef   : > { %v3863_v60 = vclamps-f32 %v1850_v12, 1.0  ;;  %v3219_v26 = vmul.f32 %v3218_v59, %v7293_v8  ;;  %v463_v40 = vmul.f32 %v4642_v23, %v393_v56  ;;  %v3184_v46 = vadd.f32 1.1283791, %v3183_v22 }
 0x2f0   : > { %v7327_v24 = vadd.f32 1.0, %v1874_v25  ;;  %v3230_v32 = vmul.f32 %v3229_v7, %v7293_v8  ;;  %v1896_v0 = vadd.f32 0.00028619796, %v1895_v44  ;;  %v1907_v37 = vadd.f32 0.001143296, %v1906_v54 }
 0x2f1   : > { %v3281_v33 = vadd.f32 1.0, %v3863_v60  ;;  %v4175_v36 = vpop.eup %4174  ;;  %vm3201_vm12 = vweird.f32 %v3195_v35  ;;  %v3205_v9 = vand.u32 2147483647, %v3195_v35  ;;  %v3207_v27 = vand.u32 2147483648, %v3195_v35 }
 0x2f2   : > { %v3197_v30 = vmul.f32 %v4175_v36, %v3195_v35  ;;  %v1863_v58 = vmul.f32 %v1862_v5, %v7250_v38  ;;  %4176 = vrcp.f32 %v7327_v24  ;;  %vm3202_vm13 = vweird.f32 %v4175_v36 }
 0x2f3   : > { %v3345_v48 = vmul.f32 %v3281_v33, %v593_v41  ;;  %v3231_v1 = vadd.f32 0.112945676, %v3230_v32  ;;  %v1897_v34 = vmul.f32 %v1896_v0, %v7320_v17  ;;  %v3220_v52 = vadd.f32 0.05243302, %v3219_v26  ;;  %vm7342_vm14 = vmor %vm3201_vm12, %vm3202_vm13 }
 0x2f4   : > { %v3198_v55 = vsub.f32 1.0, %v3197_v30  ;;  %v1908_v19 = vmul.f32 %v1907_v37, %v7320_v17  ;;  %v7337_v23 = vadd.f32 %v4649_v28, %v463_v40  ;;  %v3185_v38 = vmul.f32 %v3184_v46, %v7194_v14 }
 0x2f5   : > { %3475 = vmatmul.f32.gmra.mxu0 %v3345_v48  ;;  %v3232_v10 = vmul.f32 %v3231_v1, %v7293_v8  ;;  %v1898_v49 = vadd.f32 0.0036580483, %v1897_v34  ;;  %v3208_v15 = vor.u32 1.1754944e-38, %v3207_v27  ;;  %vm3206_vm15 = vcmp.eq.f32.partialorder %v3205_v9, 8.507059e+37 }
 0x2f6   : > { %v3199_v2 = vmul.f32 %v4175_v36, %v3198_v55  ;;  %v1909_v61 = vadd.f32 0.014752088, %v1908_v19  ;;  %v7347_v43 = vmul.f32 0.70710677, %v7337_v23  ;;  %v1864_v28 = vadd.f32 1.1283791, %v1863_v58 }
 0x2f7   : > { %v3233_v45 = vadd.f32 0.4994258, %v3232_v10  ;;  %vm1881_vm0 = vweird.f32 %v7327_v24  ;;  %v3221_v21 = vmul.f32 %v3220_v52, %v7293_v8  ;;  %v1885_v13 = vand.u32 2147483647, %v7327_v24 }
 0x2f8   : > { %v3200_v16 = vadd.f32 %v4175_v36, %v3199_v2  ;;  %v4177_v39 = vpop.eup %4176  ;;  %v1910_v14 = vmul.f32 %v1909_v61, %v7320_v17  ;;  %v1933_v35 = vmul.f32 %v7347_v43, %v7347_v43  ;;  %v1899_v47 = vmul.f32 %v1898_v49, %v7320_v17 }
 0x2f9   : > { %v1877_v53 = vmul.f32 %v4177_v39, %v7327_v24  ;;  %v1887_v29 = vand.u32 2147483648, %v7327_v24  ;;  %v3234_v62 = vmul.f32 %v3233_v45, %v7293_v8  ;;  %vm1882_vm1 = vweird.f32 %v4177_v39 }
 0x2fa   : > { %v3204_v50 = vsel %vm7342_vm14, %v4175_v36, %v3200_v16  ;;  %v1911_v12 = vadd.f32 0.112945676, %v1910_v14  ;;  %v7361_v59 = vmin.f32 %v1933_v35, 16.0  ;;  %v627_v6 = vmul.f32 0.5, %v7183_v51  ;;  %vm1883_vm2 = vmor %vm1881_vm0, %vm1882_vm1 }
 0x2fb   : > { %v3209_v18 = vsel %vm3206_vm15, %v3208_v15, %v3204_v50  ;;  %v1878_v41 = vsub.f32 1.0, %v1877_v53  ;;  %v3222_v60 = vadd.f32 0.18741608, %v3221_v21  ;;  %v3235_v22 = vadd.f32 1.0, %v3234_v62 }
 0x2fc   : > { %v3210_v63 = vmul.f32 %v3209_v18, %v3185_v38  ;;  %v1912_v5 = vmul.f32 %v1911_v12, %v7320_v17  ;;  %v1900_v7 = vadd.f32 0.05243302, %v1899_v47  ;;  %v1935_v44 = vmul.f32 2.1237322e-06, %v7361_v59 }
 0x2fd   : > { %v1879_v56 = vmul.f32 %v4177_v39, %v1878_v41  ;;  %v1865_v54 = vmul.f32 %v1864_v28, %v7232_v31  ;;  %v1888_v33 = vor.u32 1.1754944e-38, %v1887_v29  ;;  %4178 = vrcp.f32 %v3235_v22 }
 0x2fe   : > { %v3897_v25 = vclamps-f32 %v3210_v63, 1.0  ;;  %v1946_v26 = vmul.f32 3.8918573e-05, %v7361_v59  ;;  %vm1886_vm3 = vcmp.eq.f32.partialorder %v1885_v13, 8.507059e+37  ;;  %v1913_v32 = vadd.f32 0.4994258, %v1912_v5 }
 0x2ff   : > { %v1880_v51 = vadd.f32 %v4177_v39, %v1879_v56  ;;  %v3223_v0 = vmul.f32 %v3222_v60, %v7293_v8  ;;  %v1936_v37 = vadd.f32 0.00028619796, %v1935_v44  ;;  %v1901_v46 = vmul.f32 %v1900_v7, %v7320_v17  ;;  %v3434_v60 = vpop.f32.mrf.mxu0  ;;  %v3547_v56 = vpop.f32.mrf.mxu1 }
 0x300   : > { %v3315_v36 = vadd.f32 1.0, %v3897_v25  ;;  %v1914_v31 = vmul.f32 %v1913_v32, %v7320_v17  ;;  %v1947_v9 = vadd.f32 0.001143296, %v1946_v26  ;;  %v594_v1 = vmul.f32 0.5, %v7209_v4  ;;  %v3595_v7 = vpop.f32.mrf.mxu3 }
 0x301   : > { %v1884_v48 = vsel %vm1883_vm2, %v4177_v39, %v1880_v51  ;;  %v1937_v24 = vmul.f32 %v1936_v37, %v7361_v59  ;;  %v3224_v34 = vadd.f32 1.1283791, %v3223_v0  ;;  %vm3241_vm4 = vweird.f32 %v3235_v22 }
 0x302   : > { %v3379_v40 = vmul.f32 %v3315_v36, %v627_v6  ;;  %v1889_v30 = vsel %vm1886_vm3, %v1888_v33, %v1884_v48  ;;  %v1915_v58 = vadd.f32 1.0, %v1914_v31  ;;  %v1948_v8 = vmul.f32 %v1947_v9, %v7361_v59 }
 0x303   : > { %v1890_v27 = vmul.f32 %v1889_v30, %v1865_v54  ;;  %v4179_v55 = vpop.eup %4178  ;;  %v1902_v2 = vadd.f32 0.18741608, %v1901_v46  ;;  %v3245_v10 = vand.u32 2147483647, %v3235_v22  ;;  %v3247_v49 = vand.u32 2147483648, %v3235_v22 }
 0x304   : > { %3526 = vmatmul.f32.gmra.mxu2 %v3379_v40  ;;  %v3237_v19 = vmul.f32 %v4179_v55, %v3235_v22  ;;  %4180 = vrcp.f32 %v1915_v58  ;;  %v1938_v38 = vadd.f32 0.0036580483, %v1937_v24  ;;  %vm3242_vm5 = vweird.f32 %v4179_v55  ;;  %v3482_v22 = vpop.f32.mrf.mxu2 }
 0x305   : > { %v3864_v52 = vclamps-f32 %v1890_v27, 1.0  ;;  %v1949_v61 = vadd.f32 0.014752088, %v1948_v8  ;;  %v1903_v45 = vmul.f32 %v1902_v2, %v7320_v17  ;;  %vm3243_vm6 = vmor %vm3241_vm4, %vm3242_vm5  ;;  %v3248_v39 = vor.u32 1.1754944e-38, %v3247_v49 }
 0x306   : > { %v3238_v15 = vsub.f32 1.0, %v3237_v19  ;;  %v1939_v21 = vmul.f32 %v1938_v38, %v7361_v59  ;;  %v3225_v14 = vmul.f32 %v3224_v34, %v7274_v20  ;;  %vm3246_vm7 = vcmp.eq.f32.partialorder %v3245_v10, 8.507059e+37  ;;  %v7384_v20 = vld [vmem:[%s7519_s6] ss:$0 sm:$0xff] }
 0x307   : > { %v3282_v42 = vadd.f32 1.0, %v3864_v52  ;;  %v1950_v4 = vmul.f32 %v1949_v61, %v7361_v59  ;;  %v1904_v47 = vadd.f32 1.1283791, %v1903_v45  ;;  %vm1921_vm8 = vweird.f32 %v1915_v58  ;;  %v3550_v8 = vpop.f32.mrf.mxu1 }
 0x308   : > { %v3239_v28 = vmul.f32 %v4179_v55, %v3238_v15  ;;  %v1927_v17 = vand.u32 2147483648, %v1915_v58  ;;  %v1940_v62 = vadd.f32 0.05243302, %v1939_v21  ;;  %v1925_v6 = vand.u32 2147483647, %v1915_v58  ;;  %v3598_v52 = vpop.f32.mrf.mxu3 }
 0x309   : > { %v3346_v16 = vmul.f32 %v3282_v42, %v594_v1  ;;  %v1951_v50 = vadd.f32 0.112945676, %v1950_v4  ;;  %v628_v5 = vmul.f32 0.5, %v7258_v11  ;;  %v1905_v54 = vmul.f32 %v1904_v47, %v7298_v3 }
 0x30a   : > { %v3240_v35 = vadd.f32 %v4179_v55, %v3239_v28  ;;  %v4181_v53 = vpop.eup %4180  ;;  %v3435_v26 = vadd.f32 %v7384_v20, %v3434_v60  ;;  %v1928_v51 = vor.u32 1.1754944e-38, %v1927_v17  ;;  %v1941_v32 = vmul.f32 %v1940_v62, %v7361_v59 }
 0x30b   : > { %3588 = vmatmul.f32.gmra.mxu1 %v3346_v16  ;;  %v1917_v18 = vmul.f32 %v4181_v53, %v1915_v58  ;;  %v1952_v12 = vmul.f32 %v1951_v50, %v7361_v59  ;;  %vm1922_vm9 = vweird.f32 %v4181_v53  ;;  %v3483_v11 = vadd.f32 %v7384_v20, %v3482_v22  ;;  %v3437_v58 = vpop.f32.mrf.mxu0 }
 0x30c   : > { %v3244_v13 = vsel %vm3243_vm6, %v4179_v55, %v3240_v35  ;;  %vm7391_vm10 = vmor %vm1921_vm8, %vm1922_vm9  ;;  %vm1926_vm11 = vcmp.eq.f32.partialorder %v1925_v6, 8.507059e+37  ;;  %v3548_v48 = vadd.f32 %v3547_v56, %v3435_v26  ;;  %v1942_v9 = vadd.f32 0.18741608, %v1941_v32  ;;  %v3485_v55 = vpop.f32.mrf.mxu2 }
 0x30d   : > { %v3249_v29 = vsel %vm3246_vm7, %v3248_v39, %v3244_v13  ;;  %v1918_v41 = vsub.f32 1.0, %v1917_v18  ;;  %v1953_v25 = vadd.f32 0.4994258, %v1952_v12  ;;  %v3596_v46 = vadd.f32 %v3595_v7, %v3483_v11 }
 0x30e   : > { %v3250_v63 = vmul.f32 %v3249_v29, %v3225_v14  ;;  %3643 = vst [vmem:[%s7400_s22] sm:$0xff] %v3548_v48  ;;  %v3438_v1 = vadd.f32 %v7384_v20, %v3437_v58  ;;  %v3486_v34 = vadd.f32 %v7384_v20, %v3485_v55  ;;  %v595_v19 = vmul.f32 0.5, %v7281_v57 }
 0x30f   : > { %v1919_v33 = vmul.f32 %v4181_v53, %v1918_v41  ;;  %v1954_v0 = vmul.f32 %v1953_v25, %v7361_v59  ;;  %3659 = vst [vmem:[%s7400_s22 + $0x80] sm:$0xff] %v3596_v46  ;;  %v1943_v10 = vmul.f32 %v1942_v9, %v7361_v59  ;;  %v3553_v35 = vpop.f32.mrf.mxu1  ;;  %v596_v56 = vmul.f32 0.5, %v7337_v23 }
 0x310   : > { %v3898_v44 = vclamps-f32 %v3250_v63, 1.0  ;;  %v3551_v49 = vadd.f32 %v3550_v8, %v3438_v1  ;;  %v3599_v38 = vadd.f32 %v3598_v52, %v3486_v34  ;;  %v3601_v50 = vpop.f32.mrf.mxu3 }
 0x311   : > { %v1920_v40 = vadd.f32 %v4181_v53, %v1919_v33  ;;  %v1955_v3 = vadd.f32 1.0, %v1954_v0  ;;  %v1944_v28 = vadd.f32 1.1283791, %v1943_v10 }
 0x312   : > { %v3316_v37 = vadd.f32 1.0, %v3898_v44  ;;  %3644 = vst [vmem:[%s7400_s22 + $0x8] sm:$0xff] %v3551_v49 }
 0x313   : > { %v1924_v30 = vsel %vm7391_vm10, %v4181_v53, %v1920_v40  ;;  %4182 = vrcp.f32 %v1955_v3  ;;  %3660 = vst [vmem:[%s7400_s22 + $0x88] sm:$0xff] %v3599_v38  ;;  %v1967_v45 = vand.u32 2147483648, %v1955_v3  ;;  %vm1961_vm12 = vweird.f32 %v1955_v3  ;;  %v3440_v57 = vpop.f32.mrf.mxu0 }
 0x314   : > { %v3380_v31 = vmul.f32 %v3316_v37, %v628_v5  ;;  %v1929_v24 = vsel %vm1926_vm11, %v1928_v51, %v1924_v30  ;;  %v1965_v39 = vand.u32 2147483647, %v1955_v3  ;;  %v3488_v21 = vpop.f32.mrf.mxu2  ;;  %v3441_v59 = vadd.f32 %v7384_v20, %v3440_v57 }
 0x315   : > { %v1930_v27 = vmul.f32 %v1929_v24, %v1905_v54  ;;  %v3489_v14 = vadd.f32 %v7384_v20, %v3488_v21  ;;  %v1968_v13 = vor.u32 1.1754944e-38, %v1967_v45  ;;  %v1945_v29 = vmul.f32 %v1944_v28, %v7347_v43 }
 0x316   : > { %3639 = vmatmul.f32.gmra.mxu3 %v3380_v31  ;;  %v3554_v47 = vadd.f32 %v3553_v35, %v3441_v59  ;;  %vm1966_vm15 = vcmp.eq.f32.partialorder %v1965_v39, 8.507059e+37 }
 0x317   : > { %v3865_v2 = vclamps-f32 %v1930_v27, 1.0  ;;  %v3602_v18 = vadd.f32 %v3601_v50, %v3489_v14  ;;  %v3556_v5 = vpop.f32.mrf.mxu1 }
 0x318   : > { %3645 = vst [vmem:[%s7400_s22 + $0x10] sm:$0xff] %v3554_v47  ;;  %v3604_v25 = vpop.f32.mrf.mxu3 }
 0x319   : > { %v3283_v42 = vadd.f32 1.0, %v3865_v2  ;;  %v4183_v15 = vpop.eup %4182  ;;  %3661 = vst [vmem:[%s7400_s22 + $0x90] sm:$0xff] %v3602_v18 }
 0x31a   : > { %v1957_v16 = vmul.f32 %v4183_v15, %v1955_v3  ;;  %vm1962_vm13 = vweird.f32 %v4183_v15 }
 0x31b   : > { %v3347_v61 = vmul.f32 %v3283_v42, %v595_v19  ;;  %vm1963_vm14 = vmor %vm1961_vm12, %vm1962_vm13  ;;  %v3443_v41 = vpop.f32.mrf.mxu0 }
 0x31c   : > { %v1958_v4 = vsub.f32 1.0, %v1957_v16  ;;  %v3491_v6 = vpop.f32.mrf.mxu2  ;;  %v3444_v60 = vadd.f32 %v7384_v20, %v3443_v41 }
 0x31d   : > { %3478 = vmatmul.f32.gmra.mxu0 %v3347_v61  ;;  %v3492_v22 = vadd.f32 %v7384_v20, %v3491_v6 }
 0x31e   : > { %v1959_v53 = vmul.f32 %v4183_v15, %v1958_v4  ;;  %v3557_v7 = vadd.f32 %v3556_v5, %v3444_v60 }
 0x31f   : > { %v3605_v44 = vadd.f32 %v3604_v25, %v3492_v22  ;;  %v3559_v0 = vpop.f32.mrf.mxu1 }
 0x320   : > { %v1960_v17 = vadd.f32 %v4183_v15, %v1959_v53  ;;  %3646 = vst [vmem:[%s7400_s22 + $0x18] sm:$0xff] %v3557_v7  ;;  %v3607_v23 = vpop.f32.mrf.mxu3 }
 0x321   : > { %3662 = vst [vmem:[%s7400_s22 + $0x98] sm:$0xff] %v3605_v44 }
 0x322   : > { %v1964_v62 = vsel %vm1963_vm14, %v4183_v15, %v1960_v17 }
 0x323   : > { %v1969_v12 = vsel %vm1966_vm15, %v1968_v13, %v1964_v62  ;;  %v3446_v26 = vpop.f32.mrf.mxu0 }
 0x324   : > { %v1970_v63 = vmul.f32 %v1969_v12, %v1945_v29  ;;  %v3494_v36 = vpop.f32.mrf.mxu2  ;;  %v3447_v51 = vadd.f32 %v7384_v20, %v3446_v26 }
 0x325   : > { %v3495_v32 = vadd.f32 %v7384_v20, %v3494_v36 }
 0x326   : > { %v3866_v43 = vclamps-f32 %v1970_v63, 1.0  ;;  %v3560_v11 = vadd.f32 %v3559_v0, %v3447_v51 }
 0x327   : > { %v3608_v37 = vadd.f32 %v3607_v23, %v3495_v32  ;;  %v3562_v31 = vpop.f32.mrf.mxu1 }
 0x328   : > { %v3284_v54 = vadd.f32 1.0, %v3866_v43  ;;  %3647 = vst [vmem:[%s7400_s22 + $0x20] sm:$0xff] %v3560_v11  ;;  %v3610_v30 = vpop.f32.mrf.mxu3 }
 0x329   : > { %3663 = vst [vmem:[%s7400_s22 + $0xa0] sm:$0xff] %v3608_v37 }
 0x32a   : > { %v3348_v33 = vmul.f32 %v3284_v54, %v596_v56 }
 0x32b   : > { %v3449_v40 = vpop.f32.mrf.mxu0 }
 0x32c   : > { %3591 = vmatmul.f32.gmra.mxu1 %v3348_v33  ;;  %v3497_v48 = vpop.f32.mrf.mxu2  ;;  %v3450_v3 = vadd.f32 %v7384_v20, %v3449_v40 }
 0x32d   : > { %v3498_v46 = vadd.f32 %v7384_v20, %v3497_v48 }
 0x32e   : > { %v3563_v24 = vadd.f32 %v3562_v31, %v3450_v3 }
 0x32f   : > { %v3611_v9 = vadd.f32 %v3610_v30, %v3498_v46  ;;  %v3565_v34 = vpop.f32.mrf.mxu1 }
 0x330   : > { %3648 = vst [vmem:[%s7400_s22 + $0x28] sm:$0xff] %v3563_v24  ;;  %v3613_v8 = vpop.f32.mrf.mxu3 }
 0x331   : > { %3664 = vst [vmem:[%s7400_s22 + $0xa8] sm:$0xff] %v3611_v9 }
 0x333   : > { %v3452_v27 = vpop.f32.mrf.mxu0 }
 0x334   : > { %v3500_v58 = vpop.f32.mrf.mxu2  ;;  %v3453_v55 = vadd.f32 %v7384_v20, %v3452_v27 }
 0x335   : > { %v3501_v1 = vadd.f32 %v7384_v20, %v3500_v58 }
 0x336   : > { %v3566_v52 = vadd.f32 %v3565_v34, %v3453_v55 }
 0x337   : > { %v3614_v19 = vadd.f32 %v3613_v8, %v3501_v1  ;;  %v3568_v42 = vpop.f32.mrf.mxu1 }
 0x338   : > { %3649 = vst [vmem:[%s7400_s22 + $0x30] sm:$0xff] %v3566_v52  ;;  %v3616_v15 = vpop.f32.mrf.mxu3 }
 0x339   : > { %3665 = vst [vmem:[%s7400_s22 + $0xb0] sm:$0xff] %v3614_v19 }
 0x33b   : > { %v3455_v2 = vpop.f32.mrf.mxu0 }
 0x33c   : > { %v3503_v10 = vpop.f32.mrf.mxu2  ;;  %v3456_v49 = vadd.f32 %v7384_v20, %v3455_v2 }
 0x33d   : > { %v3504_v38 = vadd.f32 %v7384_v20, %v3503_v10 }
 0x33e   : > { %v3569_v61 = vadd.f32 %v3568_v42, %v3456_v49 }
 0x33f   : > { %v3617_v16 = vadd.f32 %v3616_v15, %v3504_v38  ;;  %v3571_v57 = vpop.f32.mrf.mxu1 }
 0x340   : > { %3650 = vst [vmem:[%s7400_s22 + $0x38] sm:$0xff] %v3569_v61  ;;  %v3619_v21 = vpop.f32.mrf.mxu3 }
 0x341   : > { %3666 = vst [vmem:[%s7400_s22 + $0xb8] sm:$0xff] %v3617_v16 }
 0x343   : > { %v3458_v28 = vpop.f32.mrf.mxu0 }
 0x344   : > { %v3506_v45 = vpop.f32.mrf.mxu2  ;;  %v3459_v4 = vadd.f32 %v7384_v20, %v3458_v28 }
 0x345   : > { %v3507_v39 = vadd.f32 %v7384_v20, %v3506_v45 }
 0x346   : > { %v3572_v59 = vadd.f32 %v3571_v57, %v3459_v4 }
 0x347   : > { %v3620_v14 = vadd.f32 %v3619_v21, %v3507_v39  ;;  %v3574_v47 = vpop.f32.mrf.mxu1 }
 0x348   : > { %3651 = vst [vmem:[%s7400_s22 + $0x40] sm:$0xff] %v3572_v59  ;;  %v3622_v18 = vpop.f32.mrf.mxu3 }
 0x349   : > { %3667 = vst [vmem:[%s7400_s22 + $0xc0] sm:$0xff] %v3620_v14 }
 0x34b   : > { %v3461_v35 = vpop.f32.mrf.mxu0 }
 0x34c   : > { %v3509_v50 = vpop.f32.mrf.mxu2  ;;  %v3462_v53 = vadd.f32 %v7384_v20, %v3461_v35 }
 0x34d   : > { %v3510_v13 = vadd.f32 %v7384_v20, %v3509_v50 }
 0x34e   : > { %v3575_v29 = vadd.f32 %v3574_v47, %v3462_v53 }
 0x34f   : > { %v3623_v17 = vadd.f32 %v3622_v18, %v3510_v13  ;;  %v3577_v6 = vpop.f32.mrf.mxu1 }
 0x350   : > { %3652 = vst [vmem:[%s7400_s22 + $0x48] sm:$0xff] %v3575_v29  ;;  %v3625_v60 = vpop.f32.mrf.mxu3 }
 0x351   : > { %3668 = vst [vmem:[%s7400_s22 + $0xc8] sm:$0xff] %v3623_v17 }
 0x353   : > { %v3464_v62 = vpop.f32.mrf.mxu0 }
 0x354   : > { %v3512_v12 = vpop.f32.mrf.mxu2  ;;  %v3465_v63 = vadd.f32 %v7384_v20, %v3464_v62 }
 0x355   : > { %v3513_v41 = vadd.f32 %v7384_v20, %v3512_v12 }
 0x356   : > { %v3578_v22 = vadd.f32 %v3577_v6, %v3465_v63 }
 0x357   : > { %v3626_v5 = vadd.f32 %v3625_v60, %v3513_v41  ;;  %v3580_v44 = vpop.f32.mrf.mxu1 }
 0x358   : > { %3653 = vst [vmem:[%s7400_s22 + $0x50] sm:$0xff] %v3578_v22  ;;  %v3628_v54 = vpop.f32.mrf.mxu3 }
 0x359   : > { %3669 = vst [vmem:[%s7400_s22 + $0xd0] sm:$0xff] %v3626_v5 }
 0x35b   : > { %v3467_v25 = vpop.f32.mrf.mxu0 }
 0x35c   : > { %v3515_v56 = vpop.f32.mrf.mxu2  ;;  %v3468_v43 = vadd.f32 %v7384_v20, %v3467_v25 }
 0x35d   : > { %v3516_v7 = vadd.f32 %v7384_v20, %v3515_v56 }
 0x35e   : > { %v3581_v33 = vadd.f32 %v3580_v44, %v3468_v43 }
 0x35f   : > { %v3629_v26 = vadd.f32 %v3628_v54, %v3516_v7  ;;  %v3583_v23 = vpop.f32.mrf.mxu1 }
 0x360   : > { %3654 = vst [vmem:[%s7400_s22 + $0x58] sm:$0xff] %v3581_v33  ;;  %v3631_v11 = vpop.f32.mrf.mxu3 }
 0x361   : > { %3670 = vst [vmem:[%s7400_s22 + $0xd8] sm:$0xff] %v3629_v26 }
 0x363   : > { %v3470_v36 = vpop.f32.mrf.mxu0 }
 0x364   : > { %v3518_v51 = vpop.f32.mrf.mxu2  ;;  %v3471_v32 = vadd.f32 %v7384_v20, %v3470_v36 }
 0x365   : > { %v3519_v0 = vadd.f32 %v7384_v20, %v3518_v51 }
 0x366   : > { %v3584_v37 = vadd.f32 %v3583_v23, %v3471_v32 }
 0x367   : > { %v3632_v40 = vadd.f32 %v3631_v11, %v3519_v0  ;;  %v3586_v30 = vpop.f32.mrf.mxu1 }
 0x368   : > { %3655 = vst [vmem:[%s7400_s22 + $0x60] sm:$0xff] %v3584_v37  ;;  %v3634_v24 = vpop.f32.mrf.mxu3 }
 0x369   : > { %3671 = vst [vmem:[%s7400_s22 + $0xe0] sm:$0xff] %v3632_v40 }
 0x36b   : > { %v3473_v48 = vpop.f32.mrf.mxu0 }
 0x36c   : > { %v3521_v3 = vpop.f32.mrf.mxu2  ;;  %v3474_v46 = vadd.f32 %v7384_v20, %v3473_v48 }
 0x36d   : > { %v3522_v31 = vadd.f32 %v7384_v20, %v3521_v3 }
 0x36e   : > { %v3587_v9 = vadd.f32 %v3586_v30, %v3474_v46 }
 0x36f   : > { %v3635_v27 = vadd.f32 %v3634_v24, %v3522_v31 }
 0x370   : > { %3656 = vst [vmem:[%s7400_s22 + $0x68] sm:$0xff] %v3587_v9  ;;  %v3637_v1 = vpop.f32.mrf.mxu3 }
 0x371   : > { %3672 = vst [vmem:[%s7400_s22 + $0xe8] sm:$0xff] %v3635_v27 }
 0x373   : > { %v3476_v34 = vpop.f32.mrf.mxu0 }
 0x374   : > { %v3524_v58 = vpop.f32.mrf.mxu2  ;;  %v3477_v52 = vadd.f32 %v7384_v20, %v3476_v34 }
 0x375   : > { %v3525_v55 = vadd.f32 %v7384_v20, %v3524_v58 }
 0x377   : > { %v3638_v8 = vadd.f32 %v3637_v1, %v3525_v55 }
 0x379   : > { %3673 = vst [vmem:[%s7400_s22 + $0xf0] sm:$0xff] %v3638_v8 }
 0x387   : > { %v3527_v10 = vpop.f32.mrf.mxu2 }
 0x388   : > { %v3589_v19 = vpop.f32.mrf.mxu1  ;;  %v3528_v49 = vadd.f32 %v7384_v20, %v3527_v10 }
 0x389   : > { %v3590_v2 = vadd.f32 %v3589_v19, %v3477_v52 }
 0x38b   : > { %3657 = vst [vmem:[%s7400_s22 + $0x70] sm:$0xff] %v3590_v2 }
 0x399   : > { %v3640_v38 = vpop.f32.mrf.mxu3 }
 0x39a   : > { %v3641_v42 = vadd.f32 %v3640_v38, %v3528_v49  ;;  %v3479_v15 = vpop.f32.mrf.mxu0 }
 0x39b   : > { %v3480_v61 = vadd.f32 %v7384_v20, %v3479_v15 }
 0x39c   : > { %3674 = vst [vmem:[%s7400_s22 + $0xf8] sm:$0xff] %v3641_v42 }
 0x3a9   : > { %v3592_v16 = vpop.f32.mrf.mxu1 }
 0x3aa   : > { %v3593_v28 = vadd.f32 %v3592_v16, %v3480_v61 }
 0x3ac   : > { %3658 = vst [vmem:[%s7400_s22 + $0x78] sm:$0xff] %v3593_v28 }
 0x3ad   : > { %4343 = shalt.err (!%p4340_p13)
}
 0x3ae   : > { %s4434_s2 = smov 128   ;;  %s4435_s24 = smov 8  }
 0x3af   : > { %3953 = dma.vmem_to_hbm [thread:$0]  (%p4582_p2), %s3691_s15, 4096, %s3693_s20, %s3676_s14, %s4434_s2, %s4434_s2, %s4435_s24  }
 0x3b0 PF: > { %s7793_s22 = sld [smem:[#allocation18_spill]]  ;;  %p3980_p0 = scmp.ge.s32.totalorder %s4424_s11, 2 }
 0x3b2   : > { %p3970_p4 = pnand %p3980_p0, %p4536_p5 }
 0x3b4   : > { %p3971_p6 = pneg %p3970_p4 }
 0x3b6   : > { %s3707_s26 = sand.u32 1, %s7793_s22  }
 0x3b7   : > { %s3708_s19 = scalar_lea.sflag [#allocation6], %s3707_s26 }
 0x3b8   : > { %4391 = dma.done.wait (%p3971_p6), %s3708_s19, 4096  }
 0x3b9   : > { %4393 = vsyncadd (%p3971_p6), %s3708_s19, 4294963200  ;;  %s33_s11 = sadd.s32 1, %s4424_s11   ;;  %s7795_s27 = sld [smem:[#allocation20_spill]] }
 0x3ba   : > { %p30_p8 = scmp.ge.s32.totalorder %s33_s11, 6   ;;  %s7796_s17 = sld [smem:[#allocation22_spill]] }
 0x3bb   : > { %s7797_s28 = smov %s4400_s29  ;;  %s7798_s29 = smov %s4404_s30 }
 0x3bc   : > { %s7799_s30 = smov %s4601_s5  ;;  %s7800_s8 = smov %s4416_s9 }
 0x3bd   : > { %s7801_s0 = smov %s4420_s10  ;;  %32 = sbr.rel (!%p30_p8) target bundleno = 18 (0x12), region = 102 }
 0x3bf   : > { %s7802_s9 = smov %s7795_s27 }
 0x3c0   : > { %s7803_s10 = smov %s7796_s17 }
 0x3c2   :  { %3714 = vsyncpa [#allocation5], 1 }
 0x3c3   :  { %3716 = vsyncpa [#allocation5 + $0x1], 1 }
 0x3c4   :  { %3717 = vsyncpa [#allocation8], 1 }
 0x3c5   :  { %3718 = vsyncpa [#allocation11], 1 }
 0x3c6   :  { %3719 = vsyncpa [#allocation6], 1 }
 0x3c7   :  { %3721 = vsyncpa [#allocation6 + $0x1], 1 }

</bundles_post_ra>
